<compile_context>
chip_gen: v5e
topology: v5e:2x2
jax: 0.10.0
libtpu: 0.0.40
codegen_flags: <defaults>
</compile_context>

<pallas_src>
import functools

import jax
import jax.numpy as jnp
from jax import lax
from jax.experimental import pallas as pl
from jax.experimental.pallas import tpu as pltpu

_LANE = 128
_NEG_SLOPE = 0.01                       # LeakyReLU(0.01) from the PyTorch module
_TM_CAP = 1024                          # matmul row-tile cap
_TK_CAP = 2048                          # matmul reduction-tile cap (single K step if K_pad <= this)
_FUSED_VMEM_BUDGET = 20 * 1024 * 1024   # per-step working-set budget for the fused conv


def _round_up(x, m):
    return ((x + m - 1) // m) * m


def _device_kind():
    try:
        return jax.devices()[0].device_kind.lower()
    except Exception:
        return ""


def _tn_cap():
    kind = _device_kind()
    if ("v5 lite" in kind) or ("v5e" in kind) or ("v5litepod" in kind):
        return 128          # v5e is memory bound here; keep the lane tile minimal
    return 512


def _vmem_limit():
    kind = _device_kind()
    if "v7" in kind:
        return 44 * 1024 * 1024          # v7x: 64 MiB physical VMEM per TC
    if ("v5" in kind) or ("v6" in kind) or ("v4" in kind):
        return 64 * 1024 * 1024          # 128 MiB physical VMEM
    return 40 * 1024 * 1024              # conservative default (budgets are <= 20 MiB)


def _tile_for(padded_dim, cap):
    """Largest multiple of 128 that is <= cap and divides padded_dim."""
    assert padded_dim % _LANE == 0
    t = max((min(cap, padded_dim) // _LANE) * _LANE, _LANE)
    while padded_dim % t:
        t -= _LANE
    return t


# ----------------------------------------------------------------------------
# Pallas kernel 1: fused conv (in-kernel im2col over a phase-split input block)
# ----------------------------------------------------------------------------
def _fused_conv_kernel(x_ref, w_ref, b_ref, o_ref, *, kh, kw, stride, oh, ow,
                       apply_act, negative_slope):
    # x_ref: (1, stride*stride, OHp, OWp, Cin)  phase-split padded activation
    # w_ref: (kh, kw, Cin, TN) bf16 tap weights
    # b_ref: (1, TN) f32 ; o_ref: (1, oh, ow, TN)
    cin = x_ref.shape[-1]
    tn = o_ref.shape[-1]
    m = oh * ow

    acc = None
    for pi in range(stride):
        n_qi = (kh - pi + stride - 1) // stride
        for pj in range(stride):
            n_qj = (kw - pj + stride - 1) // stride
            plane = x_ref[0, pi * stride + pj]            # (OHp, OWp, cin)
            for qi in range(n_qi):
                ki = qi * stride + pi
                for qj in range(n_qj):
                    kj = qj * stride + pj
                    tap = plane[qi:qi + oh, qj:qj + ow, :].reshape(m, cin)
                    prod = jnp.dot(tap, w_ref[ki, kj],
                                   preferred_element_type=jnp.float32)
                    acc = prod if acc is None else acc + prod

    out = acc + b_ref[...]                                # (m, tn) + (1, tn)
    if apply_act:
        out = jnp.maximum(out, negative_slope * out)      # LeakyReLU
    o_ref[...] = out.reshape(1, oh, ow, tn).astype(o_ref.dtype)


def _fused_tile_n(cout_pad, *, x_bytes, cin, kh, kw, m, out_elem_bytes):
    """Largest TN (multiple of 128, divides cout_pad) fitting the VMEM budget."""
    tn = min(cout_pad, _tn_cap())
    while tn >= _LANE:
        if cout_pad % tn == 0:
            ws = (2 * x_bytes                       # double-buffered input block
                  + 2 * kh * kw * cin * tn * 2      # double-buffered weight block
                  + 2 * m * tn * out_elem_bytes     # double-buffered output block
                  + m * tn * 4                      # f32 accumulator value
                  + 2 * m * cin * 2)                # tap staging slack
            if ws <= _FUSED_VMEM_BUDGET:
                return tn
        tn -= _LANE
    return None


def conv2d(x_nhwc, layer, *, apply_act, out_dtype):
    """x: (N, H, W, Cin) bf16 with Cin == packed cin (lane-padded after layer 0).
    Returns (N, OH, OW, Cout_pad) in out_dtype (padded output channels kept)."""
    N, H, W, C = x_nhwc.shape
    kh, kw, stride, pad = layer["kh"], layer["kw"], layer["stride"], layer["pad"]
    cin_pad, cout_pad = layer["w4"].shape[2], layer["w4"].shape[3]
    assert C == cin_pad, (C, cin_pad)

    Hp, Wp = H + 2 * pad, W + 2 * pad
    geom_ok = (Hp % stride == 0 and Wp % stride == 0
               and (Hp - kh) % stride == 0 and (Wp - kw) % stride == 0)
    OH = (Hp - kh) // stride + 1
    OW = (Wp - kw) // stride + 1
    OHp, OWp = Hp // stride, Wp // stride
    geom_ok = (geom_ok and ((kh - 1) // stride + OH <= OHp)
               and ((kw - 1) // stride + OW <= OWp))

    tn = None
    if geom_ok:
        tn = _fused_tile_n(cout_pad,
                           x_bytes=Hp * Wp * C * 2, cin=cin_pad, kh=kh, kw=kw,
                           m=OH * OW,
                           out_elem_bytes=jnp.dtype(out_dtype).itemsize)
    if tn is None:
        return _conv2d_im2col(x_nhwc, layer, apply_act=apply_act,
                              out_dtype=out_dtype, OH=OH, OW=OW)

    # Un-replicated pad + phase-split (space-to-depth by the stride): one XLA pass.
    xp = jnp.pad(x_nhwc.astype(jnp.bfloat16),
                 ((0, 0), (pad, pad), (pad, pad), (0, 0)))
    x5 = (xp.reshape(N, OHp, stride, OWp, stride, C)
            .transpose(0, 2, 4, 1, 3, 5)
            .reshape(N, stride * stride, OHp, OWp, C))

    kernel = functools.partial(_fused_conv_kernel, kh=kh, kw=kw, stride=stride,
                               oh=OH, ow=OW, apply_act=apply_act,
                               negative_slope=_NEG_SLOPE)
    return pl.pallas_call(
        kernel,
        out_shape=jax.ShapeDtypeStruct((N, OH, OW, cout_pad), out_dtype),
        grid_spec=pltpu.PrefetchScalarGridSpec(
            num_scalar_prefetch=0,
            grid=(cout_pad // tn, N),           # batch innermost: weight tile read once per j
            in_specs=[
                pl.BlockSpec((1, stride * stride, OHp, OWp, C),
                             lambda j, b: (b, 0, 0, 0, 0)),
                pl.BlockSpec((kh, kw, cin_pad, tn), lambda j, b: (0, 0, 0, j)),
                pl.BlockSpec((1, tn), lambda j, b: (0, j)),
            ],
            out_specs=pl.BlockSpec((1, OH, OW, tn), lambda j, b: (b, 0, 0, j)),
        ),
        compiler_params=pltpu.CompilerParams(
            dimension_semantics=("parallel", "parallel"),
            vmem_limit_bytes=_vmem_limit(),
        ),
    )(x5, layer["w4"], layer["bias"])


# ----------------------------------------------------------------------------
# Pallas kernel 2: tiled matmul + bias + LeakyReLU (aus_top head / fallback)
# ----------------------------------------------------------------------------
def _matmul_kernel_1k(x_ref, w_ref, b_ref, o_ref, *, apply_act, negative_slope):
    out = jnp.dot(x_ref[...], w_ref[...], preferred_element_type=jnp.float32)
    out = out + b_ref[...]
    if apply_act:
        out = jnp.maximum(out, negative_slope * out)
    o_ref[...] = out.astype(o_ref.dtype)


def _matmul_kernel_nk(x_ref, w_ref, b_ref, o_ref, acc_ref, *, apply_act,
                      negative_slope):
    k = pl.program_id(2)
    prod = jnp.dot(x_ref[...], w_ref[...], preferred_element_type=jnp.float32)

    @pl.when(k == 0)
    def _():
        acc_ref[...] = prod

    @pl.when(k > 0)
    def _():
        acc_ref[...] += prod

    @pl.when(k == pl.num_programs(2) - 1)
    def _():
        out = acc_ref[...] + b_ref[...]
        if apply_act:
            out = jnp.maximum(out, negative_slope * out)
        o_ref[...] = out.astype(o_ref.dtype)


def matmul_bias_act(x, w_pad, b_pad, *, apply_act, out_dtype,
                    negative_slope=_NEG_SLOPE):
    """x: (M, K); w_pad: (K_pad, N_pad) bf16 zero-padded; b_pad: (1, N_pad) f32.
    Returns the padded (M_pad, N_pad) result; caller slices off the padding."""
    M, K = x.shape
    K_pad, N_pad = w_pad.shape
    assert K <= K_pad and K_pad % _LANE == 0 and N_pad % _LANE == 0

    TM = min(_TM_CAP, _round_up(M, 16))
    M_pad = _round_up(M, TM)
    TK = _tile_for(K_pad, _TK_CAP)
    TN = _tile_for(N_pad, _tn_cap())

    x_p = x.astype(jnp.bfloat16)
    if (M_pad, K_pad) != (M, K):
        x_p = jnp.pad(x_p, ((0, M_pad - M), (0, K_pad - K)))

    nk = K_pad // TK
    if nk == 1:
        grid = (M_pad // TM, N_pad // TN)
        kernel = functools.partial(_matmul_kernel_1k, apply_act=apply_act,
                                   negative_slope=negative_slope)
        in_specs = [
            pl.BlockSpec((TM, TK), lambda i, j: (i, 0)),
            pl.BlockSpec((TK, TN), lambda i, j: (0, j)),
            pl.BlockSpec((1, TN), lambda i, j: (0, j)),
        ]
        out_specs = pl.BlockSpec((TM, TN), lambda i, j: (i, j))
        scratch = []
        semantics = ("parallel", "parallel")
    else:
        grid = (M_pad // TM, N_pad // TN, nk)
        kernel = functools.partial(_matmul_kernel_nk, apply_act=apply_act,
                                   negative_slope=negative_slope)
        in_specs = [
            pl.BlockSpec((TM, TK), lambda i, j, k: (i, k)),
            pl.BlockSpec((TK, TN), lambda i, j, k: (k, j)),
            pl.BlockSpec((1, TN), lambda i, j, k: (0, j)),
        ]
        out_specs = pl.BlockSpec((TM, TN), lambda i, j, k: (i, j))
        scratch = [pltpu.VMEM((TM, TN), jnp.float32)]
        semantics = ("parallel", "parallel", "arbitrary")

    return pl.pallas_call(
        kernel,
        out_shape=jax.ShapeDtypeStruct((M_pad, N_pad), out_dtype),
        grid_spec=pltpu.PrefetchScalarGridSpec(
            num_scalar_prefetch=0,
            grid=grid,
            in_specs=in_specs,
            out_specs=out_specs,
            scratch_shapes=scratch,
        ),
        compiler_params=pltpu.CompilerParams(
            dimension_semantics=semantics,
            vmem_limit_bytes=_vmem_limit(),
        ),
    )(x_p, w_pad, b_pad)


# ----------------------------------------------------------------------------
# im2col fallback (only if the fused whole-image block would not fit VMEM)
# ----------------------------------------------------------------------------
def _im2col(x_nhwc, kh, kw, stride, pad):
    N, H, W, C = x_nhwc.shape
    xp = jnp.pad(x_nhwc, ((0, 0), (pad, pad), (pad, pad), (0, 0)))
    OH = (H + 2 * pad - kh) // stride + 1
    OW = (W + 2 * pad - kw) // stride + 1
    blocks = []
    for i in range(kh):
        for j in range(kw):
            blocks.append(xp[:, i:i + stride * (OH - 1) + 1:stride,
                             j:j + stride * (OW - 1) + 1:stride, :])
    cols = jnp.concatenate(blocks, axis=-1)
    return cols.reshape(N * OH * OW, kh * kw * C)


def _conv2d_im2col(x_nhwc, layer, *, apply_act, out_dtype, OH, OW):
    N = x_nhwc.shape[0]
    kh, kw = layer["kh"], layer["kw"]
    cin_pad, cout_pad = layer["w4"].shape[2], layer["w4"].shape[3]
    K = kh * kw * cin_pad
    K_pad = _round_up(K, _LANE)
    w_mat = layer["w4"].reshape(K, cout_pad)
    if K_pad != K:
        w_mat = jnp.pad(w_mat, ((0, K_pad - K), (0, 0)))
    cols = _im2col(x_nhwc.astype(jnp.bfloat16), kh, kw,
                   layer["stride"], layer["pad"])
    out = matmul_bias_act(cols, w_mat, layer["bias"],
                          apply_act=apply_act, out_dtype=out_dtype)
    return out[:N * OH * OW, :].reshape(N, OH, OW, cout_pad)


# ----------------------------------------------------------------------------
# Parameters: PyTorch-layout init + one-time packing to kernel-ready operands
# ----------------------------------------------------------------------------
def init_discriminator_params(key, input_nc, aus_nc, image_size, ndf, n_layers):
    params = {"body": []}
    cur_in, cur_out = input_nc, ndf
    kkey = key
    for n in range(n_layers):
        kkey, kw_, kb_ = jax.random.split(kkey, 3)
        w = 0.05 * jax.random.normal(kw_, (cur_out, cur_in, 4, 4), jnp.float32)
        # norm_layer=BatchNorm2d (module default) => use_bias=False for layers>=1;
        # layer 0 is constructed without the bias kwarg => bias=True.  (Note the
        # module never actually inserts a norm layer into the sequence.)
        b = (0.05 * jax.random.normal(kb_, (cur_out,), jnp.float32)
             if n == 0 else None)
        params["body"].append({"w": w, "b": b})
        cur_in, cur_out = cur_out, 2 * cur_out
    cur_dim = cur_in
    kkey, kd, ka = jax.random.split(kkey, 3)
    params["dis_top_w"] = 0.05 * jax.random.normal(kd, (1, cur_dim, 3, 3),
                                                   jnp.float32)
    k_size = image_size // (2 ** n_layers)
    params["aus_top_w"] = 0.05 * jax.random.normal(
        ka, (aus_nc, cur_dim, k_size, k_size), jnp.float32)
    return params


def _pack_conv(w_oihw, bias, cin_pad, cout_pad):
    """OIHW conv weight -> zero-padded bf16 (kh, kw, cin_pad, cout_pad) taps
    (matches NHWC / (ki, kj, cin) reduction order) + f32 bias row."""
    cout, cin, kh, kw = w_oihw.shape
    w4 = jnp.zeros((kh, kw, cin_pad, cout_pad), jnp.bfloat16)
    w4 = w4.at[:, :, :cin, :cout].set(
        jnp.transpose(w_oihw, (2, 3, 1, 0)).astype(jnp.bfloat16))
    b = jnp.zeros((1, cout_pad), jnp.float32)
    if bias is not None:
        b = b.at[0, :cout].set(bias.astype(jnp.float32))
    return w4, b


def prepare_discriminator_params(params):
    """One-time packing (hoisted out of the forward path).  Cout is lane-padded
    to a multiple of 128 and the next layer's padded Cin matches, so the padded
    channel layout is carried between layers with no slice/re-pad passes."""
    prep = {"body": []}
    for idx, layer in enumerate(params["body"]):
        cout, cin, kh, kw = layer["w"].shape
        cin_pad = cin if idx == 0 else _round_up(cin, _LANE)
        cout_pad = _round_up(cout, _LANE)
        w4, b = _pack_conv(layer["w"], layer["b"], cin_pad, cout_pad)
        prep["body"].append(dict(w4=w4, bias=b, cout=cout,
                                 kh=kh, kw=kw, stride=2, pad=1))

    w = params["dis_top_w"]                    # (1, cur_dim, 3, 3)
    cur_dim = w.shape[1]
    cur_dim_pad = _round_up(cur_dim, _LANE)
    w4, b = _pack_conv(w, None, cur_dim_pad, _LANE)
    prep["dis_top"] = dict(w4=w4, bias=b, cout=1, kh=3, kw=3, stride=1, pad=1)

    w = params["aus_top_w"]                    # (aus_nc, cur_dim, k, k)
    aus_nc, _, ks, _ = w.shape
    aus_pad = _round_up(aus_nc, _LANE)
    w4, b = _pack_conv(w, None, cur_dim_pad, aus_pad)
    prep["aus_top"] = dict(w_mat=w4.reshape(ks * ks * cur_dim_pad, aus_pad),
                           bias=b, cout=aus_nc)
    return prep


# ----------------------------------------------------------------------------
# Forward
# ----------------------------------------------------------------------------
def discriminator_forward(img_nchw, prep):
    """img: (N, C, H, W) f32 (PyTorch layout). Returns squeezed
    (pred_map, pred_aus) matching Discriminator.forward."""
    x = jnp.transpose(img_nchw, (0, 2, 3, 1)).astype(jnp.bfloat16)   # NCHW->NHWC
    for layer in prep["body"]:
        x = conv2d(x, layer, apply_act=True, out_dtype=jnp.bfloat16)

    # dis_top: Conv(cur_dim -> 1, k=3, s=1, p=1, bias=False), no activation.
    # bf16 output (only lane 0 is real), sliced + cast in the wrapper.
    pm = conv2d(x, prep["dis_top"], apply_act=False, out_dtype=jnp.bfloat16)
    pred_map = jnp.squeeze(pm[..., 0].astype(jnp.float32))

    # aus_top: full-spatial k x k, stride 1, pad 0 conv == flatten + matmul.
    # NHWC flatten of the padded embedding matches the packed (kh, kw, cin_pad)
    # weight order.
    n = x.shape[0]
    flat = x.reshape(n, -1)
    aus = prep["aus_top"]
    pa = matmul_bias_act(flat, aus["w_mat"], aus["bias"],
                         apply_act=False, out_dtype=jnp.float32)
    pred_aus = jnp.squeeze(pa[:n, :aus["cout"]])
    return pred_map, pred_aus


# ----------------------------------------------------------------------------
# Pure-JAX references (f32, and bf16-quantized to match kernel numerics)
# ----------------------------------------------------------------------------
def _ref_conv(x, w, b, stride, pad, quant):
    if quant:
        x = x.astype(jnp.bfloat16)
        w = w.astype(jnp.bfloat16)
    out = lax.conv_general_dilated(
        x, w, window_strides=(stride, stride),
        padding=[(pad, pad), (pad, pad)],
        dimension_numbers=("NCHW", "OIHW", "NCHW"),
        preferred_element_type=jnp.float32)
    if b is not None:
        out = out + b.reshape(1, -1, 1, 1)
    return out


def _ref_forward(img, params, *, quant=False):
    x = img
    for layer in params["body"]:
        x = _ref_conv(x, layer["w"], layer["b"], 2, 1, quant)
        x = jnp.where(x >= 0.0, x, _NEG_SLOPE * x)
        if quant:
            x = x.astype(jnp.bfloat16).astype(jnp.float32)
    pm = _ref_conv(x, params["dis_top_w"], None, 1, 1, quant)
    if quant:
        pm = pm.astype(jnp.bfloat16).astype(jnp.float32)   # kernel emits bf16 map
    pa = _ref_conv(x, params["aus_top_w"], None, 1, 0, quant)
    return jnp.squeeze(pm), jnp.squeeze(pa)


if __name__ == "__main__":
    # Small config consistent with the module:
    #   Discriminator(input_nc=3, aus_nc=5, image_size=16, ndf=8, n_layers=3)
    N, input_nc, image_size = 2, 3, 16
    ndf, n_layers, aus_nc = 8, 3, 5

    key = jax.random.PRNGKey(0)
    k_img, k_par = jax.random.split(key)
    img = jax.random.normal(k_img, (N, input_nc, image_size, image_size),
                            jnp.float32)
    params = init_discriminator_params(k_par, input_nc, aus_nc, image_size,
                                       ndf, n_layers)
    prep = prepare_discriminator_params(params)   # weights packed once

    fwd = jax.jit(lambda im: discriminator_forward(im, prep))
    pred_map, pred_aus = fwd(img)
    jax.block_until_ready((pred_map, pred_aus))

    # 1) strict check vs. a bf16-quantized pure-JAX reference (same numerics).
    qm, qa = _ref_forward(img, params, quant=True)
    assert pred_map.shape == qm.shape, (pred_map.shape, qm.shape)
    assert pred_aus.shape == qa.shape, (pred_aus.shape, qa.shape)
    assert jnp.allclose(pred_map, qm, rtol=2e-2, atol=2e-2), \
        float(jnp.max(jnp.abs(pred_map - qm)))
    assert jnp.allclose(pred_aus, qa, rtol=2e-2, atol=2e-2), \
        float(jnp.max(jnp.abs(pred_aus - qa)))

    # 2) loose sanity check vs. the full-f32 reference (gap = bf16 quantization).
    fm, fa = _ref_forward(img, params, quant=False)

    def _nerr(a, b):
        return float(jnp.max(jnp.abs(a - b)) / (jnp.max(jnp.abs(b)) + 1e-6))

    assert _nerr(pred_map, fm) < 0.1, _nerr(pred_map, fm)
    assert _nerr(pred_aus, fa) < 0.1, _nerr(pred_aus, fa)

    print("KERNEL_OK")
</pallas_src>

<mosaic_0001>
module attributes {stable_mosaic.version = 11 : i64} {
  func.func @_fused_conv_kernel(%arg0: i32, %arg1: i32, %arg2: memref<1x4x9x9x3xbf16, #tpu.memory_space<vmem>>, %arg3: memref<4x4x3x128xbf16, #tpu.memory_space<vmem>>, %arg4: memref<1x128xf32, #tpu.memory_space<vmem>>, %arg5: memref<1x8x8x128xbf16, #tpu.memory_space<vmem>>) attributes {dimension_semantics = [#tpu.dimension_semantics<parallel>, #tpu.dimension_semantics<parallel>], iteration_bounds = array<i64: 1, 2>, scalar_prefetch = 0 : i64, scratch_operands = 0 : i64, tpu.core_type = #tpu.core_type<tc>, window_params = [{transform_indices = @transform_0, window_bounds = array<i64: 1, 4, 9, 9, 3>}, {transform_indices = @transform_1, window_bounds = array<i64: 4, 4, 3, 128>}, {transform_indices = @transform_2, window_bounds = array<i64: 1, 128>}, {transform_indices = @transform_3, window_bounds = array<i64: 1, 8, 8, 128>}]} {
    %c0 = arith.constant 0 : index
    %c0_0 = arith.constant 0 : index
    %c0_1 = arith.constant 0 : index
    %c0_2 = arith.constant 0 : index
    %c0_3 = arith.constant 0 : index
    %0 = vector.load %arg2[%c0, %c0_0, %c0_1, %c0_2, %c0_3] : memref<1x4x9x9x3xbf16, #tpu.memory_space<vmem>>, vector<1x1x9x9x3xbf16>
    %1 = vector.shape_cast %0 : vector<1x1x9x9x3xbf16> to vector<9x9x3xbf16>
    %2 = vector.extract_strided_slice %1 {offsets = [0, 0, 0], sizes = [8, 8, 3], strides = [1, 1, 1]} : vector<9x9x3xbf16> to vector<8x8x3xbf16>
    %3 = vector.shape_cast %2 : vector<8x8x3xbf16> to vector<64x3xbf16>
    %c0_4 = arith.constant 0 : index
    %c0_5 = arith.constant 0 : index
    %c0_6 = arith.constant 0 : index
    %c0_7 = arith.constant 0 : index
    %4 = vector.load %arg3[%c0_4, %c0_5, %c0_6, %c0_7] : memref<4x4x3x128xbf16, #tpu.memory_space<vmem>>, vector<1x1x3x128xbf16>
    %5 = vector.shape_cast %4 : vector<1x1x3x128xbf16> to vector<3x128xbf16>
    %cst = arith.constant dense<0.000000e+00> : vector<64x128xf32>
    %6 = tpu.matmul %3, %5, %cst {dimension_numbers = #tpu.dot_dimension_numbers<[1], [0], [0], [1], [0, 0, 1, 1], [], []>} : vector<64x3xbf16>, vector<3x128xbf16>, vector<64x128xf32> -> vector<64x128xf32>
    %7 = vector.extract_strided_slice %1 {offsets = [0, 1, 0], sizes = [8, 8, 3], strides = [1, 1, 1]} : vector<9x9x3xbf16> to vector<8x8x3xbf16>
    %8 = vector.shape_cast %7 : vector<8x8x3xbf16> to vector<64x3xbf16>
    %c0_8 = arith.constant 0 : index
    %c2 = arith.constant 2 : index
    %c0_9 = arith.constant 0 : index
    %c0_10 = arith.constant 0 : index
    %9 = vector.load %arg3[%c0_8, %c2, %c0_9, %c0_10] : memref<4x4x3x128xbf16, #tpu.memory_space<vmem>>, vector<1x1x3x128xbf16>
    %10 = vector.shape_cast %9 : vector<1x1x3x128xbf16> to vector<3x128xbf16>
    %cst_11 = arith.constant dense<0.000000e+00> : vector<64x128xf32>
    %11 = tpu.matmul %8, %10, %cst_11 {dimension_numbers = #tpu.dot_dimension_numbers<[1], [0], [0], [1], [0, 0, 1, 1], [], []>} : vector<64x3xbf16>, vector<3x128xbf16>, vector<64x128xf32> -> vector<64x128xf32>
    %12 = arith.addf %6, %11 : vector<64x128xf32>
    %13 = vector.extract_strided_slice %1 {offsets = [1, 0, 0], sizes = [8, 8, 3], strides = [1, 1, 1]} : vector<9x9x3xbf16> to vector<8x8x3xbf16>
    %14 = vector.shape_cast %13 : vector<8x8x3xbf16> to vector<64x3xbf16>
    %c2_12 = arith.constant 2 : index
    %c0_13 = arith.constant 0 : index
    %c0_14 = arith.constant 0 : index
    %c0_15 = arith.constant 0 : index
    %15 = vector.load %arg3[%c2_12, %c0_13, %c0_14, %c0_15] : memref<4x4x3x128xbf16, #tpu.memory_space<vmem>>, vector<1x1x3x128xbf16>
    %16 = vector.shape_cast %15 : vector<1x1x3x128xbf16> to vector<3x128xbf16>
    %cst_16 = arith.constant dense<0.000000e+00> : vector<64x128xf32>
    %17 = tpu.matmul %14, %16, %cst_16 {dimension_numbers = #tpu.dot_dimension_numbers<[1], [0], [0], [1], [0, 0, 1, 1], [], []>} : vector<64x3xbf16>, vector<3x128xbf16>, vector<64x128xf32> -> vector<64x128xf32>
    %18 = arith.addf %12, %17 : vector<64x128xf32>
    %19 = vector.extract_strided_slice %1 {offsets = [1, 1, 0], sizes = [8, 8, 3], strides = [1, 1, 1]} : vector<9x9x3xbf16> to vector<8x8x3xbf16>
    %20 = vector.shape_cast %19 : vector<8x8x3xbf16> to vector<64x3xbf16>
    %c2_17 = arith.constant 2 : index
    %c2_18 = arith.constant 2 : index
    %c0_19 = arith.constant 0 : index
    %c0_20 = arith.constant 0 : index
    %21 = vector.load %arg3[%c2_17, %c2_18, %c0_19, %c0_20] : memref<4x4x3x128xbf16, #tpu.memory_space<vmem>>, vector<1x1x3x128xbf16>
    %22 = vector.shape_cast %21 : vector<1x1x3x128xbf16> to vector<3x128xbf16>
    %cst_21 = arith.constant dense<0.000000e+00> : vector<64x128xf32>
    %23 = tpu.matmul %20, %22, %cst_21 {dimension_numbers = #tpu.dot_dimension_numbers<[1], [0], [0], [1], [0, 0, 1, 1], [], []>} : vector<64x3xbf16>, vector<3x128xbf16>, vector<64x128xf32> -> vector<64x128xf32>
    %24 = arith.addf %18, %23 : vector<64x128xf32>
    %c0_22 = arith.constant 0 : index
    %c1 = arith.constant 1 : index
    %c0_23 = arith.constant 0 : index
    %c0_24 = arith.constant 0 : index
    %c0_25 = arith.constant 0 : index
    %25 = vector.load %arg2[%c0_22, %c1, %c0_23, %c0_24, %c0_25] : memref<1x4x9x9x3xbf16, #tpu.memory_space<vmem>>, vector<1x1x9x9x3xbf16>
    %26 = vector.shape_cast %25 : vector<1x1x9x9x3xbf16> to vector<9x9x3xbf16>
    %27 = vector.extract_strided_slice %26 {offsets = [0, 0, 0], sizes = [8, 8, 3], strides = [1, 1, 1]} : vector<9x9x3xbf16> to vector<8x8x3xbf16>
    %28 = vector.shape_cast %27 : vector<8x8x3xbf16> to vector<64x3xbf16>
    %c0_26 = arith.constant 0 : index
    %c1_27 = arith.constant 1 : index
    %c0_28 = arith.constant 0 : index
    %c0_29 = arith.constant 0 : index
    %29 = vector.load %arg3[%c0_26, %c1_27, %c0_28, %c0_29] : memref<4x4x3x128xbf16, #tpu.memory_space<vmem>>, vector<1x1x3x128xbf16>
    %30 = vector.shape_cast %29 : vector<1x1x3x128xbf16> to vector<3x128xbf16>
    %cst_30 = arith.constant dense<0.000000e+00> : vector<64x128xf32>
    %31 = tpu.matmul %28, %30, %cst_30 {dimension_numbers = #tpu.dot_dimension_numbers<[1], [0], [0], [1], [0, 0, 1, 1], [], []>} : vector<64x3xbf16>, vector<3x128xbf16>, vector<64x128xf32> -> vector<64x128xf32>
    %32 = arith.addf %24, %31 : vector<64x128xf32>
    %33 = vector.extract_strided_slice %26 {offsets = [0, 1, 0], sizes = [8, 8, 3], strides = [1, 1, 1]} : vector<9x9x3xbf16> to vector<8x8x3xbf16>
    %34 = vector.shape_cast %33 : vector<8x8x3xbf16> to vector<64x3xbf16>
    %c0_31 = arith.constant 0 : index
    %c3 = arith.constant 3 : index
    %c0_32 = arith.constant 0 : index
    %c0_33 = arith.constant 0 : index
    %35 = vector.load %arg3[%c0_31, %c3, %c0_32, %c0_33] : memref<4x4x3x128xbf16, #tpu.memory_space<vmem>>, vector<1x1x3x128xbf16>
    %36 = vector.shape_cast %35 : vector<1x1x3x128xbf16> to vector<3x128xbf16>
    %cst_34 = arith.constant dense<0.000000e+00> : vector<64x128xf32>
    %37 = tpu.matmul %34, %36, %cst_34 {dimension_numbers = #tpu.dot_dimension_numbers<[1], [0], [0], [1], [0, 0, 1, 1], [], []>} : vector<64x3xbf16>, vector<3x128xbf16>, vector<64x128xf32> -> vector<64x128xf32>
    %38 = arith.addf %32, %37 : vector<64x128xf32>
    %39 = vector.extract_strided_slice %26 {offsets = [1, 0, 0], sizes = [8, 8, 3], strides = [1, 1, 1]} : vector<9x9x3xbf16> to vector<8x8x3xbf16>
    %40 = vector.shape_cast %39 : vector<8x8x3xbf16> to vector<64x3xbf16>
    %c2_35 = arith.constant 2 : index
    %c1_36 = arith.constant 1 : index
    %c0_37 = arith.constant 0 : index
    %c0_38 = arith.constant 0 : index
    %41 = vector.load %arg3[%c2_35, %c1_36, %c0_37, %c0_38] : memref<4x4x3x128xbf16, #tpu.memory_space<vmem>>, vector<1x1x3x128xbf16>
    %42 = vector.shape_cast %41 : vector<1x1x3x128xbf16> to vector<3x128xbf16>
    %cst_39 = arith.constant dense<0.000000e+00> : vector<64x128xf32>
    %43 = tpu.matmul %40, %42, %cst_39 {dimension_numbers = #tpu.dot_dimension_numbers<[1], [0], [0], [1], [0, 0, 1, 1], [], []>} : vector<64x3xbf16>, vector<3x128xbf16>, vector<64x128xf32> -> vector<64x128xf32>
    %44 = arith.addf %38, %43 : vector<64x128xf32>
    %45 = vector.extract_strided_slice %26 {offsets = [1, 1, 0], sizes = [8, 8, 3], strides = [1, 1, 1]} : vector<9x9x3xbf16> to vector<8x8x3xbf16>
    %46 = vector.shape_cast %45 : vector<8x8x3xbf16> to vector<64x3xbf16>
    %c2_40 = arith.constant 2 : index
    %c3_41 = arith.constant 3 : index
    %c0_42 = arith.constant 0 : index
    %c0_43 = arith.constant 0 : index
    %47 = vector.load %arg3[%c2_40, %c3_41, %c0_42, %c0_43] : memref<4x4x3x128xbf16, #tpu.memory_space<vmem>>, vector<1x1x3x128xbf16>
    %48 = vector.shape_cast %47 : vector<1x1x3x128xbf16> to vector<3x128xbf16>
    %cst_44 = arith.constant dense<0.000000e+00> : vector<64x128xf32>
    %49 = tpu.matmul %46, %48, %cst_44 {dimension_numbers = #tpu.dot_dimension_numbers<[1], [0], [0], [1], [0, 0, 1, 1], [], []>} : vector<64x3xbf16>, vector<3x128xbf16>, vector<64x128xf32> -> vector<64x128xf32>
    %50 = arith.addf %44, %49 : vector<64x128xf32>
    %c0_45 = arith.constant 0 : index
    %c2_46 = arith.constant 2 : index
    %c0_47 = arith.constant 0 : index
    %c0_48 = arith.constant 0 : index
    %c0_49 = arith.constant 0 : index
    %51 = vector.load %arg2[%c0_45, %c2_46, %c0_47, %c0_48, %c0_49] : memref<1x4x9x9x3xbf16, #tpu.memory_space<vmem>>, vector<1x1x9x9x3xbf16>
    %52 = vector.shape_cast %51 : vector<1x1x9x9x3xbf16> to vector<9x9x3xbf16>
    %53 = vector.extract_strided_slice %52 {offsets = [0, 0, 0], sizes = [8, 8, 3], strides = [1, 1, 1]} : vector<9x9x3xbf16> to vector<8x8x3xbf16>
    %54 = vector.shape_cast %53 : vector<8x8x3xbf16> to vector<64x3xbf16>
    %c1_50 = arith.constant 1 : index
    %c0_51 = arith.constant 0 : index
    %c0_52 = arith.constant 0 : index
    %c0_53 = arith.constant 0 : index
    %55 = vector.load %arg3[%c1_50, %c0_51, %c0_52, %c0_53] : memref<4x4x3x128xbf16, #tpu.memory_space<vmem>>, vector<1x1x3x128xbf16>
    %56 = vector.shape_cast %55 : vector<1x1x3x128xbf16> to vector<3x128xbf16>
    %cst_54 = arith.constant dense<0.000000e+00> : vector<64x128xf32>
    %57 = tpu.matmul %54, %56, %cst_54 {dimension_numbers = #tpu.dot_dimension_numbers<[1], [0], [0], [1], [0, 0, 1, 1], [], []>} : vector<64x3xbf16>, vector<3x128xbf16>, vector<64x128xf32> -> vector<64x128xf32>
    %58 = arith.addf %50, %57 : vector<64x128xf32>
    %59 = vector.extract_strided_slice %52 {offsets = [0, 1, 0], sizes = [8, 8, 3], strides = [1, 1, 1]} : vector<9x9x3xbf16> to vector<8x8x3xbf16>
    %60 = vector.shape_cast %59 : vector<8x8x3xbf16> to vector<64x3xbf16>
    %c1_55 = arith.constant 1 : index
    %c2_56 = arith.constant 2 : index
    %c0_57 = arith.constant 0 : index
    %c0_58 = arith.constant 0 : index
    %61 = vector.load %arg3[%c1_55, %c2_56, %c0_57, %c0_58] : memref<4x4x3x128xbf16, #tpu.memory_space<vmem>>, vector<1x1x3x128xbf16>
    %62 = vector.shape_cast %61 : vector<1x1x3x128xbf16> to vector<3x128xbf16>
    %cst_59 = arith.constant dense<0.000000e+00> : vector<64x128xf32>
    %63 = tpu.matmul %60, %62, %cst_59 {dimension_numbers = #tpu.dot_dimension_numbers<[1], [0], [0], [1], [0, 0, 1, 1], [], []>} : vector<64x3xbf16>, vector<3x128xbf16>, vector<64x128xf32> -> vector<64x128xf32>
    %64 = arith.addf %58, %63 : vector<64x128xf32>
    %65 = vector.extract_strided_slice %52 {offsets = [1, 0, 0], sizes = [8, 8, 3], strides = [1, 1, 1]} : vector<9x9x3xbf16> to vector<8x8x3xbf16>
    %66 = vector.shape_cast %65 : vector<8x8x3xbf16> to vector<64x3xbf16>
    %c3_60 = arith.constant 3 : index
    %c0_61 = arith.constant 0 : index
    %c0_62 = arith.constant 0 : index
    %c0_63 = arith.constant 0 : index
    %67 = vector.load %arg3[%c3_60, %c0_61, %c0_62, %c0_63] : memref<4x4x3x128xbf16, #tpu.memory_space<vmem>>, vector<1x1x3x128xbf16>
    %68 = vector.shape_cast %67 : vector<1x1x3x128xbf16> to vector<3x128xbf16>
    %cst_64 = arith.constant dense<0.000000e+00> : vector<64x128xf32>
    %69 = tpu.matmul %66, %68, %cst_64 {dimension_numbers = #tpu.dot_dimension_numbers<[1], [0], [0], [1], [0, 0, 1, 1], [], []>} : vector<64x3xbf16>, vector<3x128xbf16>, vector<64x128xf32> -> vector<64x128xf32>
    %70 = arith.addf %64, %69 : vector<64x128xf32>
    %71 = vector.extract_strided_slice %52 {offsets = [1, 1, 0], sizes = [8, 8, 3], strides = [1, 1, 1]} : vector<9x9x3xbf16> to vector<8x8x3xbf16>
    %72 = vector.shape_cast %71 : vector<8x8x3xbf16> to vector<64x3xbf16>
    %c3_65 = arith.constant 3 : index
    %c2_66 = arith.constant 2 : index
    %c0_67 = arith.constant 0 : index
    %c0_68 = arith.constant 0 : index
    %73 = vector.load %arg3[%c3_65, %c2_66, %c0_67, %c0_68] : memref<4x4x3x128xbf16, #tpu.memory_space<vmem>>, vector<1x1x3x128xbf16>
    %74 = vector.shape_cast %73 : vector<1x1x3x128xbf16> to vector<3x128xbf16>
    %cst_69 = arith.constant dense<0.000000e+00> : vector<64x128xf32>
    %75 = tpu.matmul %72, %74, %cst_69 {dimension_numbers = #tpu.dot_dimension_numbers<[1], [0], [0], [1], [0, 0, 1, 1], [], []>} : vector<64x3xbf16>, vector<3x128xbf16>, vector<64x128xf32> -> vector<64x128xf32>
    %76 = arith.addf %70, %75 : vector<64x128xf32>
    %c0_70 = arith.constant 0 : index
    %c3_71 = arith.constant 3 : index
    %c0_72 = arith.constant 0 : index
    %c0_73 = arith.constant 0 : index
    %c0_74 = arith.constant 0 : index
    %77 = vector.load %arg2[%c0_70, %c3_71, %c0_72, %c0_73, %c0_74] : memref<1x4x9x9x3xbf16, #tpu.memory_space<vmem>>, vector<1x1x9x9x3xbf16>
    %78 = vector.shape_cast %77 : vector<1x1x9x9x3xbf16> to vector<9x9x3xbf16>
    %79 = vector.extract_strided_slice %78 {offsets = [0, 0, 0], sizes = [8, 8, 3], strides = [1, 1, 1]} : vector<9x9x3xbf16> to vector<8x8x3xbf16>
    %80 = vector.shape_cast %79 : vector<8x8x3xbf16> to vector<64x3xbf16>
    %c1_75 = arith.constant 1 : index
    %c1_76 = arith.constant 1 : index
    %c0_77 = arith.constant 0 : index
    %c0_78 = arith.constant 0 : index
    %81 = vector.load %arg3[%c1_75, %c1_76, %c0_77, %c0_78] : memref<4x4x3x128xbf16, #tpu.memory_space<vmem>>, vector<1x1x3x128xbf16>
    %82 = vector.shape_cast %81 : vector<1x1x3x128xbf16> to vector<3x128xbf16>
    %cst_79 = arith.constant dense<0.000000e+00> : vector<64x128xf32>
    %83 = tpu.matmul %80, %82, %cst_79 {dimension_numbers = #tpu.dot_dimension_numbers<[1], [0], [0], [1], [0, 0, 1, 1], [], []>} : vector<64x3xbf16>, vector<3x128xbf16>, vector<64x128xf32> -> vector<64x128xf32>
    %84 = arith.addf %76, %83 : vector<64x128xf32>
    %85 = vector.extract_strided_slice %78 {offsets = [0, 1, 0], sizes = [8, 8, 3], strides = [1, 1, 1]} : vector<9x9x3xbf16> to vector<8x8x3xbf16>
    %86 = vector.shape_cast %85 : vector<8x8x3xbf16> to vector<64x3xbf16>
    %c1_80 = arith.constant 1 : index
    %c3_81 = arith.constant 3 : index
    %c0_82 = arith.constant 0 : index
    %c0_83 = arith.constant 0 : index
    %87 = vector.load %arg3[%c1_80, %c3_81, %c0_82, %c0_83] : memref<4x4x3x128xbf16, #tpu.memory_space<vmem>>, vector<1x1x3x128xbf16>
    %88 = vector.shape_cast %87 : vector<1x1x3x128xbf16> to vector<3x128xbf16>
    %cst_84 = arith.constant dense<0.000000e+00> : vector<64x128xf32>
    %89 = tpu.matmul %86, %88, %cst_84 {dimension_numbers = #tpu.dot_dimension_numbers<[1], [0], [0], [1], [0, 0, 1, 1], [], []>} : vector<64x3xbf16>, vector<3x128xbf16>, vector<64x128xf32> -> vector<64x128xf32>
    %90 = arith.addf %84, %89 : vector<64x128xf32>
    %91 = vector.extract_strided_slice %78 {offsets = [1, 0, 0], sizes = [8, 8, 3], strides = [1, 1, 1]} : vector<9x9x3xbf16> to vector<8x8x3xbf16>
    %92 = vector.shape_cast %91 : vector<8x8x3xbf16> to vector<64x3xbf16>
    %c3_85 = arith.constant 3 : index
    %c1_86 = arith.constant 1 : index
    %c0_87 = arith.constant 0 : index
    %c0_88 = arith.constant 0 : index
    %93 = vector.load %arg3[%c3_85, %c1_86, %c0_87, %c0_88] : memref<4x4x3x128xbf16, #tpu.memory_space<vmem>>, vector<1x1x3x128xbf16>
    %94 = vector.shape_cast %93 : vector<1x1x3x128xbf16> to vector<3x128xbf16>
    %cst_89 = arith.constant dense<0.000000e+00> : vector<64x128xf32>
    %95 = tpu.matmul %92, %94, %cst_89 {dimension_numbers = #tpu.dot_dimension_numbers<[1], [0], [0], [1], [0, 0, 1, 1], [], []>} : vector<64x3xbf16>, vector<3x128xbf16>, vector<64x128xf32> -> vector<64x128xf32>
    %96 = arith.addf %90, %95 : vector<64x128xf32>
    %97 = vector.extract_strided_slice %78 {offsets = [1, 1, 0], sizes = [8, 8, 3], strides = [1, 1, 1]} : vector<9x9x3xbf16> to vector<8x8x3xbf16>
    %98 = vector.shape_cast %97 : vector<8x8x3xbf16> to vector<64x3xbf16>
    %c3_90 = arith.constant 3 : index
    %c3_91 = arith.constant 3 : index
    %c0_92 = arith.constant 0 : index
    %c0_93 = arith.constant 0 : index
    %99 = vector.load %arg3[%c3_90, %c3_91, %c0_92, %c0_93] : memref<4x4x3x128xbf16, #tpu.memory_space<vmem>>, vector<1x1x3x128xbf16>
    %100 = vector.shape_cast %99 : vector<1x1x3x128xbf16> to vector<3x128xbf16>
    %cst_94 = arith.constant dense<0.000000e+00> : vector<64x128xf32>
    %101 = tpu.matmul %98, %100, %cst_94 {dimension_numbers = #tpu.dot_dimension_numbers<[1], [0], [0], [1], [0, 0, 1, 1], [], []>} : vector<64x3xbf16>, vector<3x128xbf16>, vector<64x128xf32> -> vector<64x128xf32>
    %102 = arith.addf %96, %101 : vector<64x128xf32>
    %c0_95 = arith.constant 0 : index
    %c0_96 = arith.constant 0 : index
    %103 = vector.load %arg4[%c0_95, %c0_96] : memref<1x128xf32, #tpu.memory_space<vmem>>, vector<1x128xf32>
    %104 = vector.broadcast %103 : vector<1x128xf32> to vector<64x128xf32>
    %105 = arith.addf %102, %104 : vector<64x128xf32>
    %cst_97 = arith.constant 0.00999999977 : f32
    %106 = vector.broadcast %cst_97 : f32 to vector<64x128xf32>
    %107 = arith.mulf %106, %105 : vector<64x128xf32>
    %108 = arith.maximumf %105, %107 : vector<64x128xf32>
    %109 = vector.shape_cast %108 : vector<64x128xf32> to vector<1x8x8x128xf32>
    %110 = arith.truncf %109 : vector<1x8x8x128xf32> to vector<1x8x8x128xbf16>
    %c0_98 = arith.constant 0 : index
    %c0_99 = arith.constant 0 : index
    %c0_100 = arith.constant 0 : index
    %c0_101 = arith.constant 0 : index
    %111 = vector.load %arg5[%c0_98, %c0_99, %c0_100, %c0_101] : memref<1x8x8x128xbf16, #tpu.memory_space<vmem>>, vector<1x8x8x128xbf16>
    tpu.vector_store %arg5[%c0_98, %c0_99, %c0_100, %c0_101], %110 {strides = array<i32>} : memref<1x8x8x128xbf16, #tpu.memory_space<vmem>>, vector<1x8x8x128xbf16>,
    return
  }
  func.func @transform_0(%arg0: i32, %arg1: i32) -> (i32, i32, i32, i32, i32) {
    %c0_i32 = arith.constant 0 : i32
    %c0_i32_0 = arith.constant 0 : i32
    %c0_i32_1 = arith.constant 0 : i32
    %c0_i32_2 = arith.constant 0 : i32
    %c0_i32_3 = arith.constant 0 : i32
    return %arg1, %c0_i32, %c0_i32_0, %c0_i32_1, %c0_i32_2 : i32, i32, i32, i32, i32
  }
  func.func @transform_1(%arg0: i32, %arg1: i32) -> (i32, i32, i32, i32) {
    %c0_i32 = arith.constant 0 : i32
    %c0_i32_0 = arith.constant 0 : i32
    %c0_i32_1 = arith.constant 0 : i32
    %c0_i32_2 = arith.constant 0 : i32
    return %c0_i32, %c0_i32_0, %c0_i32_1, %arg0 : i32, i32, i32, i32
  }
  func.func @transform_2(%arg0: i32, %arg1: i32) -> (i32, i32) {
    %c0_i32 = arith.constant 0 : i32
    %c0_i32_0 = arith.constant 0 : i32
    return %c0_i32, %arg0 : i32, i32
  }
  func.func @transform_3(%arg0: i32, %arg1: i32) -> (i32, i32, i32, i32) {
    %c0_i32 = arith.constant 0 : i32
    %c0_i32_0 = arith.constant 0 : i32
    %c0_i32_1 = arith.constant 0 : i32
    return %arg1, %c0_i32, %c0_i32_0, %arg0 : i32, i32, i32, i32
  }
}

module attributes {stable_mosaic.version = 11 : i64} {
  func.func @_fused_conv_kernel(%arg0: i32, %arg1: i32, %arg2: memref<1x4x5x5x128xbf16, #tpu.memory_space<vmem>>, %arg3: memref<4x4x128x128xbf16, #tpu.memory_space<vmem>>, %arg4: memref<1x128xf32, #tpu.memory_space<vmem>>, %arg5: memref<1x4x4x128xbf16, #tpu.memory_space<vmem>>) attributes {dimension_semantics = [#tpu.dimension_semantics<parallel>, #tpu.dimension_semantics<parallel>], iteration_bounds = array<i64: 1, 2>, scalar_prefetch = 0 : i64, scratch_operands = 0 : i64, tpu.core_type = #tpu.core_type<tc>, window_params = [{transform_indices = @transform_0, window_bounds = array<i64: 1, 4, 5, 5, 128>}, {transform_indices = @transform_1, window_bounds = array<i64: 4, 4, 128, 128>}, {transform_indices = @transform_2, window_bounds = array<i64: 1, 128>}, {transform_indices = @transform_3, window_bounds = array<i64: 1, 4, 4, 128>}]} {
    %c0 = arith.constant 0 : index
    %c0_0 = arith.constant 0 : index
    %c0_1 = arith.constant 0 : index
    %c0_2 = arith.constant 0 : index
    %c0_3 = arith.constant 0 : index
    %0 = vector.load %arg2[%c0, %c0_0, %c0_1, %c0_2, %c0_3] : memref<1x4x5x5x128xbf16, #tpu.memory_space<vmem>>, vector<1x1x5x5x128xbf16>
    %1 = vector.shape_cast %0 : vector<1x1x5x5x128xbf16> to vector<5x5x128xbf16>
    %2 = vector.extract_strided_slice %1 {offsets = [0, 0, 0], sizes = [4, 4, 128], strides = [1, 1, 1]} : vector<5x5x128xbf16> to vector<4x4x128xbf16>
    %3 = vector.shape_cast %2 : vector<4x4x128xbf16> to vector<16x128xbf16>
    %c0_4 = arith.constant 0 : index
    %c0_5 = arith.constant 0 : index
    %c0_6 = arith.constant 0 : index
    %c0_7 = arith.constant 0 : index
    %4 = vector.load %arg3[%c0_4, %c0_5, %c0_6, %c0_7] : memref<4x4x128x128xbf16, #tpu.memory_space<vmem>>, vector<1x1x128x128xbf16>
    %5 = vector.shape_cast %4 : vector<1x1x128x128xbf16> to vector<128x128xbf16>
    %cst = arith.constant dense<0.000000e+00> : vector<16x128xf32>
    %6 = tpu.matmul %3, %5, %cst {dimension_numbers = #tpu.dot_dimension_numbers<[1], [0], [0], [1], [0, 0, 1, 1], [], []>} : vector<16x128xbf16>, vector<128x128xbf16>, vector<16x128xf32> -> vector<16x128xf32>
    %7 = vector.extract_strided_slice %1 {offsets = [0, 1, 0], sizes = [4, 4, 128], strides = [1, 1, 1]} : vector<5x5x128xbf16> to vector<4x4x128xbf16>
    %8 = vector.shape_cast %7 : vector<4x4x128xbf16> to vector<16x128xbf16>
    %c0_8 = arith.constant 0 : index
    %c2 = arith.constant 2 : index
    %c0_9 = arith.constant 0 : index
    %c0_10 = arith.constant 0 : index
    %9 = vector.load %arg3[%c0_8, %c2, %c0_9, %c0_10] : memref<4x4x128x128xbf16, #tpu.memory_space<vmem>>, vector<1x1x128x128xbf16>
    %10 = vector.shape_cast %9 : vector<1x1x128x128xbf16> to vector<128x128xbf16>
    %cst_11 = arith.constant dense<0.000000e+00> : vector<16x128xf32>
    %11 = tpu.matmul %8, %10, %cst_11 {dimension_numbers = #tpu.dot_dimension_numbers<[1], [0], [0], [1], [0, 0, 1, 1], [], []>} : vector<16x128xbf16>, vector<128x128xbf16>, vector<16x128xf32> -> vector<16x128xf32>
    %12 = arith.addf %6, %11 : vector<16x128xf32>
    %13 = vector.extract_strided_slice %1 {offsets = [1, 0, 0], sizes = [4, 4, 128], strides = [1, 1, 1]} : vector<5x5x128xbf16> to vector<4x4x128xbf16>
    %14 = vector.shape_cast %13 : vector<4x4x128xbf16> to vector<16x128xbf16>
    %c2_12 = arith.constant 2 : index
    %c0_13 = arith.constant 0 : index
    %c0_14 = arith.constant 0 : index
    %c0_15 = arith.constant 0 : index
    %15 = vector.load %arg3[%c2_12, %c0_13, %c0_14, %c0_15] : memref<4x4x128x128xbf16, #tpu.memory_space<vmem>>, vector<1x1x128x128xbf16>
    %16 = vector.shape_cast %15 : vector<1x1x128x128xbf16> to vector<128x128xbf16>
    %cst_16 = arith.constant dense<0.000000e+00> : vector<16x128xf32>
    %17 = tpu.matmul %14, %16, %cst_16 {dimension_numbers = #tpu.dot_dimension_numbers<[1], [0], [0], [1], [0, 0, 1, 1], [], []>} : vector<16x128xbf16>, vector<128x128xbf16>, vector<16x128xf32> -> vector<16x128xf32>
    %18 = arith.addf %12, %17 : vector<16x128xf32>
    %19 = vector.extract_strided_slice %1 {offsets = [1, 1, 0], sizes = [4, 4, 128], strides = [1, 1, 1]} : vector<5x5x128xbf16> to vector<4x4x128xbf16>
    %20 = vector.shape_cast %19 : vector<4x4x128xbf16> to vector<16x128xbf16>
    %c2_17 = arith.constant 2 : index
    %c2_18 = arith.constant 2 : index
    %c0_19 = arith.constant 0 : index
    %c0_20 = arith.constant 0 : index
    %21 = vector.load %arg3[%c2_17, %c2_18, %c0_19, %c0_20] : memref<4x4x128x128xbf16, #tpu.memory_space<vmem>>, vector<1x1x128x128xbf16>
    %22 = vector.shape_cast %21 : vector<1x1x128x128xbf16> to vector<128x128xbf16>
    %cst_21 = arith.constant dense<0.000000e+00> : vector<16x128xf32>
    %23 = tpu.matmul %20, %22, %cst_21 {dimension_numbers = #tpu.dot_dimension_numbers<[1], [0], [0], [1], [0, 0, 1, 1], [], []>} : vector<16x128xbf16>, vector<128x128xbf16>, vector<16x128xf32> -> vector<16x128xf32>
    %24 = arith.addf %18, %23 : vector<16x128xf32>
    %c0_22 = arith.constant 0 : index
    %c1 = arith.constant 1 : index
    %c0_23 = arith.constant 0 : index
    %c0_24 = arith.constant 0 : index
    %c0_25 = arith.constant 0 : index
    %25 = vector.load %arg2[%c0_22, %c1, %c0_23, %c0_24, %c0_25] : memref<1x4x5x5x128xbf16, #tpu.memory_space<vmem>>, vector<1x1x5x5x128xbf16>
    %26 = vector.shape_cast %25 : vector<1x1x5x5x128xbf16> to vector<5x5x128xbf16>
    %27 = vector.extract_strided_slice %26 {offsets = [0, 0, 0], sizes = [4, 4, 128], strides = [1, 1, 1]} : vector<5x5x128xbf16> to vector<4x4x128xbf16>
    %28 = vector.shape_cast %27 : vector<4x4x128xbf16> to vector<16x128xbf16>
    %c0_26 = arith.constant 0 : index
    %c1_27 = arith.constant 1 : index
    %c0_28 = arith.constant 0 : index
    %c0_29 = arith.constant 0 : index
    %29 = vector.load %arg3[%c0_26, %c1_27, %c0_28, %c0_29] : memref<4x4x128x128xbf16, #tpu.memory_space<vmem>>, vector<1x1x128x128xbf16>
    %30 = vector.shape_cast %29 : vector<1x1x128x128xbf16> to vector<128x128xbf16>
    %cst_30 = arith.constant dense<0.000000e+00> : vector<16x128xf32>
    %31 = tpu.matmul %28, %30, %cst_30 {dimension_numbers = #tpu.dot_dimension_numbers<[1], [0], [0], [1], [0, 0, 1, 1], [], []>} : vector<16x128xbf16>, vector<128x128xbf16>, vector<16x128xf32> -> vector<16x128xf32>
    %32 = arith.addf %24, %31 : vector<16x128xf32>
    %33 = vector.extract_strided_slice %26 {offsets = [0, 1, 0], sizes = [4, 4, 128], strides = [1, 1, 1]} : vector<5x5x128xbf16> to vector<4x4x128xbf16>
    %34 = vector.shape_cast %33 : vector<4x4x128xbf16> to vector<16x128xbf16>
    %c0_31 = arith.constant 0 : index
    %c3 = arith.constant 3 : index
    %c0_32 = arith.constant 0 : index
    %c0_33 = arith.constant 0 : index
    %35 = vector.load %arg3[%c0_31, %c3, %c0_32, %c0_33] : memref<4x4x128x128xbf16, #tpu.memory_space<vmem>>, vector<1x1x128x128xbf16>
    %36 = vector.shape_cast %35 : vector<1x1x128x128xbf16> to vector<128x128xbf16>
    %cst_34 = arith.constant dense<0.000000e+00> : vector<16x128xf32>
    %37 = tpu.matmul %34, %36, %cst_34 {dimension_numbers = #tpu.dot_dimension_numbers<[1], [0], [0], [1], [0, 0, 1, 1], [], []>} : vector<16x128xbf16>, vector<128x128xbf16>, vector<16x128xf32> -> vector<16x128xf32>
    %38 = arith.addf %32, %37 : vector<16x128xf32>
    %39 = vector.extract_strided_slice %26 {offsets = [1, 0, 0], sizes = [4, 4, 128], strides = [1, 1, 1]} : vector<5x5x128xbf16> to vector<4x4x128xbf16>
    %40 = vector.shape_cast %39 : vector<4x4x128xbf16> to vector<16x128xbf16>
    %c2_35 = arith.constant 2 : index
    %c1_36 = arith.constant 1 : index
    %c0_37 = arith.constant 0 : index
    %c0_38 = arith.constant 0 : index
    %41 = vector.load %arg3[%c2_35, %c1_36, %c0_37, %c0_38] : memref<4x4x128x128xbf16, #tpu.memory_space<vmem>>, vector<1x1x128x128xbf16>
    %42 = vector.shape_cast %41 : vector<1x1x128x128xbf16> to vector<128x128xbf16>
    %cst_39 = arith.constant dense<0.000000e+00> : vector<16x128xf32>
    %43 = tpu.matmul %40, %42, %cst_39 {dimension_numbers = #tpu.dot_dimension_numbers<[1], [0], [0], [1], [0, 0, 1, 1], [], []>} : vector<16x128xbf16>, vector<128x128xbf16>, vector<16x128xf32> -> vector<16x128xf32>
    %44 = arith.addf %38, %43 : vector<16x128xf32>
    %45 = vector.extract_strided_slice %26 {offsets = [1, 1, 0], sizes = [4, 4, 128], strides = [1, 1, 1]} : vector<5x5x128xbf16> to vector<4x4x128xbf16>
    %46 = vector.shape_cast %45 : vector<4x4x128xbf16> to vector<16x128xbf16>
    %c2_40 = arith.constant 2 : index
    %c3_41 = arith.constant 3 : index
    %c0_42 = arith.constant 0 : index
    %c0_43 = arith.constant 0 : index
    %47 = vector.load %arg3[%c2_40, %c3_41, %c0_42, %c0_43] : memref<4x4x128x128xbf16, #tpu.memory_space<vmem>>, vector<1x1x128x128xbf16>
    %48 = vector.shape_cast %47 : vector<1x1x128x128xbf16> to vector<128x128xbf16>
    %cst_44 = arith.constant dense<0.000000e+00> : vector<16x128xf32>
    %49 = tpu.matmul %46, %48, %cst_44 {dimension_numbers = #tpu.dot_dimension_numbers<[1], [0], [0], [1], [0, 0, 1, 1], [], []>} : vector<16x128xbf16>, vector<128x128xbf16>, vector<16x128xf32> -> vector<16x128xf32>
    %50 = arith.addf %44, %49 : vector<16x128xf32>
    %c0_45 = arith.constant 0 : index
    %c2_46 = arith.constant 2 : index
    %c0_47 = arith.constant 0 : index
    %c0_48 = arith.constant 0 : index
    %c0_49 = arith.constant 0 : index
    %51 = vector.load %arg2[%c0_45, %c2_46, %c0_47, %c0_48, %c0_49] : memref<1x4x5x5x128xbf16, #tpu.memory_space<vmem>>, vector<1x1x5x5x128xbf16>
    %52 = vector.shape_cast %51 : vector<1x1x5x5x128xbf16> to vector<5x5x128xbf16>
    %53 = vector.extract_strided_slice %52 {offsets = [0, 0, 0], sizes = [4, 4, 128], strides = [1, 1, 1]} : vector<5x5x128xbf16> to vector<4x4x128xbf16>
    %54 = vector.shape_cast %53 : vector<4x4x128xbf16> to vector<16x128xbf16>
    %c1_50 = arith.constant 1 : index
    %c0_51 = arith.constant 0 : index
    %c0_52 = arith.constant 0 : index
    %c0_53 = arith.constant 0 : index
    %55 = vector.load %arg3[%c1_50, %c0_51, %c0_52, %c0_53] : memref<4x4x128x128xbf16, #tpu.memory_space<vmem>>, vector<1x1x128x128xbf16>
    %56 = vector.shape_cast %55 : vector<1x1x128x128xbf16> to vector<128x128xbf16>
    %cst_54 = arith.constant dense<0.000000e+00> : vector<16x128xf32>
    %57 = tpu.matmul %54, %56, %cst_54 {dimension_numbers = #tpu.dot_dimension_numbers<[1], [0], [0], [1], [0, 0, 1, 1], [], []>} : vector<16x128xbf16>, vector<128x128xbf16>, vector<16x128xf32> -> vector<16x128xf32>
    %58 = arith.addf %50, %57 : vector<16x128xf32>
    %59 = vector.extract_strided_slice %52 {offsets = [0, 1, 0], sizes = [4, 4, 128], strides = [1, 1, 1]} : vector<5x5x128xbf16> to vector<4x4x128xbf16>
    %60 = vector.shape_cast %59 : vector<4x4x128xbf16> to vector<16x128xbf16>
    %c1_55 = arith.constant 1 : index
    %c2_56 = arith.constant 2 : index
    %c0_57 = arith.constant 0 : index
    %c0_58 = arith.constant 0 : index
    %61 = vector.load %arg3[%c1_55, %c2_56, %c0_57, %c0_58] : memref<4x4x128x128xbf16, #tpu.memory_space<vmem>>, vector<1x1x128x128xbf16>
    %62 = vector.shape_cast %61 : vector<1x1x128x128xbf16> to vector<128x128xbf16>
    %cst_59 = arith.constant dense<0.000000e+00> : vector<16x128xf32>
    %63 = tpu.matmul %60, %62, %cst_59 {dimension_numbers = #tpu.dot_dimension_numbers<[1], [0], [0], [1], [0, 0, 1, 1], [], []>} : vector<16x128xbf16>, vector<128x128xbf16>, vector<16x128xf32> -> vector<16x128xf32>
    %64 = arith.addf %58, %63 : vector<16x128xf32>
    %65 = vector.extract_strided_slice %52 {offsets = [1, 0, 0], sizes = [4, 4, 128], strides = [1, 1, 1]} : vector<5x5x128xbf16> to vector<4x4x128xbf16>
    %66 = vector.shape_cast %65 : vector<4x4x128xbf16> to vector<16x128xbf16>
    %c3_60 = arith.constant 3 : index
    %c0_61 = arith.constant 0 : index
    %c0_62 = arith.constant 0 : index
    %c0_63 = arith.constant 0 : index
    %67 = vector.load %arg3[%c3_60, %c0_61, %c0_62, %c0_63] : memref<4x4x128x128xbf16, #tpu.memory_space<vmem>>, vector<1x1x128x128xbf16>
    %68 = vector.shape_cast %67 : vector<1x1x128x128xbf16> to vector<128x128xbf16>
    %cst_64 = arith.constant dense<0.000000e+00> : vector<16x128xf32>
    %69 = tpu.matmul %66, %68, %cst_64 {dimension_numbers = #tpu.dot_dimension_numbers<[1], [0], [0], [1], [0, 0, 1, 1], [], []>} : vector<16x128xbf16>, vector<128x128xbf16>, vector<16x128xf32> -> vector<16x128xf32>
    %70 = arith.addf %64, %69 : vector<16x128xf32>
    %71 = vector.extract_strided_slice %52 {offsets = [1, 1, 0], sizes = [4, 4, 128], strides = [1, 1, 1]} : vector<5x5x128xbf16> to vector<4x4x128xbf16>
    %72 = vector.shape_cast %71 : vector<4x4x128xbf16> to vector<16x128xbf16>
    %c3_65 = arith.constant 3 : index
    %c2_66 = arith.constant 2 : index
    %c0_67 = arith.constant 0 : index
    %c0_68 = arith.constant 0 : index
    %73 = vector.load %arg3[%c3_65, %c2_66, %c0_67, %c0_68] : memref<4x4x128x128xbf16, #tpu.memory_space<vmem>>, vector<1x1x128x128xbf16>
    %74 = vector.shape_cast %73 : vector<1x1x128x128xbf16> to vector<128x128xbf16>
    %cst_69 = arith.constant dense<0.000000e+00> : vector<16x128xf32>
    %75 = tpu.matmul %72, %74, %cst_69 {dimension_numbers = #tpu.dot_dimension_numbers<[1], [0], [0], [1], [0, 0, 1, 1], [], []>} : vector<16x128xbf16>, vector<128x128xbf16>, vector<16x128xf32> -> vector<16x128xf32>
    %76 = arith.addf %70, %75 : vector<16x128xf32>
    %c0_70 = arith.constant 0 : index
    %c3_71 = arith.constant 3 : index
    %c0_72 = arith.constant 0 : index
    %c0_73 = arith.constant 0 : index
    %c0_74 = arith.constant 0 : index
    %77 = vector.load %arg2[%c0_70, %c3_71, %c0_72, %c0_73, %c0_74] : memref<1x4x5x5x128xbf16, #tpu.memory_space<vmem>>, vector<1x1x5x5x128xbf16>
    %78 = vector.shape_cast %77 : vector<1x1x5x5x128xbf16> to vector<5x5x128xbf16>
    %79 = vector.extract_strided_slice %78 {offsets = [0, 0, 0], sizes = [4, 4, 128], strides = [1, 1, 1]} : vector<5x5x128xbf16> to vector<4x4x128xbf16>
    %80 = vector.shape_cast %79 : vector<4x4x128xbf16> to vector<16x128xbf16>
    %c1_75 = arith.constant 1 : index
    %c1_76 = arith.constant 1 : index
    %c0_77 = arith.constant 0 : index
    %c0_78 = arith.constant 0 : index
    %81 = vector.load %arg3[%c1_75, %c1_76, %c0_77, %c0_78] : memref<4x4x128x128xbf16, #tpu.memory_space<vmem>>, vector<1x1x128x128xbf16>
    %82 = vector.shape_cast %81 : vector<1x1x128x128xbf16> to vector<128x128xbf16>
    %cst_79 = arith.constant dense<0.000000e+00> : vector<16x128xf32>
    %83 = tpu.matmul %80, %82, %cst_79 {dimension_numbers = #tpu.dot_dimension_numbers<[1], [0], [0], [1], [0, 0, 1, 1], [], []>} : vector<16x128xbf16>, vector<128x128xbf16>, vector<16x128xf32> -> vector<16x128xf32>
    %84 = arith.addf %76, %83 : vector<16x128xf32>
    %85 = vector.extract_strided_slice %78 {offsets = [0, 1, 0], sizes = [4, 4, 128], strides = [1, 1, 1]} : vector<5x5x128xbf16> to vector<4x4x128xbf16>
    %86 = vector.shape_cast %85 : vector<4x4x128xbf16> to vector<16x128xbf16>
    %c1_80 = arith.constant 1 : index
    %c3_81 = arith.constant 3 : index
    %c0_82 = arith.constant 0 : index
    %c0_83 = arith.constant 0 : index
    %87 = vector.load %arg3[%c1_80, %c3_81, %c0_82, %c0_83] : memref<4x4x128x128xbf16, #tpu.memory_space<vmem>>, vector<1x1x128x128xbf16>
    %88 = vector.shape_cast %87 : vector<1x1x128x128xbf16> to vector<128x128xbf16>
    %cst_84 = arith.constant dense<0.000000e+00> : vector<16x128xf32>
    %89 = tpu.matmul %86, %88, %cst_84 {dimension_numbers = #tpu.dot_dimension_numbers<[1], [0], [0], [1], [0, 0, 1, 1], [], []>} : vector<16x128xbf16>, vector<128x128xbf16>, vector<16x128xf32> -> vector<16x128xf32>
    %90 = arith.addf %84, %89 : vector<16x128xf32>
    %91 = vector.extract_strided_slice %78 {offsets = [1, 0, 0], sizes = [4, 4, 128], strides = [1, 1, 1]} : vector<5x5x128xbf16> to vector<4x4x128xbf16>
    %92 = vector.shape_cast %91 : vector<4x4x128xbf16> to vector<16x128xbf16>
    %c3_85 = arith.constant 3 : index
    %c1_86 = arith.constant 1 : index
    %c0_87 = arith.constant 0 : index
    %c0_88 = arith.constant 0 : index
    %93 = vector.load %arg3[%c3_85, %c1_86, %c0_87, %c0_88] : memref<4x4x128x128xbf16, #tpu.memory_space<vmem>>, vector<1x1x128x128xbf16>
    %94 = vector.shape_cast %93 : vector<1x1x128x128xbf16> to vector<128x128xbf16>
    %cst_89 = arith.constant dense<0.000000e+00> : vector<16x128xf32>
    %95 = tpu.matmul %92, %94, %cst_89 {dimension_numbers = #tpu.dot_dimension_numbers<[1], [0], [0], [1], [0, 0, 1, 1], [], []>} : vector<16x128xbf16>, vector<128x128xbf16>, vector<16x128xf32> -> vector<16x128xf32>
    %96 = arith.addf %90, %95 : vector<16x128xf32>
    %97 = vector.extract_strided_slice %78 {offsets = [1, 1, 0], sizes = [4, 4, 128], strides = [1, 1, 1]} : vector<5x5x128xbf16> to vector<4x4x128xbf16>
    %98 = vector.shape_cast %97 : vector<4x4x128xbf16> to vector<16x128xbf16>
    %c3_90 = arith.constant 3 : index
    %c3_91 = arith.constant 3 : index
    %c0_92 = arith.constant 0 : index
    %c0_93 = arith.constant 0 : index
    %99 = vector.load %arg3[%c3_90, %c3_91, %c0_92, %c0_93] : memref<4x4x128x128xbf16, #tpu.memory_space<vmem>>, vector<1x1x128x128xbf16>
    %100 = vector.shape_cast %99 : vector<1x1x128x128xbf16> to vector<128x128xbf16>
    %cst_94 = arith.constant dense<0.000000e+00> : vector<16x128xf32>
    %101 = tpu.matmul %98, %100, %cst_94 {dimension_numbers = #tpu.dot_dimension_numbers<[1], [0], [0], [1], [0, 0, 1, 1], [], []>} : vector<16x128xbf16>, vector<128x128xbf16>, vector<16x128xf32> -> vector<16x128xf32>
    %102 = arith.addf %96, %101 : vector<16x128xf32>
    %c0_95 = arith.constant 0 : index
    %c0_96 = arith.constant 0 : index
    %103 = vector.load %arg4[%c0_95, %c0_96] : memref<1x128xf32, #tpu.memory_space<vmem>>, vector<1x128xf32>
    %104 = vector.broadcast %103 : vector<1x128xf32> to vector<16x128xf32>
    %105 = arith.addf %102, %104 : vector<16x128xf32>
    %cst_97 = arith.constant 0.00999999977 : f32
    %106 = vector.broadcast %cst_97 : f32 to vector<16x128xf32>
    %107 = arith.mulf %106, %105 : vector<16x128xf32>
    %108 = arith.maximumf %105, %107 : vector<16x128xf32>
    %109 = vector.shape_cast %108 : vector<16x128xf32> to vector<1x4x4x128xf32>
    %110 = arith.truncf %109 : vector<1x4x4x128xf32> to vector<1x4x4x128xbf16>
    %c0_98 = arith.constant 0 : index
    %c0_99 = arith.constant 0 : index
    %c0_100 = arith.constant 0 : index
    %c0_101 = arith.constant 0 : index
    %111 = vector.load %arg5[%c0_98, %c0_99, %c0_100, %c0_101] : memref<1x4x4x128xbf16, #tpu.memory_space<vmem>>, vector<1x4x4x128xbf16>
    tpu.vector_store %arg5[%c0_98, %c0_99, %c0_100, %c0_101], %110 {strides = array<i32>} : memref<1x4x4x128xbf16, #tpu.memory_space<vmem>>, vector<1x4x4x128xbf16>,
    return
  }
  func.func @transform_0(%arg0: i32, %arg1: i32) -> (i32, i32, i32, i32, i32) {
    %c0_i32 = arith.constant 0 : i32
    %c0_i32_0 = arith.constant 0 : i32
    %c0_i32_1 = arith.constant 0 : i32
    %c0_i32_2 = arith.constant 0 : i32
    %c0_i32_3 = arith.constant 0 : i32
    return %arg1, %c0_i32, %c0_i32_0, %c0_i32_1, %c0_i32_2 : i32, i32, i32, i32, i32
  }
  func.func @transform_1(%arg0: i32, %arg1: i32) -> (i32, i32, i32, i32) {
    %c0_i32 = arith.constant 0 : i32
    %c0_i32_0 = arith.constant 0 : i32
    %c0_i32_1 = arith.constant 0 : i32
    %c0_i32_2 = arith.constant 0 : i32
    return %c0_i32, %c0_i32_0, %c0_i32_1, %arg0 : i32, i32, i32, i32
  }
  func.func @transform_2(%arg0: i32, %arg1: i32) -> (i32, i32) {
    %c0_i32 = arith.constant 0 : i32
    %c0_i32_0 = arith.constant 0 : i32
    return %c0_i32, %arg0 : i32, i32
  }
  func.func @transform_3(%arg0: i32, %arg1: i32) -> (i32, i32, i32, i32) {
    %c0_i32 = arith.constant 0 : i32
    %c0_i32_0 = arith.constant 0 : i32
    %c0_i32_1 = arith.constant 0 : i32
    return %arg1, %c0_i32, %c0_i32_0, %arg0 : i32, i32, i32, i32
  }
}

module attributes {stable_mosaic.version = 11 : i64} {
  func.func @_fused_conv_kernel(%arg0: i32, %arg1: i32, %arg2: memref<1x4x3x3x128xbf16, #tpu.memory_space<vmem>>, %arg3: memref<4x4x128x128xbf16, #tpu.memory_space<vmem>>, %arg4: memref<1x128xf32, #tpu.memory_space<vmem>>, %arg5: memref<1x2x2x128xbf16, #tpu.memory_space<vmem>>) attributes {dimension_semantics = [#tpu.dimension_semantics<parallel>, #tpu.dimension_semantics<parallel>], iteration_bounds = array<i64: 1, 2>, scalar_prefetch = 0 : i64, scratch_operands = 0 : i64, tpu.core_type = #tpu.core_type<tc>, window_params = [{transform_indices = @transform_0, window_bounds = array<i64: 1, 4, 3, 3, 128>}, {transform_indices = @transform_1, window_bounds = array<i64: 4, 4, 128, 128>}, {transform_indices = @transform_2, window_bounds = array<i64: 1, 128>}, {transform_indices = @transform_3, window_bounds = array<i64: 1, 2, 2, 128>}]} {
    %c0 = arith.constant 0 : index
    %c0_0 = arith.constant 0 : index
    %c0_1 = arith.constant 0 : index
    %c0_2 = arith.constant 0 : index
    %c0_3 = arith.constant 0 : index
    %0 = vector.load %arg2[%c0, %c0_0, %c0_1, %c0_2, %c0_3] : memref<1x4x3x3x128xbf16, #tpu.memory_space<vmem>>, vector<1x1x3x3x128xbf16>
    %1 = vector.shape_cast %0 : vector<1x1x3x3x128xbf16> to vector<3x3x128xbf16>
    %2 = vector.extract_strided_slice %1 {offsets = [0, 0, 0], sizes = [2, 2, 128], strides = [1, 1, 1]} : vector<3x3x128xbf16> to vector<2x2x128xbf16>
    %3 = vector.shape_cast %2 : vector<2x2x128xbf16> to vector<4x128xbf16>
    %c0_4 = arith.constant 0 : index
    %c0_5 = arith.constant 0 : index
    %c0_6 = arith.constant 0 : index
    %c0_7 = arith.constant 0 : index
    %4 = vector.load %arg3[%c0_4, %c0_5, %c0_6, %c0_7] : memref<4x4x128x128xbf16, #tpu.memory_space<vmem>>, vector<1x1x128x128xbf16>
    %5 = vector.shape_cast %4 : vector<1x1x128x128xbf16> to vector<128x128xbf16>
    %cst = arith.constant dense<0.000000e+00> : vector<4x128xf32>
    %6 = tpu.matmul %3, %5, %cst {dimension_numbers = #tpu.dot_dimension_numbers<[1], [0], [0], [1], [0, 0, 1, 1], [], []>} : vector<4x128xbf16>, vector<128x128xbf16>, vector<4x128xf32> -> vector<4x128xf32>
    %7 = vector.extract_strided_slice %1 {offsets = [0, 1, 0], sizes = [2, 2, 128], strides = [1, 1, 1]} : vector<3x3x128xbf16> to vector<2x2x128xbf16>
    %8 = vector.shape_cast %7 : vector<2x2x128xbf16> to vector<4x128xbf16>
    %c0_8 = arith.constant 0 : index
    %c2 = arith.constant 2 : index
    %c0_9 = arith.constant 0 : index
    %c0_10 = arith.constant 0 : index
    %9 = vector.load %arg3[%c0_8, %c2, %c0_9, %c0_10] : memref<4x4x128x128xbf16, #tpu.memory_space<vmem>>, vector<1x1x128x128xbf16>
    %10 = vector.shape_cast %9 : vector<1x1x128x128xbf16> to vector<128x128xbf16>
    %cst_11 = arith.constant dense<0.000000e+00> : vector<4x128xf32>
    %11 = tpu.matmul %8, %10, %cst_11 {dimension_numbers = #tpu.dot_dimension_numbers<[1], [0], [0], [1], [0, 0, 1, 1], [], []>} : vector<4x128xbf16>, vector<128x128xbf16>, vector<4x128xf32> -> vector<4x128xf32>
    %12 = arith.addf %6, %11 : vector<4x128xf32>
    %13 = vector.extract_strided_slice %1 {offsets = [1, 0, 0], sizes = [2, 2, 128], strides = [1, 1, 1]} : vector<3x3x128xbf16> to vector<2x2x128xbf16>
    %14 = vector.shape_cast %13 : vector<2x2x128xbf16> to vector<4x128xbf16>
    %c2_12 = arith.constant 2 : index
    %c0_13 = arith.constant 0 : index
    %c0_14 = arith.constant 0 : index
    %c0_15 = arith.constant 0 : index
    %15 = vector.load %arg3[%c2_12, %c0_13, %c0_14, %c0_15] : memref<4x4x128x128xbf16, #tpu.memory_space<vmem>>, vector<1x1x128x128xbf16>
    %16 = vector.shape_cast %15 : vector<1x1x128x128xbf16> to vector<128x128xbf16>
    %cst_16 = arith.constant dense<0.000000e+00> : vector<4x128xf32>
    %17 = tpu.matmul %14, %16, %cst_16 {dimension_numbers = #tpu.dot_dimension_numbers<[1], [0], [0], [1], [0, 0, 1, 1], [], []>} : vector<4x128xbf16>, vector<128x128xbf16>, vector<4x128xf32> -> vector<4x128xf32>
    %18 = arith.addf %12, %17 : vector<4x128xf32>
    %19 = vector.extract_strided_slice %1 {offsets = [1, 1, 0], sizes = [2, 2, 128], strides = [1, 1, 1]} : vector<3x3x128xbf16> to vector<2x2x128xbf16>
    %20 = vector.shape_cast %19 : vector<2x2x128xbf16> to vector<4x128xbf16>
    %c2_17 = arith.constant 2 : index
    %c2_18 = arith.constant 2 : index
    %c0_19 = arith.constant 0 : index
    %c0_20 = arith.constant 0 : index
    %21 = vector.load %arg3[%c2_17, %c2_18, %c0_19, %c0_20] : memref<4x4x128x128xbf16, #tpu.memory_space<vmem>>, vector<1x1x128x128xbf16>
    %22 = vector.shape_cast %21 : vector<1x1x128x128xbf16> to vector<128x128xbf16>
    %cst_21 = arith.constant dense<0.000000e+00> : vector<4x128xf32>
    %23 = tpu.matmul %20, %22, %cst_21 {dimension_numbers = #tpu.dot_dimension_numbers<[1], [0], [0], [1], [0, 0, 1, 1], [], []>} : vector<4x128xbf16>, vector<128x128xbf16>, vector<4x128xf32> -> vector<4x128xf32>
    %24 = arith.addf %18, %23 : vector<4x128xf32>
    %c0_22 = arith.constant 0 : index
    %c1 = arith.constant 1 : index
    %c0_23 = arith.constant 0 : index
    %c0_24 = arith.constant 0 : index
    %c0_25 = arith.constant 0 : index
    %25 = vector.load %arg2[%c0_22, %c1, %c0_23, %c0_24, %c0_25] : memref<1x4x3x3x128xbf16, #tpu.memory_space<vmem>>, vector<1x1x3x3x128xbf16>
    %26 = vector.shape_cast %25 : vector<1x1x3x3x128xbf16> to vector<3x3x128xbf16>
    %27 = vector.extract_strided_slice %26 {offsets = [0, 0, 0], sizes = [2, 2, 128], strides = [1, 1, 1]} : vector<3x3x128xbf16> to vector<2x2x128xbf16>
    %28 = vector.shape_cast %27 : vector<2x2x128xbf16> to vector<4x128xbf16>
    %c0_26 = arith.constant 0 : index
    %c1_27 = arith.constant 1 : index
    %c0_28 = arith.constant 0 : index
    %c0_29 = arith.constant 0 : index
    %29 = vector.load %arg3[%c0_26, %c1_27, %c0_28, %c0_29] : memref<4x4x128x128xbf16, #tpu.memory_space<vmem>>, vector<1x1x128x128xbf16>
    %30 = vector.shape_cast %29 : vector<1x1x128x128xbf16> to vector<128x128xbf16>
    %cst_30 = arith.constant dense<0.000000e+00> : vector<4x128xf32>
    %31 = tpu.matmul %28, %30, %cst_30 {dimension_numbers = #tpu.dot_dimension_numbers<[1], [0], [0], [1], [0, 0, 1, 1], [], []>} : vector<4x128xbf16>, vector<128x128xbf16>, vector<4x128xf32> -> vector<4x128xf32>
    %32 = arith.addf %24, %31 : vector<4x128xf32>
    %33 = vector.extract_strided_slice %26 {offsets = [0, 1, 0], sizes = [2, 2, 128], strides = [1, 1, 1]} : vector<3x3x128xbf16> to vector<2x2x128xbf16>
    %34 = vector.shape_cast %33 : vector<2x2x128xbf16> to vector<4x128xbf16>
    %c0_31 = arith.constant 0 : index
    %c3 = arith.constant 3 : index
    %c0_32 = arith.constant 0 : index
    %c0_33 = arith.constant 0 : index
    %35 = vector.load %arg3[%c0_31, %c3, %c0_32, %c0_33] : memref<4x4x128x128xbf16, #tpu.memory_space<vmem>>, vector<1x1x128x128xbf16>
    %36 = vector.shape_cast %35 : vector<1x1x128x128xbf16> to vector<128x128xbf16>
    %cst_34 = arith.constant dense<0.000000e+00> : vector<4x128xf32>
    %37 = tpu.matmul %34, %36, %cst_34 {dimension_numbers = #tpu.dot_dimension_numbers<[1], [0], [0], [1], [0, 0, 1, 1], [], []>} : vector<4x128xbf16>, vector<128x128xbf16>, vector<4x128xf32> -> vector<4x128xf32>
    %38 = arith.addf %32, %37 : vector<4x128xf32>
    %39 = vector.extract_strided_slice %26 {offsets = [1, 0, 0], sizes = [2, 2, 128], strides = [1, 1, 1]} : vector<3x3x128xbf16> to vector<2x2x128xbf16>
    %40 = vector.shape_cast %39 : vector<2x2x128xbf16> to vector<4x128xbf16>
    %c2_35 = arith.constant 2 : index
    %c1_36 = arith.constant 1 : index
    %c0_37 = arith.constant 0 : index
    %c0_38 = arith.constant 0 : index
    %41 = vector.load %arg3[%c2_35, %c1_36, %c0_37, %c0_38] : memref<4x4x128x128xbf16, #tpu.memory_space<vmem>>, vector<1x1x128x128xbf16>
    %42 = vector.shape_cast %41 : vector<1x1x128x128xbf16> to vector<128x128xbf16>
    %cst_39 = arith.constant dense<0.000000e+00> : vector<4x128xf32>
    %43 = tpu.matmul %40, %42, %cst_39 {dimension_numbers = #tpu.dot_dimension_numbers<[1], [0], [0], [1], [0, 0, 1, 1], [], []>} : vector<4x128xbf16>, vector<128x128xbf16>, vector<4x128xf32> -> vector<4x128xf32>
    %44 = arith.addf %38, %43 : vector<4x128xf32>
    %45 = vector.extract_strided_slice %26 {offsets = [1, 1, 0], sizes = [2, 2, 128], strides = [1, 1, 1]} : vector<3x3x128xbf16> to vector<2x2x128xbf16>
    %46 = vector.shape_cast %45 : vector<2x2x128xbf16> to vector<4x128xbf16>
    %c2_40 = arith.constant 2 : index
    %c3_41 = arith.constant 3 : index
    %c0_42 = arith.constant 0 : index
    %c0_43 = arith.constant 0 : index
    %47 = vector.load %arg3[%c2_40, %c3_41, %c0_42, %c0_43] : memref<4x4x128x128xbf16, #tpu.memory_space<vmem>>, vector<1x1x128x128xbf16>
    %48 = vector.shape_cast %47 : vector<1x1x128x128xbf16> to vector<128x128xbf16>
    %cst_44 = arith.constant dense<0.000000e+00> : vector<4x128xf32>
    %49 = tpu.matmul %46, %48, %cst_44 {dimension_numbers = #tpu.dot_dimension_numbers<[1], [0], [0], [1], [0, 0, 1, 1], [], []>} : vector<4x128xbf16>, vector<128x128xbf16>, vector<4x128xf32> -> vector<4x128xf32>
    %50 = arith.addf %44, %49 : vector<4x128xf32>
    %c0_45 = arith.constant 0 : index
    %c2_46 = arith.constant 2 : index
    %c0_47 = arith.constant 0 : index
    %c0_48 = arith.constant 0 : index
    %c0_49 = arith.constant 0 : index
    %51 = vector.load %arg2[%c0_45, %c2_46, %c0_47, %c0_48, %c0_49] : memref<1x4x3x3x128xbf16, #tpu.memory_space<vmem>>, vector<1x1x3x3x128xbf16>
    %52 = vector.shape_cast %51 : vector<1x1x3x3x128xbf16> to vector<3x3x128xbf16>
    %53 = vector.extract_strided_slice %52 {offsets = [0, 0, 0], sizes = [2, 2, 128], strides = [1, 1, 1]} : vector<3x3x128xbf16> to vector<2x2x128xbf16>
    %54 = vector.shape_cast %53 : vector<2x2x128xbf16> to vector<4x128xbf16>
    %c1_50 = arith.constant 1 : index
    %c0_51 = arith.constant 0 : index
    %c0_52 = arith.constant 0 : index
    %c0_53 = arith.constant 0 : index
    %55 = vector.load %arg3[%c1_50, %c0_51, %c0_52, %c0_53] : memref<4x4x128x128xbf16, #tpu.memory_space<vmem>>, vector<1x1x128x128xbf16>
    %56 = vector.shape_cast %55 : vector<1x1x128x128xbf16> to vector<128x128xbf16>
    %cst_54 = arith.constant dense<0.000000e+00> : vector<4x128xf32>
    %57 = tpu.matmul %54, %56, %cst_54 {dimension_numbers = #tpu.dot_dimension_numbers<[1], [0], [0], [1], [0, 0, 1, 1], [], []>} : vector<4x128xbf16>, vector<128x128xbf16>, vector<4x128xf32> -> vector<4x128xf32>
    %58 = arith.addf %50, %57 : vector<4x128xf32>
    %59 = vector.extract_strided_slice %52 {offsets = [0, 1, 0], sizes = [2, 2, 128], strides = [1, 1, 1]} : vector<3x3x128xbf16> to vector<2x2x128xbf16>
    %60 = vector.shape_cast %59 : vector<2x2x128xbf16> to vector<4x128xbf16>
    %c1_55 = arith.constant 1 : index
    %c2_56 = arith.constant 2 : index
    %c0_57 = arith.constant 0 : index
    %c0_58 = arith.constant 0 : index
    %61 = vector.load %arg3[%c1_55, %c2_56, %c0_57, %c0_58] : memref<4x4x128x128xbf16, #tpu.memory_space<vmem>>, vector<1x1x128x128xbf16>
    %62 = vector.shape_cast %61 : vector<1x1x128x128xbf16> to vector<128x128xbf16>
    %cst_59 = arith.constant dense<0.000000e+00> : vector<4x128xf32>
    %63 = tpu.matmul %60, %62, %cst_59 {dimension_numbers = #tpu.dot_dimension_numbers<[1], [0], [0], [1], [0, 0, 1, 1], [], []>} : vector<4x128xbf16>, vector<128x128xbf16>, vector<4x128xf32> -> vector<4x128xf32>
    %64 = arith.addf %58, %63 : vector<4x128xf32>
    %65 = vector.extract_strided_slice %52 {offsets = [1, 0, 0], sizes = [2, 2, 128], strides = [1, 1, 1]} : vector<3x3x128xbf16> to vector<2x2x128xbf16>
    %66 = vector.shape_cast %65 : vector<2x2x128xbf16> to vector<4x128xbf16>
    %c3_60 = arith.constant 3 : index
    %c0_61 = arith.constant 0 : index
    %c0_62 = arith.constant 0 : index
    %c0_63 = arith.constant 0 : index
    %67 = vector.load %arg3[%c3_60, %c0_61, %c0_62, %c0_63] : memref<4x4x128x128xbf16, #tpu.memory_space<vmem>>, vector<1x1x128x128xbf16>
    %68 = vector.shape_cast %67 : vector<1x1x128x128xbf16> to vector<128x128xbf16>
    %cst_64 = arith.constant dense<0.000000e+00> : vector<4x128xf32>
    %69 = tpu.matmul %66, %68, %cst_64 {dimension_numbers = #tpu.dot_dimension_numbers<[1], [0], [0], [1], [0, 0, 1, 1], [], []>} : vector<4x128xbf16>, vector<128x128xbf16>, vector<4x128xf32> -> vector<4x128xf32>
    %70 = arith.addf %64, %69 : vector<4x128xf32>
    %71 = vector.extract_strided_slice %52 {offsets = [1, 1, 0], sizes = [2, 2, 128], strides = [1, 1, 1]} : vector<3x3x128xbf16> to vector<2x2x128xbf16>
    %72 = vector.shape_cast %71 : vector<2x2x128xbf16> to vector<4x128xbf16>
    %c3_65 = arith.constant 3 : index
    %c2_66 = arith.constant 2 : index
    %c0_67 = arith.constant 0 : index
    %c0_68 = arith.constant 0 : index
    %73 = vector.load %arg3[%c3_65, %c2_66, %c0_67, %c0_68] : memref<4x4x128x128xbf16, #tpu.memory_space<vmem>>, vector<1x1x128x128xbf16>
    %74 = vector.shape_cast %73 : vector<1x1x128x128xbf16> to vector<128x128xbf16>
    %cst_69 = arith.constant dense<0.000000e+00> : vector<4x128xf32>
    %75 = tpu.matmul %72, %74, %cst_69 {dimension_numbers = #tpu.dot_dimension_numbers<[1], [0], [0], [1], [0, 0, 1, 1], [], []>} : vector<4x128xbf16>, vector<128x128xbf16>, vector<4x128xf32> -> vector<4x128xf32>
    %76 = arith.addf %70, %75 : vector<4x128xf32>
    %c0_70 = arith.constant 0 : index
    %c3_71 = arith.constant 3 : index
    %c0_72 = arith.constant 0 : index
    %c0_73 = arith.constant 0 : index
    %c0_74 = arith.constant 0 : index
    %77 = vector.load %arg2[%c0_70, %c3_71, %c0_72, %c0_73, %c0_74] : memref<1x4x3x3x128xbf16, #tpu.memory_space<vmem>>, vector<1x1x3x3x128xbf16>
    %78 = vector.shape_cast %77 : vector<1x1x3x3x128xbf16> to vector<3x3x128xbf16>
    %79 = vector.extract_strided_slice %78 {offsets = [0, 0, 0], sizes = [2, 2, 128], strides = [1, 1, 1]} : vector<3x3x128xbf16> to vector<2x2x128xbf16>
    %80 = vector.shape_cast %79 : vector<2x2x128xbf16> to vector<4x128xbf16>
    %c1_75 = arith.constant 1 : index
    %c1_76 = arith.constant 1 : index
    %c0_77 = arith.constant 0 : index
    %c0_78 = arith.constant 0 : index
    %81 = vector.load %arg3[%c1_75, %c1_76, %c0_77, %c0_78] : memref<4x4x128x128xbf16, #tpu.memory_space<vmem>>, vector<1x1x128x128xbf16>
    %82 = vector.shape_cast %81 : vector<1x1x128x128xbf16> to vector<128x128xbf16>
    %cst_79 = arith.constant dense<0.000000e+00> : vector<4x128xf32>
    %83 = tpu.matmul %80, %82, %cst_79 {dimension_numbers = #tpu.dot_dimension_numbers<[1], [0], [0], [1], [0, 0, 1, 1], [], []>} : vector<4x128xbf16>, vector<128x128xbf16>, vector<4x128xf32> -> vector<4x128xf32>
    %84 = arith.addf %76, %83 : vector<4x128xf32>
    %85 = vector.extract_strided_slice %78 {offsets = [0, 1, 0], sizes = [2, 2, 128], strides = [1, 1, 1]} : vector<3x3x128xbf16> to vector<2x2x128xbf16>
    %86 = vector.shape_cast %85 : vector<2x2x128xbf16> to vector<4x128xbf16>
    %c1_80 = arith.constant 1 : index
    %c3_81 = arith.constant 3 : index
    %c0_82 = arith.constant 0 : index
    %c0_83 = arith.constant 0 : index
    %87 = vector.load %arg3[%c1_80, %c3_81, %c0_82, %c0_83] : memref<4x4x128x128xbf16, #tpu.memory_space<vmem>>, vector<1x1x128x128xbf16>
    %88 = vector.shape_cast %87 : vector<1x1x128x128xbf16> to vector<128x128xbf16>
    %cst_84 = arith.constant dense<0.000000e+00> : vector<4x128xf32>
    %89 = tpu.matmul %86, %88, %cst_84 {dimension_numbers = #tpu.dot_dimension_numbers<[1], [0], [0], [1], [0, 0, 1, 1], [], []>} : vector<4x128xbf16>, vector<128x128xbf16>, vector<4x128xf32> -> vector<4x128xf32>
    %90 = arith.addf %84, %89 : vector<4x128xf32>
    %91 = vector.extract_strided_slice %78 {offsets = [1, 0, 0], sizes = [2, 2, 128], strides = [1, 1, 1]} : vector<3x3x128xbf16> to vector<2x2x128xbf16>
    %92 = vector.shape_cast %91 : vector<2x2x128xbf16> to vector<4x128xbf16>
    %c3_85 = arith.constant 3 : index
    %c1_86 = arith.constant 1 : index
    %c0_87 = arith.constant 0 : index
    %c0_88 = arith.constant 0 : index
    %93 = vector.load %arg3[%c3_85, %c1_86, %c0_87, %c0_88] : memref<4x4x128x128xbf16, #tpu.memory_space<vmem>>, vector<1x1x128x128xbf16>
    %94 = vector.shape_cast %93 : vector<1x1x128x128xbf16> to vector<128x128xbf16>
    %cst_89 = arith.constant dense<0.000000e+00> : vector<4x128xf32>
    %95 = tpu.matmul %92, %94, %cst_89 {dimension_numbers = #tpu.dot_dimension_numbers<[1], [0], [0], [1], [0, 0, 1, 1], [], []>} : vector<4x128xbf16>, vector<128x128xbf16>, vector<4x128xf32> -> vector<4x128xf32>
    %96 = arith.addf %90, %95 : vector<4x128xf32>
    %97 = vector.extract_strided_slice %78 {offsets = [1, 1, 0], sizes = [2, 2, 128], strides = [1, 1, 1]} : vector<3x3x128xbf16> to vector<2x2x128xbf16>
    %98 = vector.shape_cast %97 : vector<2x2x128xbf16> to vector<4x128xbf16>
    %c3_90 = arith.constant 3 : index
    %c3_91 = arith.constant 3 : index
    %c0_92 = arith.constant 0 : index
    %c0_93 = arith.constant 0 : index
    %99 = vector.load %arg3[%c3_90, %c3_91, %c0_92, %c0_93] : memref<4x4x128x128xbf16, #tpu.memory_space<vmem>>, vector<1x1x128x128xbf16>
    %100 = vector.shape_cast %99 : vector<1x1x128x128xbf16> to vector<128x128xbf16>
    %cst_94 = arith.constant dense<0.000000e+00> : vector<4x128xf32>
    %101 = tpu.matmul %98, %100, %cst_94 {dimension_numbers = #tpu.dot_dimension_numbers<[1], [0], [0], [1], [0, 0, 1, 1], [], []>} : vector<4x128xbf16>, vector<128x128xbf16>, vector<4x128xf32> -> vector<4x128xf32>
    %102 = arith.addf %96, %101 : vector<4x128xf32>
    %c0_95 = arith.constant 0 : index
    %c0_96 = arith.constant 0 : index
    %103 = vector.load %arg4[%c0_95, %c0_96] : memref<1x128xf32, #tpu.memory_space<vmem>>, vector<1x128xf32>
    %104 = vector.broadcast %103 : vector<1x128xf32> to vector<4x128xf32>
    %105 = arith.addf %102, %104 : vector<4x128xf32>
    %cst_97 = arith.constant 0.00999999977 : f32
    %106 = vector.broadcast %cst_97 : f32 to vector<4x128xf32>
    %107 = arith.mulf %106, %105 : vector<4x128xf32>
    %108 = arith.maximumf %105, %107 : vector<4x128xf32>
    %109 = vector.shape_cast %108 : vector<4x128xf32> to vector<1x2x2x128xf32>
    %110 = arith.truncf %109 : vector<1x2x2x128xf32> to vector<1x2x2x128xbf16>
    %c0_98 = arith.constant 0 : index
    %c0_99 = arith.constant 0 : index
    %c0_100 = arith.constant 0 : index
    %c0_101 = arith.constant 0 : index
    %111 = vector.load %arg5[%c0_98, %c0_99, %c0_100, %c0_101] : memref<1x2x2x128xbf16, #tpu.memory_space<vmem>>, vector<1x2x2x128xbf16>
    tpu.vector_store %arg5[%c0_98, %c0_99, %c0_100, %c0_101], %110 {strides = array<i32>} : memref<1x2x2x128xbf16, #tpu.memory_space<vmem>>, vector<1x2x2x128xbf16>,
    return
  }
  func.func @transform_0(%arg0: i32, %arg1: i32) -> (i32, i32, i32, i32, i32) {
    %c0_i32 = arith.constant 0 : i32
    %c0_i32_0 = arith.constant 0 : i32
    %c0_i32_1 = arith.constant 0 : i32
    %c0_i32_2 = arith.constant 0 : i32
    %c0_i32_3 = arith.constant 0 : i32
    return %arg1, %c0_i32, %c0_i32_0, %c0_i32_1, %c0_i32_2 : i32, i32, i32, i32, i32
  }
  func.func @transform_1(%arg0: i32, %arg1: i32) -> (i32, i32, i32, i32) {
    %c0_i32 = arith.constant 0 : i32
    %c0_i32_0 = arith.constant 0 : i32
    %c0_i32_1 = arith.constant 0 : i32
    %c0_i32_2 = arith.constant 0 : i32
    return %c0_i32, %c0_i32_0, %c0_i32_1, %arg0 : i32, i32, i32, i32
  }
  func.func @transform_2(%arg0: i32, %arg1: i32) -> (i32, i32) {
    %c0_i32 = arith.constant 0 : i32
    %c0_i32_0 = arith.constant 0 : i32
    return %c0_i32, %arg0 : i32, i32
  }
  func.func @transform_3(%arg0: i32, %arg1: i32) -> (i32, i32, i32, i32) {
    %c0_i32 = arith.constant 0 : i32
    %c0_i32_0 = arith.constant 0 : i32
    %c0_i32_1 = arith.constant 0 : i32
    return %arg1, %c0_i32, %c0_i32_0, %arg0 : i32, i32, i32, i32
  }
}

module attributes {stable_mosaic.version = 11 : i64} {
  func.func @_fused_conv_kernel(%arg0: i32, %arg1: i32, %arg2: memref<1x1x4x4x128xbf16, #tpu.memory_space<vmem>>, %arg3: memref<3x3x128x128xbf16, #tpu.memory_space<vmem>>, %arg4: memref<1x128xf32, #tpu.memory_space<vmem>>, %arg5: memref<1x2x2x128xbf16, #tpu.memory_space<vmem>>) attributes {dimension_semantics = [#tpu.dimension_semantics<parallel>, #tpu.dimension_semantics<parallel>], iteration_bounds = array<i64: 1, 2>, scalar_prefetch = 0 : i64, scratch_operands = 0 : i64, tpu.core_type = #tpu.core_type<tc>, window_params = [{transform_indices = @transform_0, window_bounds = array<i64: 1, 1, 4, 4, 128>}, {transform_indices = @transform_1, window_bounds = array<i64: 3, 3, 128, 128>}, {transform_indices = @transform_2, window_bounds = array<i64: 1, 128>}, {transform_indices = @transform_3, window_bounds = array<i64: 1, 2, 2, 128>}]} {
    %c0 = arith.constant 0 : index
    %c0_0 = arith.constant 0 : index
    %c0_1 = arith.constant 0 : index
    %c0_2 = arith.constant 0 : index
    %c0_3 = arith.constant 0 : index
    %0 = vector.load %arg2[%c0, %c0_0, %c0_1, %c0_2, %c0_3] : memref<1x1x4x4x128xbf16, #tpu.memory_space<vmem>>, vector<1x1x4x4x128xbf16>
    %1 = vector.shape_cast %0 : vector<1x1x4x4x128xbf16> to vector<4x4x128xbf16>
    %2 = vector.extract_strided_slice %1 {offsets = [0, 0, 0], sizes = [2, 2, 128], strides = [1, 1, 1]} : vector<4x4x128xbf16> to vector<2x2x128xbf16>
    %3 = vector.shape_cast %2 : vector<2x2x128xbf16> to vector<4x128xbf16>
    %c0_4 = arith.constant 0 : index
    %c0_5 = arith.constant 0 : index
    %c0_6 = arith.constant 0 : index
    %c0_7 = arith.constant 0 : index
    %4 = vector.load %arg3[%c0_4, %c0_5, %c0_6, %c0_7] : memref<3x3x128x128xbf16, #tpu.memory_space<vmem>>, vector<1x1x128x128xbf16>
    %5 = vector.shape_cast %4 : vector<1x1x128x128xbf16> to vector<128x128xbf16>
    %cst = arith.constant dense<0.000000e+00> : vector<4x128xf32>
    %6 = tpu.matmul %3, %5, %cst {dimension_numbers = #tpu.dot_dimension_numbers<[1], [0], [0], [1], [0, 0, 1, 1], [], []>} : vector<4x128xbf16>, vector<128x128xbf16>, vector<4x128xf32> -> vector<4x128xf32>
    %7 = vector.extract_strided_slice %1 {offsets = [0, 1, 0], sizes = [2, 2, 128], strides = [1, 1, 1]} : vector<4x4x128xbf16> to vector<2x2x128xbf16>
    %8 = vector.shape_cast %7 : vector<2x2x128xbf16> to vector<4x128xbf16>
    %c0_8 = arith.constant 0 : index
    %c1 = arith.constant 1 : index
    %c0_9 = arith.constant 0 : index
    %c0_10 = arith.constant 0 : index
    %9 = vector.load %arg3[%c0_8, %c1, %c0_9, %c0_10] : memref<3x3x128x128xbf16, #tpu.memory_space<vmem>>, vector<1x1x128x128xbf16>
    %10 = vector.shape_cast %9 : vector<1x1x128x128xbf16> to vector<128x128xbf16>
    %cst_11 = arith.constant dense<0.000000e+00> : vector<4x128xf32>
    %11 = tpu.matmul %8, %10, %cst_11 {dimension_numbers = #tpu.dot_dimension_numbers<[1], [0], [0], [1], [0, 0, 1, 1], [], []>} : vector<4x128xbf16>, vector<128x128xbf16>, vector<4x128xf32> -> vector<4x128xf32>
    %12 = arith.addf %6, %11 : vector<4x128xf32>
    %13 = vector.extract_strided_slice %1 {offsets = [0, 2, 0], sizes = [2, 2, 128], strides = [1, 1, 1]} : vector<4x4x128xbf16> to vector<2x2x128xbf16>
    %14 = vector.shape_cast %13 : vector<2x2x128xbf16> to vector<4x128xbf16>
    %c0_12 = arith.constant 0 : index
    %c2 = arith.constant 2 : index
    %c0_13 = arith.constant 0 : index
    %c0_14 = arith.constant 0 : index
    %15 = vector.load %arg3[%c0_12, %c2, %c0_13, %c0_14] : memref<3x3x128x128xbf16, #tpu.memory_space<vmem>>, vector<1x1x128x128xbf16>
    %16 = vector.shape_cast %15 : vector<1x1x128x128xbf16> to vector<128x128xbf16>
    %cst_15 = arith.constant dense<0.000000e+00> : vector<4x128xf32>
    %17 = tpu.matmul %14, %16, %cst_15 {dimension_numbers = #tpu.dot_dimension_numbers<[1], [0], [0], [1], [0, 0, 1, 1], [], []>} : vector<4x128xbf16>, vector<128x128xbf16>, vector<4x128xf32> -> vector<4x128xf32>
    %18 = arith.addf %12, %17 : vector<4x128xf32>
    %19 = vector.extract_strided_slice %1 {offsets = [1, 0, 0], sizes = [2, 2, 128], strides = [1, 1, 1]} : vector<4x4x128xbf16> to vector<2x2x128xbf16>
    %20 = vector.shape_cast %19 : vector<2x2x128xbf16> to vector<4x128xbf16>
    %c1_16 = arith.constant 1 : index
    %c0_17 = arith.constant 0 : index
    %c0_18 = arith.constant 0 : index
    %c0_19 = arith.constant 0 : index
    %21 = vector.load %arg3[%c1_16, %c0_17, %c0_18, %c0_19] : memref<3x3x128x128xbf16, #tpu.memory_space<vmem>>, vector<1x1x128x128xbf16>
    %22 = vector.shape_cast %21 : vector<1x1x128x128xbf16> to vector<128x128xbf16>
    %cst_20 = arith.constant dense<0.000000e+00> : vector<4x128xf32>
    %23 = tpu.matmul %20, %22, %cst_20 {dimension_numbers = #tpu.dot_dimension_numbers<[1], [0], [0], [1], [0, 0, 1, 1], [], []>} : vector<4x128xbf16>, vector<128x128xbf16>, vector<4x128xf32> -> vector<4x128xf32>
    %24 = arith.addf %18, %23 : vector<4x128xf32>
    %25 = vector.extract_strided_slice %1 {offsets = [1, 1, 0], sizes = [2, 2, 128], strides = [1, 1, 1]} : vector<4x4x128xbf16> to vector<2x2x128xbf16>
    %26 = vector.shape_cast %25 : vector<2x2x128xbf16> to vector<4x128xbf16>
    %c1_21 = arith.constant 1 : index
    %c1_22 = arith.constant 1 : index
    %c0_23 = arith.constant 0 : index
    %c0_24 = arith.constant 0 : index
    %27 = vector.load %arg3[%c1_21, %c1_22, %c0_23, %c0_24] : memref<3x3x128x128xbf16, #tpu.memory_space<vmem>>, vector<1x1x128x128xbf16>
    %28 = vector.shape_cast %27 : vector<1x1x128x128xbf16> to vector<128x128xbf16>
    %cst_25 = arith.constant dense<0.000000e+00> : vector<4x128xf32>
    %29 = tpu.matmul %26, %28, %cst_25 {dimension_numbers = #tpu.dot_dimension_numbers<[1], [0], [0], [1], [0, 0, 1, 1], [], []>} : vector<4x128xbf16>, vector<128x128xbf16>, vector<4x128xf32> -> vector<4x128xf32>
    %30 = arith.addf %24, %29 : vector<4x128xf32>
    %31 = vector.extract_strided_slice %1 {offsets = [1, 2, 0], sizes = [2, 2, 128], strides = [1, 1, 1]} : vector<4x4x128xbf16> to vector<2x2x128xbf16>
    %32 = vector.shape_cast %31 : vector<2x2x128xbf16> to vector<4x128xbf16>
    %c1_26 = arith.constant 1 : index
    %c2_27 = arith.constant 2 : index
    %c0_28 = arith.constant 0 : index
    %c0_29 = arith.constant 0 : index
    %33 = vector.load %arg3[%c1_26, %c2_27, %c0_28, %c0_29] : memref<3x3x128x128xbf16, #tpu.memory_space<vmem>>, vector<1x1x128x128xbf16>
    %34 = vector.shape_cast %33 : vector<1x1x128x128xbf16> to vector<128x128xbf16>
    %cst_30 = arith.constant dense<0.000000e+00> : vector<4x128xf32>
    %35 = tpu.matmul %32, %34, %cst_30 {dimension_numbers = #tpu.dot_dimension_numbers<[1], [0], [0], [1], [0, 0, 1, 1], [], []>} : vector<4x128xbf16>, vector<128x128xbf16>, vector<4x128xf32> -> vector<4x128xf32>
    %36 = arith.addf %30, %35 : vector<4x128xf32>
    %37 = vector.extract_strided_slice %1 {offsets = [2, 0, 0], sizes = [2, 2, 128], strides = [1, 1, 1]} : vector<4x4x128xbf16> to vector<2x2x128xbf16>
    %38 = vector.shape_cast %37 : vector<2x2x128xbf16> to vector<4x128xbf16>
    %c2_31 = arith.constant 2 : index
    %c0_32 = arith.constant 0 : index
    %c0_33 = arith.constant 0 : index
    %c0_34 = arith.constant 0 : index
    %39 = vector.load %arg3[%c2_31, %c0_32, %c0_33, %c0_34] : memref<3x3x128x128xbf16, #tpu.memory_space<vmem>>, vector<1x1x128x128xbf16>
    %40 = vector.shape_cast %39 : vector<1x1x128x128xbf16> to vector<128x128xbf16>
    %cst_35 = arith.constant dense<0.000000e+00> : vector<4x128xf32>
    %41 = tpu.matmul %38, %40, %cst_35 {dimension_numbers = #tpu.dot_dimension_numbers<[1], [0], [0], [1], [0, 0, 1, 1], [], []>} : vector<4x128xbf16>, vector<128x128xbf16>, vector<4x128xf32> -> vector<4x128xf32>
    %42 = arith.addf %36, %41 : vector<4x128xf32>
    %43 = vector.extract_strided_slice %1 {offsets = [2, 1, 0], sizes = [2, 2, 128], strides = [1, 1, 1]} : vector<4x4x128xbf16> to vector<2x2x128xbf16>
    %44 = vector.shape_cast %43 : vector<2x2x128xbf16> to vector<4x128xbf16>
    %c2_36 = arith.constant 2 : index
    %c1_37 = arith.constant 1 : index
    %c0_38 = arith.constant 0 : index
    %c0_39 = arith.constant 0 : index
    %45 = vector.load %arg3[%c2_36, %c1_37, %c0_38, %c0_39] : memref<3x3x128x128xbf16, #tpu.memory_space<vmem>>, vector<1x1x128x128xbf16>
    %46 = vector.shape_cast %45 : vector<1x1x128x128xbf16> to vector<128x128xbf16>
    %cst_40 = arith.constant dense<0.000000e+00> : vector<4x128xf32>
    %47 = tpu.matmul %44, %46, %cst_40 {dimension_numbers = #tpu.dot_dimension_numbers<[1], [0], [0], [1], [0, 0, 1, 1], [], []>} : vector<4x128xbf16>, vector<128x128xbf16>, vector<4x128xf32> -> vector<4x128xf32>
    %48 = arith.addf %42, %47 : vector<4x128xf32>
    %49 = vector.extract_strided_slice %1 {offsets = [2, 2, 0], sizes = [2, 2, 128], strides = [1, 1, 1]} : vector<4x4x128xbf16> to vector<2x2x128xbf16>
    %50 = vector.shape_cast %49 : vector<2x2x128xbf16> to vector<4x128xbf16>
    %c2_41 = arith.constant 2 : index
    %c2_42 = arith.constant 2 : index
    %c0_43 = arith.constant 0 : index
    %c0_44 = arith.constant 0 : index
    %51 = vector.load %arg3[%c2_41, %c2_42, %c0_43, %c0_44] : memref<3x3x128x128xbf16, #tpu.memory_space<vmem>>, vector<1x1x128x128xbf16>
    %52 = vector.shape_cast %51 : vector<1x1x128x128xbf16> to vector<128x128xbf16>
    %cst_45 = arith.constant dense<0.000000e+00> : vector<4x128xf32>
    %53 = tpu.matmul %50, %52, %cst_45 {dimension_numbers = #tpu.dot_dimension_numbers<[1], [0], [0], [1], [0, 0, 1, 1], [], []>} : vector<4x128xbf16>, vector<128x128xbf16>, vector<4x128xf32> -> vector<4x128xf32>
    %54 = arith.addf %48, %53 : vector<4x128xf32>
    %c0_46 = arith.constant 0 : index
    %c0_47 = arith.constant 0 : index
    %55 = vector.load %arg4[%c0_46, %c0_47] : memref<1x128xf32, #tpu.memory_space<vmem>>, vector<1x128xf32>
    %56 = vector.broadcast %55 : vector<1x128xf32> to vector<4x128xf32>
    %57 = arith.addf %54, %56 : vector<4x128xf32>
    %58 = vector.shape_cast %57 : vector<4x128xf32> to vector<1x2x2x128xf32>
    %59 = arith.truncf %58 : vector<1x2x2x128xf32> to vector<1x2x2x128xbf16>
    %c0_48 = arith.constant 0 : index
    %c0_49 = arith.constant 0 : index
    %c0_50 = arith.constant 0 : index
    %c0_51 = arith.constant 0 : index
    %60 = vector.load %arg5[%c0_48, %c0_49, %c0_50, %c0_51] : memref<1x2x2x128xbf16, #tpu.memory_space<vmem>>, vector<1x2x2x128xbf16>
    tpu.vector_store %arg5[%c0_48, %c0_49, %c0_50, %c0_51], %59 {strides = array<i32>} : memref<1x2x2x128xbf16, #tpu.memory_space<vmem>>, vector<1x2x2x128xbf16>,
    return
  }
  func.func @transform_0(%arg0: i32, %arg1: i32) -> (i32, i32, i32, i32, i32) {
    %c0_i32 = arith.constant 0 : i32
    %c0_i32_0 = arith.constant 0 : i32
    %c0_i32_1 = arith.constant 0 : i32
    %c0_i32_2 = arith.constant 0 : i32
    %c0_i32_3 = arith.constant 0 : i32
    return %arg1, %c0_i32, %c0_i32_0, %c0_i32_1, %c0_i32_2 : i32, i32, i32, i32, i32
  }
  func.func @transform_1(%arg0: i32, %arg1: i32) -> (i32, i32, i32, i32) {
    %c0_i32 = arith.constant 0 : i32
    %c0_i32_0 = arith.constant 0 : i32
    %c0_i32_1 = arith.constant 0 : i32
    %c0_i32_2 = arith.constant 0 : i32
    return %c0_i32, %c0_i32_0, %c0_i32_1, %arg0 : i32, i32, i32, i32
  }
  func.func @transform_2(%arg0: i32, %arg1: i32) -> (i32, i32) {
    %c0_i32 = arith.constant 0 : i32
    %c0_i32_0 = arith.constant 0 : i32
    return %c0_i32, %arg0 : i32, i32
  }
  func.func @transform_3(%arg0: i32, %arg1: i32) -> (i32, i32, i32, i32) {
    %c0_i32 = arith.constant 0 : i32
    %c0_i32_0 = arith.constant 0 : i32
    %c0_i32_1 = arith.constant 0 : i32
    return %arg1, %c0_i32, %c0_i32_0, %arg0 : i32, i32, i32, i32
  }
}

module attributes {stable_mosaic.version = 11 : i64} {
  func.func @_matmul_kernel_1k(%arg0: i32, %arg1: i32, %arg2: memref<16x512xbf16, #tpu.memory_space<vmem>>, %arg3: memref<512x128xbf16, #tpu.memory_space<vmem>>, %arg4: memref<1x128xf32, #tpu.memory_space<vmem>>, %arg5: memref<16x128xf32, #tpu.memory_space<vmem>>) attributes {dimension_semantics = [#tpu.dimension_semantics<parallel>, #tpu.dimension_semantics<parallel>], iteration_bounds = array<i64: 1, 1>, scalar_prefetch = 0 : i64, scratch_operands = 0 : i64, tpu.core_type = #tpu.core_type<tc>, window_params = [{transform_indices = @transform_0, window_bounds = array<i64: 16, 512>}, {transform_indices = @transform_1, window_bounds = array<i64: 512, 128>}, {transform_indices = @transform_2, window_bounds = array<i64: 1, 128>}, {transform_indices = @transform_3, window_bounds = array<i64: 16, 128>}]} {
    %c0 = arith.constant 0 : index
    %c0_0 = arith.constant 0 : index
    %0 = vector.load %arg2[%c0, %c0_0] : memref<16x512xbf16, #tpu.memory_space<vmem>>, vector<16x512xbf16>
    %c0_1 = arith.constant 0 : index
    %c0_2 = arith.constant 0 : index
    %1 = vector.load %arg3[%c0_1, %c0_2] : memref<512x128xbf16, #tpu.memory_space<vmem>>, vector<512x128xbf16>
    %cst = arith.constant dense<0.000000e+00> : vector<16x128xf32>
    %2 = tpu.matmul %0, %1, %cst {dimension_numbers = #tpu.dot_dimension_numbers<[1], [0], [0], [1], [0, 0, 1, 1], [], []>} : vector<16x512xbf16>, vector<512x128xbf16>, vector<16x128xf32> -> vector<16x128xf32>
    %c0_3 = arith.constant 0 : index
    %c0_4 = arith.constant 0 : index
    %3 = vector.load %arg4[%c0_3, %c0_4] : memref<1x128xf32, #tpu.memory_space<vmem>>, vector<1x128xf32>
    %4 = vector.broadcast %3 : vector<1x128xf32> to vector<16x128xf32>
    %5 = arith.addf %2, %4 : vector<16x128xf32>
    %c0_5 = arith.constant 0 : index
    %c0_6 = arith.constant 0 : index
    %6 = vector.load %arg5[%c0_5, %c0_6] : memref<16x128xf32, #tpu.memory_space<vmem>>, vector<16x128xf32>
    tpu.vector_store %arg5[%c0_5, %c0_6], %5 {strides = array<i32>} : memref<16x128xf32, #tpu.memory_space<vmem>>, vector<16x128xf32>,
    return
  }
  func.func @transform_0(%arg0: i32, %arg1: i32) -> (i32, i32) {
    %c0_i32 = arith.constant 0 : i32
    %c0_i32_0 = arith.constant 0 : i32
    return %arg0, %c0_i32 : i32, i32
  }
  func.func @transform_1(%arg0: i32, %arg1: i32) -> (i32, i32) {
    %c0_i32 = arith.constant 0 : i32
    %c0_i32_0 = arith.constant 0 : i32
    return %c0_i32, %arg1 : i32, i32
  }
  func.func @transform_2(%arg0: i32, %arg1: i32) -> (i32, i32) {
    %c0_i32 = arith.constant 0 : i32
    %c0_i32_0 = arith.constant 0 : i32
    return %c0_i32, %arg1 : i32, i32
  }
  func.func @transform_3(%arg0: i32, %arg1: i32) -> (i32, i32) {
    %c0_i32 = arith.constant 0 : i32
    return %arg0, %arg1 : i32, i32
  }
}

</mosaic_0001>

<bundles_post_ra>
// kernel: _lambda_.5
= control target key start
LH: loop header
LB: loop body
LE: loop exit
PB: predicated region body
PF: predicated region fallthrough
CT: control target
= control target key end

     0   :  { %s2219_s12 = smov 0   ;;  %s2221_s13 = smov 0   ;;  %s2813_s0 = inlined_call_operand.vmem [shape: bf16[2,4,9,9,3], index: 0, kind: input, shape index: {}]   ;;  %s2814_s1 = inlined_call_operand.vmem [shape: bf16[4,4,3,128], index: 1, kind: input, shape index: {}]   ;;  %s2815_s2 = inlined_call_operand.vmem [shape: f32[1,128], index: 2, kind: input, shape index: {}]   ;;  %s2816_s3 = inlined_call_operand.vmem [shape: bf16[2,8,8,128], index: 3, kind: output, shape index: {}]  }
   0x1   :  { %s2223_s14 = smov 0  }
   0x2 LB: > { %s22_s15 = sadd.s32 1, %s2192_s13  ;;  %p1984_p0 = scmp.ge.s32.totalorder %s2196_s14, 1  ;;  %s2196_s14 = sphi %s2223_s14, %s13_s14   ;;  %s2192_s13 = sphi %s2221_s13, %s2820_s13   ;;  %s2188_s12 = sphi %s2219_s12, %s2819_s12  }
   0x3   : > { %p23_p1 = scmp.ge.s32.totalorder %s22_s15, 2  ;;  %p168_p2 = scmp.lt.s32.totalorder %s2196_s14, 3 }
   0x5   : > { %s2822_s15 = smov (%p23_p1, %s22_s15), 0  ;;  %p169_p3 = pnand %p1984_p0, %p168_p2 }
   0x6   : > { %p202_p4 = scmp.lt.s32.totalorder (!%p169_p3), %s2188_s12, 1 }
   0x7   : > { %172 = sbr.rel (%p169_p3) target bundleno = 423 (0x1a7), region = 32 }
   0xc   : > { %vm384_vm0 = vcmask 1040384   ;;  %vm385_vm1 = vcmask 1041408   ;;  %v1997_v0 = vld [vmem:[%s2814_s1 + $0x10] sm:$0x3]  ;;  %v2198_v1 = vmov 65535   ;;  %s2824_s12 = smov (!%p202_p4, %s2188_s12), 1 }
   0xd   : > { %v386_v2 = vsel %vm384_vm0, 4294967295, %v2198_v1  ;;  %v241_v3 = vld [vmem:[%s2814_s1] sm:$0x3]  ;;  %v1988_v4 = vld [vmem:[%s2814_s1 + $0x4] sm:$0x3]  ;;  %s2147_s5 = smul.u32 288, %s2824_s12 }
   0xe   : > { %v2246_v5 = vsel %vm385_vm1, %v386_v2, 0  ;;  %v2002_v6 = vld [vmem:[%s2814_s1 + $0x14] sm:$0x3]  ;;  %v2035_v7 = vld [vmem:[%s2814_s1 + $0x12] sm:$0x3]  ;;  %vm371_vm2 = vcmask 23552  }
   0xf   : > { %v505_v8 = vand.u32 %v1997_v0, %v2246_v5  ;;  %v453_v9 = vand.u32 %v2246_v5, %v241_v3  ;;  %v389_v10 = vand.u32 %v1988_v4, %v2246_v5  ;;  %v578_v11 = vand.u32 %v2002_v6, %v2246_v5  ;;  %v2025_v12 = vld [vmem:[%s2814_s1 + $0x2] sm:$0x3]  ;;  %v2040_v13 = vld [vmem:[%s2814_s1 + $0x16] sm:$0x3]  ;;  %v2030_v14 = vld [vmem:[%s2814_s1 + $0x6] sm:$0x3]  ;;  %s2277_s8 = scalar_lea.vmem %s2813_s0, %s2147_s5 }
  0x10   : > { %v909_v15 = vand.u32 %v2035_v7, %v2246_v5  ;;  %v671_v16 = vand.u32 %v2025_v12, %v2246_v5  ;;  %v982_v17 = vand.u32 %v2040_v13, %v2246_v5  ;;  %v849_v18 = vand.u32 %v2030_v14, %v2246_v5  ;;  %v225_v19 = vld [vmem:[%s2277_s8 + $0x8] sm:$0xf]  ;;  %v2281_v20 = vld [vmem:[%s2277_s8 + $0x10] sm:$0xf]  ;;  %v223_v21 = vld [vmem:[%s2277_s8] sm:$0xf] }
  0x11   : > { %514 = vmatpush.bf16.msra.mxu2 %v505_v8  ;;  %462 = vmatpush.bf16.msra.mxu1 %v453_v9  ;;  %vm242_vm3 = vsmask.f32 3328  ;;  %vm243_vm4 = vsmask.f32 7440  ;;  %v260_v22 = vshrl.u32 %v225_v19, 16  ;;  %v263_v23 = vshll.u32 %v225_v19, 16 }
  0x12   : > { %398 = vmatpush.bf16.msra.mxu0 %v389_v10  ;;  %587 = vmatpush.bf16.msra.mxu3 %v578_v11  ;;  %v274_v24 = vshrl.u32 %v2281_v20, 16  ;;  %v277_v25 = vshll.u32 %v2281_v20, 16  ;;  %v224_v26 = vld [vmem:[%s2277_s8 + $0x4] sm:$0x1]  ;;  %v429_v27 = vunpack.c.l.b16 %v225_v19  ;;  %v430_v28 = vunpack.c.l.b16 %v2281_v20  ;;  %v226_v31 = vld [vmem:[%s2277_s8 + $0xc] sm:$0x1]  ;;  %vm2296_vm5 = vmor %vm242_vm3, %vm243_vm4 }
  0x13   : > { %v246_v29 = vshrl.u32 %v223_v21, 16  ;;  %v249_v30 = vshll.u32 %v223_v21, 16  ;;  %v228_v32 = vld [vmem:[%s2277_s8 + $0x14] sm:$0x1]  ;;  %v262_v33 = vrot.slane %v260_v22, 4  ;;  %v265_v34 = vrot.slane %v263_v23, 5 }
  0x14   : > { %v276_v35 = vrot.slane %v274_v24, 4  ;;  %v279_v36 = vrot.slane %v277_v25, 5  ;;  %v229_v37 = vld [vmem:[%s2277_s8 + $0x18] sm:$0xf]  ;;  %v488_v38 = vpack.c.b16 %v430_v28, %v429_v27  ;;  %v428_v41 = vunpack.c.l.b16 %v223_v21  ;;  %v2301_v50 = vld [vmem:[%s2277_s8 + $0x20] sm:$0xf] }
  0x15   : > { %918 = vmatpush.bf16.msrb.mxu2 %v909_v15  ;;  %858 = vmatpush.bf16.msrb.mxu1 %v849_v18  ;;  %v248_v39 = vrot.slane %v246_v29, 4  ;;  %v251_v40 = vrot.slane %v249_v30, 5  ;;  %v255_v42 = vshll.u32 %v224_v26, 16  ;;  %v266_v43 = vor.u32 %v265_v34, %v262_v33  ;;  %v230_v63 = vld [vmem:[%s2277_s8 + $0x1c] sm:$0x1]  ;;  %s2123_s4 = sshll.u32 %s2824_s12, 5 }
  0x16   : > { %680 = vmatpush.bf16.msrb.mxu0 %v671_v16  ;;  %991 = vmatpush.bf16.msrb.mxu3 %v982_v17  ;;  %v269_v44 = vshll.u32 %v226_v31, 16  ;;  %v280_v45 = vor.u32 %v279_v36, %v276_v35  ;;  %v436_v46 = vpack.c.b16 %v429_v27, %v428_v41  ;;  %v283_v49 = vshll.u32 %v228_v32, 16  ;;  %v232_v4 = vld [vmem:[%s2277_s8 + $0x24] sm:$0x1]  ;;  %v233_v23 = vld [vmem:[%s2277_s8 + $0x28] sm:$0xf]  ;;  %s2780_s7 = scalar_lea.vmem %s2816_s3, %s2123_s4 }
  0x17   : > { %1998 = vmatmul.msk.bf16.vlgmr.msra.gmra.mxu2 %vm371_vm2, %v488_v38  ;;  %v252_v48 = vor.u32 %v251_v40, %v248_v39  ;;  %v288_v51 = vshrl.u32 %v229_v37, 16  ;;  %v257_v52 = vrot.slane %v255_v42, 5  ;;  %v267_v53 = vrot.slane %v266_v43, 4  ;;  %v2319_v24 = vld [vmem:[%s2277_s8 + $0x30] sm:$0xf] }
  0x18   : > { %v271_v54 = vrot.slane %v269_v44, 5  ;;  %v281_v55 = vrot.slane %v280_v45, 4  ;;  %1993 = vmatmul.msk.bf16.vlgmr.msra.gmra.mxu1 %vm371_vm2, %v436_v46  ;;  %v285_v57 = vrot.slane %v283_v49, 5  ;;  %v291_v59 = vshll.u32 %v229_v37, 16  ;;  %v234_v38 = vld [vmem:[%s2277_s8 + $0x2c] sm:$0x1] }
  0x19   : > { %v253_v56 = vrot.slane %v252_v48, 4  ;;  %v290_v58 = vrot.slane %v288_v51, 4  ;;  %v302_v61 = vshrl.u32 %v2301_v50, 16  ;;  %v305_v62 = vshll.u32 %v2301_v50, 16  ;;  %v236_v39 = vld [vmem:[%s2277_s8 + $0x34] sm:$0x1] }
  0x1a   : > { %v272_v60 = vsel %vm2296_vm5, %v267_v53, %v271_v54  ;;  %v286_v2 = vsel %vm2296_vm5, %v281_v55, %v285_v57  ;;  %v293_v3 = vrot.slane %v291_v59, 5  ;;  %v297_v11 = vshll.u32 %v230_v63, 16  ;;  %v2340_v49 = vld [vmem:[%s2277_s8 + $0x38] sm:$0xf]  ;;  %v239_v54 = vld [vmem:[%s2277_s8 + $0x40] sm:$0xf] }
  0x1b   : > { %v258_v0 = vsel %vm2296_vm5, %v253_v56, %v257_v52  ;;  %v360_v1 = vunpack.c.l.b16 %v272_v60  ;;  %v361_v7 = vunpack.c.l.b16 %v286_v2  ;;  %v304_v8 = vrot.slane %v302_v61, 4 }
  0x1c   : > { %v359_v6 = vunpack.c.l.b16 %v258_v0  ;;  %v307_v9 = vrot.slane %v305_v62, 5  ;;  %v294_v10 = vor.u32 %v293_v3, %v290_v58  ;;  %v311_v15 = vshll.u32 %v232_v4, 16  ;;  %v238_v3 = vld [vmem:[%s2277_s8 + $0x3c] sm:$0x1]  ;;  %v240_v4 = vld [vmem:[%s2277_s8 + $0x44] sm:$0x1] }
  0x1d   : > { %v561_v13 = vpack.c.b16 %v361_v7, %v360_v1  ;;  %v431_v16 = vunpack.c.l.b16 %v229_v37  ;;  %v432_v17 = vunpack.c.l.b16 %v2301_v50  ;;  %v299_v19 = vrot.slane %v297_v11, 5 }
  0x1e   : > { %v367_v12 = vpack.c.b16 %v360_v1, %v359_v6  ;;  %v308_v14 = vor.u32 %v307_v9, %v304_v8  ;;  %v295_v18 = vrot.slane %v294_v10, 4  ;;  %v313_v22 = vrot.slane %v311_v15, 5  ;;  %v2073_v8 = vld [vmem:[%s2814_s1 + $0x18] sm:$0x3] }
  0x1f   : > { %2003 = vmatmul.msk.bf16.vlgmr.msra.gmra.mxu3 %vm371_vm2, %v561_v13  ;;  %v489_v25 = vpack.c.b16 %v432_v17, %v431_v16  ;;  %v437_v26 = vpack.c.b16 %v431_v16, %v430_v28  ;;  %v316_v27 = vshrl.u32 %v233_v23, 16  ;;  %v319_v29 = vshll.u32 %v233_v23, 16  ;;  %v2362_v13 = vld [vmem:[%s2277_s8 + $0x50] sm:$0xf] }
  0x20   : > { %1989 = vmatmul.msk.bf16.vlgmr.msra.gmra.mxu0 %vm371_vm2, %v367_v12  ;;  %v309_v21 = vrot.slane %v308_v14, 4  ;;  %v300_v30 = vsel %vm2296_vm5, %v295_v18, %v299_v19  ;;  %v330_v32 = vshrl.u32 %v2319_v24, 16  ;;  %v333_v33 = vshll.u32 %v2319_v24, 16  ;;  %v2365_v14 = vld [vmem:[%s2277_s8 + $0x48] sm:$0xf] }
  0x21   : > { %v362_v34 = vunpack.c.l.b16 %v300_v30  ;;  %v318_v20 = vrot.slane %v316_v27, 4  ;;  %v321_v28 = vrot.slane %v319_v29, 5  ;;  %v325_v43 = vshll.u32 %v234_v38, 16  ;;  %v2063_v30 = vld [vmem:[%s2814_s1 + $0x8] sm:$0x3] }
  0x22   : > { %v314_v31 = vsel %vm2296_vm5, %v309_v21, %v313_v22  ;;  %v332_v36 = vrot.slane %v330_v32, 4  ;;  %v335_v37 = vrot.slane %v333_v33, 5  ;;  %v339_v45 = vshll.u32 %v236_v39, 16  ;;  %v2068_v32 = vld [vmem:[%s2814_s1 + $0xc] sm:$0x3] }
  0x23   : > { %v2330_v35 = vunpack.c.l.b16 %v314_v31  ;;  %v368_v40 = vpack.c.b16 %v362_v34, %v361_v7  ;;  %v322_v42 = vor.u32 %v321_v28, %v318_v20  ;;  %v433_v46 = vunpack.c.l.b16 %v233_v23  ;;  %v2078_v31 = vld [vmem:[%s2814_s1 + $0x1c] sm:$0x3]  ;;  %v2389_v28 = vld [vmem:[%s2277_s8 + $0x58] sm:$0xf] }
  0x24   : > { %v336_v44 = vor.u32 %v335_v37, %v332_v36  ;;  %v434_v48 = vunpack.c.l.b16 %v2319_v24  ;;  %v327_v51 = vrot.slane %v325_v43, 5  ;;  %v341_v53 = vrot.slane %v339_v45, 5 }
  0x25   : > { %v562_v41 = vpack.c.b16 %v2330_v35, %v362_v34  ;;  %v323_v50 = vrot.slane %v322_v42, 4  ;;  %v344_v56 = vshrl.u32 %v2340_v49, 16  ;;  %v347_v57 = vshll.u32 %v2340_v49, 16  ;;  %v2010_v42 = vld [vmem:[%s2277_s8 + $0x54] sm:$0x1] }
  0x26   : > { %v337_v52 = vrot.slane %v336_v44, 4  ;;  %v490_v55 = vpack.c.b16 %v434_v48, %v433_v46  ;;  %v438_v58 = vpack.c.b16 %v433_v46, %v432_v17  ;;  %v545_v61 = vshrl.u32 %v239_v54, 16 }
  0x27   : > { %1999 = vmatmul.msk.bf16.gmra.mxu2 %vm371_vm2, %v489_v25  ;;  %v328_v59 = vsel %vm2296_vm5, %v323_v50, %v327_v51  ;;  %v548_v62 = vshll.u32 %v239_v54, 16  ;;  %v346_v63 = vrot.slane %v344_v56, 4  ;;  %v349_v0 = vrot.slane %v347_v57, 5 }
  0x28   : > { %1994 = vmatmul.msk.bf16.gmra.mxu1 %vm371_vm2, %v437_v26  ;;  %v342_v60 = vsel %vm2296_vm5, %v337_v52, %v341_v53  ;;  %v364_v1 = vunpack.c.l.b16 %v328_v59  ;;  %v547_v6 = vrot.slane %v545_v61, 4  ;;  %v1313_v9 = vand.u32 %v2073_v8, %v2246_v5  ;;  %v2405_v61 = vld [vmem:[%s2277_s8 + $0x60] sm:$0xf] }
  0x29   : > { %v2352_v2 = vunpack.c.l.b16 %v342_v60  ;;  %v550_v7 = vrot.slane %v548_v62, 5  ;;  %v350_v10 = vor.u32 %v349_v0, %v346_v63  ;;  %v353_v11 = vshll.u32 %v238_v3, 16  ;;  %v2012_v60 = vld [vmem:[%s2277_s8 + $0x5c] sm:$0x1] }
  0x2a   : > { %v554_v12 = vshll.u32 %v240_v4, 16  ;;  %v369_v15 = vpack.c.b16 %v364_v1, %v2330_v35  ;;  %1322 = vmatpush.bf16.msra.mxu2 %v1313_v9  ;;  %v435_v17 = vunpack.c.l.b16 %v2340_v49  ;;  %v725_v19 = vshrl.u32 %v2362_v13, 16 }
  0x2b   : > { %v563_v16 = vpack.c.b16 %v2352_v2, %v364_v1  ;;  %v551_v18 = vor.u32 %v550_v7, %v547_v6  ;;  %v728_v21 = vshll.u32 %v2362_v13, 16  ;;  %v711_v22 = vshrl.u32 %v2365_v14, 16 }
  0x2c   : > { %v714_v23 = vshll.u32 %v2365_v14, 16  ;;  %v487_v25 = vunpack.c.l.b16 %v239_v54  ;;  %v351_v26 = vrot.slane %v350_v10, 4  ;;  %v355_v27 = vrot.slane %v353_v11, 5 }
  0x2d   : > { %v556_v29 = vrot.slane %v554_v12, 5  ;;  %v552_v33 = vrot.slane %v551_v18, 4  ;;  %v1075_v34 = vand.u32 %v2063_v30, %v2246_v5  ;;  %v1386_v35 = vand.u32 %v2078_v31, %v2246_v5 }
  0x2e   : > { %v1253_v20 = vand.u32 %v2068_v32, %v2246_v5  ;;  %v727_v36 = vrot.slane %v725_v19, 4  ;;  %v730_v37 = vrot.slane %v728_v21, 5  ;;  %v713_v38 = vrot.slane %v711_v22, 4  ;;  %v2014_v19 = vld [vmem:[%s2277_s8 + $0x64] sm:$0x1] }
  0x2f   : > { %2004 = vmatmul.msk.bf16.gmra.mxu3 %vm371_vm2, %v562_v41  ;;  %v716_v39 = vrot.slane %v714_v23, 5  ;;  %v2008_v41 = vld [vmem:[%s2277_s8 + $0x4c] sm:$0x1]  ;;  %1084 = vmatpush.bf16.msra.mxu0 %v1075_v34  ;;  %v439_v43 = vpack.c.b16 %v435_v17, %v434_v48  ;;  %v356_v44 = vsel %vm2296_vm5, %v351_v26, %v355_v27  ;;  %v557_v45 = vsel %vm2296_vm5, %v552_v33, %v556_v29  ;;  %v2430_v32 = vld [vmem:[%s2277_s8 + $0x70] sm:$0xf] }
  0x30   : > { %1990 = vmatmul.msk.bf16.gmra.mxu0 %vm371_vm2, %v368_v40  ;;  %v491_v40 = vpack.c.b16 %v487_v25, %v435_v17  ;;  %1395 = vmatpush.bf16.msra.mxu3 %v1386_v35  ;;  %v739_v46 = vshrl.u32 %v2389_v28, 16  ;;  %v742_v49 = vshll.u32 %v2389_v28, 16  ;;  %v720_v51 = vshll.u32 %v2008_v41, 16  ;;  %v2016_v35 = vld [vmem:[%s2277_s8 + $0x6c] sm:$0x1] }
  0x31   : > { %1262 = vmatpush.bf16.msra.mxu1 %v1253_v20  ;;  %v717_v50 = vor.u32 %v716_v39, %v713_v38  ;;  %v731_v52 = vor.u32 %v730_v37, %v727_v36  ;;  %v734_v53 = vshll.u32 %v2010_v42, 16  ;;  %v366_v24 = vunpack.c.l.b16 %v356_v44 }
  0x32   : > { %v560_v48 = vunpack.c.l.b16 %v557_v45  ;;  %v741_v54 = vrot.slane %v739_v46, 4  ;;  %v722_v57 = vrot.slane %v720_v51, 5  ;;  %v748_v1 = vshll.u32 %v2012_v60, 16 }
  0x33   : > { %v718_v56 = vrot.slane %v717_v50, 4  ;;  %v736_v59 = vrot.slane %v734_v53, 5  ;;  %v370_v62 = vpack.c.b16 %v366_v24, %v2352_v2  ;;  %v753_v6 = vshrl.u32 %v2405_v61, 16  ;;  %v2443_v50 = vld [vmem:[%s2277_s8 + $0x78] sm:$0xf] }
  0x34   : > { %v564_v63 = vpack.c.b16 %v560_v48, %v366_v24  ;;  %v756_v7 = vshll.u32 %v2405_v61, 16  ;;  %v647_v8 = vunpack.c.l.b16 %v2362_v13  ;;  %v648_v9 = vunpack.c.l.b16 %v2389_v28 }
  0x35   : > { %v723_v3 = vsel %vm2296_vm5, %v718_v56, %v722_v57  ;;  %v750_v12 = vrot.slane %v748_v1, 5  ;;  %v762_v26 = vshll.u32 %v2014_v19, 16  ;;  %v646_v27 = vunpack.c.l.b16 %v2365_v14 }
  0x36   : > { %v824_v2 = vunpack.c.l.b16 %v723_v3  ;;  %v758_v17 = vrot.slane %v756_v7, 5  ;;  %v892_v18 = vpack.c.b16 %v648_v9, %v647_v8  ;;  %v781_v36 = vshrl.u32 %v2430_v32, 16 }
  0x37   : > { %2000 = vmatmul.msk.bf16.gmra.mxu2 %vm371_vm2, %v490_v55  ;;  %v744_v55 = vrot.slane %v742_v49, 5  ;;  %v764_v34 = vrot.slane %v762_v26, 5  ;;  %v654_v20 = vpack.c.b16 %v647_v8, %v646_v27  ;;  %v784_v37 = vshll.u32 %v2430_v32, 16  ;;  %v2018_v49 = vld [vmem:[%s2277_s8 + $0x74] sm:$0x1] }
  0x38   : > { %1995 = vmatmul.msk.bf16.gmra.mxu1 %vm371_vm2, %v438_v58  ;;  %v732_v58 = vrot.slane %v731_v52, 4  ;;  %v776_v14 = vshll.u32 %v2016_v35, 16  ;;  %v783_v42 = vrot.slane %v781_v36, 4  ;;  %v790_v53 = vshll.u32 %v2018_v49, 16 }
  0x39   : > { %v745_v0 = vor.u32 %v744_v55, %v741_v54  ;;  %v795_v54 = vshrl.u32 %v2443_v50, 16  ;;  %v798_v55 = vshll.u32 %v2443_v50, 16  ;;  %v651_v8 = vunpack.c.l.b16 %v2430_v32  ;;  %v2024_v32 = vld [vmem:[%s2277_s8 + $0x8c] sm:$0x1] }
  0x3a   : > { %v737_v4 = vsel %vm2296_vm5, %v732_v58, %v736_v59  ;;  %v778_v46 = vrot.slane %v776_v14, 5  ;;  %v792_v58 = vrot.slane %v790_v53, 5  ;;  %v958_v36 = vshll.u32 %v2024_v32, 16 }
  0x3b   : > { %v825_v10 = vunpack.c.l.b16 %v737_v4  ;;  %v746_v11 = vrot.slane %v745_v0, 4  ;;  %v797_v59 = vrot.slane %v795_v54, 4  ;;  %v800_v60 = vrot.slane %v798_v55, 5  ;;  %v2500_v55 = vld [vmem:[%s2277_s8 + $0xa0] sm:$0xf] }
  0x3c   : > { %v960_v49 = vrot.slane %v958_v36, 5 }
  0x3d   : > { %v832_v21 = vpack.c.b16 %v825_v10, %v824_v2  ;;  %v751_v13 = vsel %vm2296_vm5, %v746_v11, %v750_v12  ;;  %v801_v3 = vor.u32 %v800_v60, %v797_v59  ;;  %v652_v2 = vunpack.c.l.b16 %v2443_v50  ;;  %v2023_v12 = vld [vmem:[%s2277_s8 + $0x88] sm:$0xf]  ;;  %v2046_v60 = vld [vmem:[%s2277_s8 + $0x94] sm:$0x1] }
  0x3e   : > { %v826_v29 = vunpack.c.l.b16 %v751_v13  ;;  %v949_v19 = vshrl.u32 %v2023_v12, 16  ;;  %v1052_v50 = vunpack.c.l.b16 %v2500_v55 }
  0x3f   : > { %2005 = vmatmul.msk.bf16.gmra.mxu3 %vm371_vm2, %v563_v16  ;;  %v755_v16 = vrot.slane %v753_v6, 4 }
  0x40   : > { %1991 = vmatmul.msk.bf16.gmra.mxu0 %vm371_vm2, %v369_v15  ;;  %v2419_v15 = vld [vmem:[%s2277_s8 + $0x68] sm:$0xf]  ;;  %v965_v28 = vpack.c.b16 %v826_v29, %v825_v10  ;;  %v802_v10 = vrot.slane %v801_v3, 4  ;;  %v951_v27 = vrot.slane %v949_v19, 4  ;;  %v1146_v3 = vshll.u32 %v2500_v55, 16 }
  0x41   : > { %v767_v22 = vshrl.u32 %v2419_v15, 16  ;;  %v770_v23 = vshll.u32 %v2419_v15, 16  ;;  %v759_v25 = vor.u32 %v758_v17, %v755_v16  ;;  %v650_v41 = vunpack.c.l.b16 %v2419_v15  ;;  %v2022_v17 = vld [vmem:[%s2277_s8 + $0x84] sm:$0x1] }
  0x43   : > { %v769_v30 = vrot.slane %v767_v22, 4  ;;  %v772_v31 = vrot.slane %v770_v23, 5  ;;  %v760_v33 = vrot.slane %v759_v25, 4  ;;  %v818_v25 = vshll.u32 %v2022_v17, 16  ;;  %v2050_v17 = vld [vmem:[%s2277_s8 + $0xa4] sm:$0x1] }
  0x44   : > { %v656_v35 = vpack.c.b16 %v651_v8, %v650_v41 }
  0x45   : > { %v773_v38 = vor.u32 %v772_v31, %v769_v30  ;;  %v765_v39 = vsel %vm2296_vm5, %v760_v33, %v764_v34  ;;  %v820_v31 = vrot.slane %v818_v25, 5  ;;  %v2473_v33 = vld [vmem:[%s2277_s8 + $0x98] sm:$0xf]  ;;  %v2476_v34 = vld [vmem:[%s2277_s8 + $0x90] sm:$0xf] }
  0x46   : > { %v827_v44 = vunpack.c.l.b16 %v765_v39  ;;  %v1132_v14 = vshll.u32 %v2473_v33, 16  ;;  %v1115_v39 = vshrl.u32 %v2476_v34, 16 }
  0x47   : > { %2001 = vmatmul.msk.bf16.gmra.mxu2 %vm371_vm2, %v491_v40  ;;  %v649_v40 = vunpack.c.l.b16 %v2405_v61  ;;  %v774_v45 = vrot.slane %v773_v38, 4  ;;  %v2020_v61 = vld [vmem:[%s2277_s8 + $0x7c] sm:$0x1]  ;;  %v1129_v38 = vshrl.u32 %v2473_v33, 16 }
  0x48   : > { %1996 = vmatmul.msk.bf16.gmra.mxu1 %vm371_vm2, %v439_v43  ;;  %v786_v43 = vrot.slane %v784_v37, 5  ;;  %v833_v24 = vpack.c.b16 %v827_v44, %v826_v29  ;;  %v804_v4 = vshll.u32 %v2020_v61, 16  ;;  %v2048_v61 = vld [vmem:[%s2277_s8 + $0x9c] sm:$0x1] }
  0x49   : > { %v893_v51 = vpack.c.b16 %v650_v41, %v649_v40  ;;  %v779_v48 = vsel %vm2296_vm5, %v774_v45, %v778_v46  ;;  %v1131_v53 = vrot.slane %v1129_v38, 4 }
  0x4a   : > { %v787_v52 = vor.u32 %v786_v43, %v783_v42  ;;  %v828_v56 = vunpack.c.l.b16 %v779_v48  ;;  %v806_v11 = vrot.slane %v804_v4, 5  ;;  %v2111_v42 = vld [vmem:[%s2814_s1 + $0x1a] sm:$0x3]  ;;  %v891_v43 = vunpack.c.l.b16 %v2023_v12 }
  0x4c   : > { %v788_v57 = vrot.slane %v787_v52, 4  ;;  %v966_v0 = vpack.c.b16 %v828_v56, %v827_v44  ;;  %v807_v22 = vsel %vm2296_vm5, %v802_v10, %v806_v11  ;;  %v1717_v44 = vand.u32 %v2111_v42, %v2246_v5  ;;  %v2116_v52 = vld [vmem:[%s2814_s1 + $0x1e] sm:$0x3] }
  0x4d   : > { %v830_v26 = vunpack.c.l.b16 %v807_v22  ;;  %v1790_v54 = vand.u32 %v2116_v52, %v2246_v5  ;;  %v1148_v10 = vrot.slane %v1146_v3, 5  ;;  %v1152_v22 = vshll.u32 %v2050_v17, 16 }
  0x4e   : > { %v793_v1 = vsel %vm2296_vm5, %v788_v57, %v792_v58  ;;  %v2106_v58 = vld [vmem:[%s2814_s1 + $0xe] sm:$0x3] }
  0x4f   : > { %2006 = vmatmul.msk.bf16.gmra.mxu3 %vm371_vm2, %v564_v63  ;;  %v655_v63 = vpack.c.b16 %v649_v40, %v648_v9  ;;  %v829_v9 = vunpack.c.l.b16 %v793_v1  ;;  %v1118_v40 = vshll.u32 %v2476_v34, 16  ;;  %v1143_v1 = vshrl.u32 %v2500_v55, 16 }
  0x50   : > { %1992 = vmatmul.msk.bf16.gmra.mxu0 %vm371_vm2, %v370_v62  ;;  %v2453_v62 = vld [vmem:[%s2277_s8 + $0x80] sm:$0xf]  ;;  %v1154_v32 = vrot.slane %v1152_v22, 5 }
  0x51   : > { %v809_v6 = vshrl.u32 %v2453_v62, 16  ;;  %v812_v7 = vshll.u32 %v2453_v62, 16  ;;  %v834_v13 = vpack.c.b16 %v829_v9, %v828_v56  ;;  %v653_v41 = vunpack.c.l.b16 %v2453_v62 }
  0x52   : > { %v1117_v56 = vrot.slane %v1115_v39, 4  ;;  %v1120_v57 = vrot.slane %v1118_v40, 5  ;;  %v1657_v62 = vand.u32 %v2106_v58, %v2246_v5 }
  0x53   : > { %v811_v15 = vrot.slane %v809_v6, 4  ;;  %v814_v16 = vrot.slane %v812_v7, 5  ;;  %v895_v59 = vpack.c.b16 %v891_v43, %v653_v41  ;;  %v1124_v6 = vshll.u32 %v2046_v60, 16 }
  0x54   : > { %v1121_v4 = vor.u32 %v1120_v57, %v1117_v56  ;;  %v657_v19 = vpack.c.b16 %v653_v41, %v652_v2  ;;  %v1050_v43 = vunpack.c.l.b16 %v2476_v34 }
  0x55   : > { %v815_v23 = vor.u32 %v814_v16, %v811_v15 }
  0x56   : > { %v1122_v11 = vrot.slane %v1121_v4, 4 }
  0x57   : > { %2036 = vmatmul.msk.bf16.vlgmr.msrb.gmra.mxu2 %vm371_vm2, %v892_v18  ;;  %v894_v18 = vpack.c.b16 %v652_v2, %v651_v8  ;;  %v816_v30 = vrot.slane %v815_v23, 4  ;;  %v1138_v8 = vshll.u32 %v2048_v61, 16 }
  0x58   : > { %2031 = vmatmul.msk.bf16.vlgmr.msrb.gmra.mxu1 %vm371_vm2, %v832_v21  ;;  %v952_v21 = vshll.u32 %v2023_v12, 16  ;;  %1726 = vmatpush.bf16.msrb.mxu2 %v1717_v44  ;;  %v1126_v12 = vrot.slane %v1124_v6, 5 }
  0x59   : > { %v821_v37 = vsel %vm2296_vm5, %v816_v30, %v820_v31  ;;  %1666 = vmatpush.bf16.msrb.mxu1 %v1657_v62  ;;  %v1140_v16 = vrot.slane %v1138_v8, 5 }
  0x5a   : > { %v954_v29 = vrot.slane %v952_v21, 5  ;;  %v831_v45 = vunpack.c.l.b16 %v821_v37  ;;  %v1127_v23 = vsel %vm2296_vm5, %v1122_v11, %v1126_v12  ;;  %v2052_v37 = vld [vmem:[%s2277_s8 + $0xac] sm:$0x1] }
  0x5b   : > { %v1228_v2 = vunpack.c.l.b16 %v1127_v23  ;;  %v1166_v41 = vshll.u32 %v2052_v37, 16 }
  0x5f   : > { %2041 = vmatmul.msk.bf16.vlgmr.msrb.gmra.mxu3 %vm371_vm2, %v965_v28  ;;  %v955_v28 = vor.u32 %v954_v29, %v951_v27  ;;  %v1051_v29 = vunpack.c.l.b16 %v2473_v33 }
  0x60   : > { %2026 = vmatmul.msk.bf16.vlgmr.msrb.gmra.mxu0 %vm371_vm2, %v654_v20  ;;  %v967_v20 = vpack.c.b16 %v830_v26, %v829_v9  ;;  %1799 = vmatpush.bf16.msrb.mxu3 %v1790_v54 }
  0x61   : > { %v956_v46 = vrot.slane %v955_v28, 4  ;;  %v1296_v36 = vpack.c.b16 %v1052_v50, %v1051_v29 }
  0x67   : > { %2037 = vmatmul.msk.bf16.gmra.mxu2 %vm371_vm2, %v893_v51  ;;  %v2101_v51 = vld [vmem:[%s2814_s1 + $0xa] sm:$0x3] }
  0x68   : > { %2032 = vmatmul.msk.bf16.gmra.mxu1 %vm371_vm2, %v833_v24  ;;  %v1134_v24 = vrot.slane %v1132_v14, 5  ;;  %v1479_v48 = vand.u32 %v2101_v51, %v2246_v5  ;;  %v1145_v5 = vrot.slane %v1143_v1, 4 }
  0x6a   : > { %1488 = vmatpush.bf16.msrb.mxu0 %v1479_v48  ;;  %v1135_v7 = vor.u32 %v1134_v24, %v1131_v53  ;;  %v1168_v53 = vrot.slane %v1166_v41, 5  ;;  %v2054_v24 = vld [vmem:[%s2277_s8 + $0xb4] sm:$0x1]  ;;  %v1058_v48 = vpack.c.b16 %v1051_v29, %v1050_v43 }
  0x6c   : > { %v1136_v15 = vrot.slane %v1135_v7, 4 }
  0x6e   : > { %v1141_v25 = vsel %vm2296_vm5, %v1136_v15, %v1140_v16 }
  0x6f   : > { %2042 = vmatmul.msk.bf16.gmra.mxu3 %vm371_vm2, %v966_v0  ;;  %v961_v0 = vsel %vm2296_vm5, %v956_v46, %v960_v49  ;;  %v1229_v30 = vunpack.c.l.b16 %v1141_v25  ;;  %v2544_v49 = vld [vmem:[%s2277_s8 + $0xb8] sm:$0xf] }
  0x70   : > { %2027 = vmatmul.msk.bf16.gmra.mxu0 %vm371_vm2, %v655_v63  ;;  %v835_v63 = vpack.c.b16 %v831_v45, %v830_v26  ;;  %v964_v9 = vunpack.c.l.b16 %v961_v0  ;;  %v1185_v56 = vshrl.u32 %v2544_v49, 16  ;;  %v1188_v57 = vshll.u32 %v2544_v49, 16 }
  0x71   : > { %v1236_v33 = vpack.c.b16 %v1229_v30, %v1228_v2 }
  0x72   : > { %v968_v21 = vpack.c.b16 %v964_v9, %v831_v45  ;;  %v1187_v3 = vrot.slane %v1185_v56, 4  ;;  %v1190_v4 = vrot.slane %v1188_v57, 5  ;;  %v2056_v9 = vld [vmem:[%s2277_s8 + $0xbc] sm:$0x1]  ;;  %v2060_v57 = vld [vmem:[%s2277_s8 + $0xcc] sm:$0x1] }
  0x73   : > { %v1194_v17 = vshll.u32 %v2056_v9, 16 }
  0x74   : > { %v1191_v16 = vor.u32 %v1190_v4, %v1187_v3  ;;  %v1222_v3 = vshll.u32 %v2060_v57, 16 }
  0x75   : > { %v1196_v2 = vrot.slane %v1194_v17, 5 }
  0x76   : > { %v1192_v29 = vrot.slane %v1191_v16, 4  ;;  %v2062_v16 = vld [vmem:[%s2277_s8 + $0xd4] sm:$0x1] }
  0x77   : > { %2038 = vmatmul.msk.bf16.gmra.mxu2 %vm371_vm2, %v894_v18  ;;  %v2516_v18 = vld [vmem:[%s2277_s8 + $0xa8] sm:$0xf] }
  0x78   : > { %2033 = vmatmul.msk.bf16.gmra.mxu1 %vm371_vm2, %v834_v13  ;;  %v1149_v13 = vor.u32 %v1148_v10, %v1145_v5  ;;  %v1157_v26 = vshrl.u32 %v2516_v18, 16  ;;  %v1160_v27 = vshll.u32 %v2516_v18, 16  ;;  %v2557_v10 = vld [vmem:[%s2277_s8 + $0xc0] sm:$0xf] }
  0x79   : > { %v1202_v22 = vshll.u32 %v2557_v10, 16  ;;  %v1056_v55 = vunpack.c.l.b16 %v2557_v10 }
  0x7a   : > { %v1150_v31 = vrot.slane %v1149_v13, 4  ;;  %v1162_v28 = vrot.slane %v1160_v27, 5  ;;  %v1199_v13 = vshrl.u32 %v2557_v10, 16 }
  0x7c   : > { %v1155_v38 = vsel %vm2296_vm5, %v1150_v31, %v1154_v32  ;;  %v1204_v31 = vrot.slane %v1202_v22, 5 }
  0x7d   : > { %v1230_v44 = vunpack.c.l.b16 %v1155_v38 }
  0x7f   : > { %2043 = vmatmul.msk.bf16.gmra.mxu3 %vm371_vm2, %v967_v20  ;;  %v1159_v20 = vrot.slane %v1157_v26, 4  ;;  %v1369_v54 = vpack.c.b16 %v1230_v44, %v1229_v30  ;;  %v1201_v30 = vrot.slane %v1199_v13, 4  ;;  %v2602_v13 = vld [vmem:[%s2277_s8 + $0xe0] sm:$0xf] }
  0x80   : > { %2028 = vmatmul.msk.bf16.gmra.mxu0 %vm371_vm2, %v656_v35  ;;  %v2531_v35 = vld [vmem:[%s2277_s8 + $0xb0] sm:$0xf]  ;;  %v1455_v10 = vunpack.c.l.b16 %v2602_v13 }
  0x81   : > { %v1171_v14 = vshrl.u32 %v2531_v35, 16  ;;  %v1174_v39 = vshll.u32 %v2531_v35, 16  ;;  %v1163_v42 = vor.u32 %v1162_v28, %v1159_v20  ;;  %v1054_v0 = vunpack.c.l.b16 %v2531_v35  ;;  %v2058_v20 = vld [vmem:[%s2277_s8 + $0xc4] sm:$0x1]  ;;  %v2571_v28 = vld [vmem:[%s2277_s8 + $0xc8] sm:$0xf] }
  0x82   : > { %v1213_v41 = vshrl.u32 %v2571_v28, 16  ;;  %v1216_v43 = vshll.u32 %v2571_v28, 16  ;;  %v1533_v35 = vshrl.u32 %v2602_v13, 16 }
  0x83   : > { %v1173_v45 = vrot.slane %v1171_v14, 4  ;;  %v1176_v46 = vrot.slane %v1174_v39, 5  ;;  %v1164_v52 = vrot.slane %v1163_v42, 4  ;;  %v1197_v14 = vsel %vm2296_vm5, %v1192_v29, %v1196_v2 }
  0x84   : > { %v1208_v42 = vshll.u32 %v2058_v20, 16  ;;  %v1057_v20 = vunpack.c.l.b16 %v2571_v28 }
  0x85   : > { %v1177_v34 = vor.u32 %v1176_v46, %v1173_v45  ;;  %v1169_v62 = vsel %vm2296_vm5, %v1164_v52, %v1168_v53  ;;  %v1055_v46 = vunpack.c.l.b16 %v2544_v49 }
  0x86   : > { %v1231_v6 = vunpack.c.l.b16 %v1169_v62  ;;  %v1210_v53 = vrot.slane %v1208_v42, 5 }
  0x87   : > { %2039 = vmatmul.msk.bf16.gmra.mxu2 %vm371_vm2, %v895_v59  ;;  %v1180_v59 = vshll.u32 %v2054_v24, 16  ;;  %v1178_v7 = vrot.slane %v1177_v34, 4  ;;  %v2061_v24 = vld [vmem:[%s2277_s8 + $0xd0] sm:$0xf]  ;;  %v1298_v34 = vpack.c.b16 %v1056_v55, %v1055_v46 }
  0x88   : > { %2034 = vmatmul.msk.bf16.gmra.mxu1 %vm371_vm2, %v835_v63  ;;  %v1053_v63 = vunpack.c.l.b16 %v2516_v18 }
  0x89   : > { %v1182_v8 = vrot.slane %v1180_v59, 5  ;;  %v1353_v59 = vshrl.u32 %v2061_v24, 16 }
  0x8a   : > { %v1297_v12 = vpack.c.b16 %v1054_v0, %v1053_v63 }
  0x8b   : > { %v1355_v9 = vrot.slane %v1353_v59, 4 }
  0x8f   : > { %2044 = vmatmul.msk.bf16.gmra.mxu3 %vm371_vm2, %v968_v21  ;;  %v1183_v21 = vsel %vm2296_vm5, %v1178_v7, %v1182_v8 }
  0x90   : > { %2029 = vmatmul.msk.bf16.gmra.mxu0 %vm371_vm2, %v657_v19  ;;  %v1237_v19 = vpack.c.b16 %v1231_v6, %v1230_v44  ;;  %v1232_v27 = vunpack.c.l.b16 %v1183_v21  ;;  %v1060_v21 = vpack.c.b16 %v1055_v46, %v1054_v0  ;;  %v1536_v0 = vshll.u32 %v2602_v13, 16  ;;  %v2084_v46 = vld [vmem:[%s2277_s8 + $0xdc] sm:$0x1] }
  0x92   : > { %v1370_v38 = vpack.c.b16 %v1232_v27, %v1231_v6 }
  0x95   : > { %v464_v40 = vpop.f32.mrf.mxu1 }
  0x97   : > { %2074 = vmatmul.msk.bf16.vlgmr.msra.gmra.mxu2 %vm371_vm2, %v1296_v36 }
  0x98   : > { %2069 = vmatmul.msk.bf16.vlgmr.msra.gmra.mxu1 %vm371_vm2, %v1236_v33  ;;  %v1059_v33 = vpack.c.b16 %v1053_v63, %v1052_v50 }
  0x9a   : > { %v516_v51 = vpop.f32.mrf.mxu2 }
  0x9d   : > { %v400_v58 = vpop.f32.mrf.mxu0  ;;  %v466_v61 = vpop.f32.mrf.mxu1 }
  0x9e   : > { %v465_v60 = vadd.f32 %v464_v40, %v400_v58  ;;  %v1205_v40 = vor.u32 %v1204_v31, %v1201_v30 }
  0x9f   : > { %2079 = vmatmul.msk.bf16.vlgmr.msra.gmra.mxu3 %vm371_vm2, %v1369_v54  ;;  %v1218_v54 = vrot.slane %v1216_v43, 5  ;;  %v2616_v43 = vld [vmem:[%s2277_s8 + $0xe8] sm:$0xf] }
  0xa0   : > { %2064 = vmatmul.msk.bf16.vlgmr.msra.gmra.mxu0 %vm371_vm2, %v1058_v48  ;;  %v536_v1 = vadd.f32 %v516_v51, %v465_v60  ;;  %v1233_v51 = vunpack.c.l.b16 %v1197_v14  ;;  %v1206_v52 = vrot.slane %v1205_v40, 4  ;;  %v1215_v48 = vrot.slane %v1213_v41, 4 }
  0xa1   : > { %v1356_v60 = vshll.u32 %v2061_v24, 16 }
  0xa2   : > { %v518_v5 = vpop.f32.mrf.mxu2  ;;  %v589_v11 = vpop.f32.mrf.mxu3  ;;  %v1238_v62 = vpack.c.b16 %v1233_v51, %v1232_v27  ;;  %v1211_v63 = vsel %vm2296_vm5, %v1206_v52, %v1210_v53 }
  0xa3   : > { %v2561_v15 = vadd.f32 %v589_v11, %v536_v1  ;;  %v1219_v1 = vor.u32 %v1218_v54, %v1215_v48  ;;  %v1234_v8 = vunpack.c.l.b16 %v1211_v63  ;;  %v1547_v54 = vshrl.u32 %v2616_v43, 16 }
  0xa5   : > { %v402_v18 = vpop.f32.mrf.mxu0  ;;  %v469_v25 = vpop.f32.mrf.mxu1  ;;  %v1220_v11 = vrot.slane %v1219_v1, 4  ;;  %v1549_v1 = vrot.slane %v1547_v54, 4 }
  0xa6   : > { %v467_v23 = vadd.f32 %v466_v61, %v402_v18  ;;  %v2597_v18 = vld [vmem:[%s2277_s8 + $0xd8] sm:$0xf] }
  0xa7   : > { %2075 = vmatmul.msk.bf16.gmra.mxu2 %vm371_vm2, %v1297_v12  ;;  %v1224_v12 = vrot.slane %v1222_v3, 5  ;;  %v1519_v2 = vshrl.u32 %v2597_v18, 16  ;;  %v1522_v30 = vshll.u32 %v2597_v18, 16 }
  0xa8   : > { %v537_v26 = vadd.f32 %v518_v5, %v467_v23  ;;  %2070 = vmatmul.msk.bf16.gmra.mxu1 %vm371_vm2, %v1237_v19  ;;  %v1358_v5 = vrot.slane %v1356_v60, 5  ;;  %v1371_v23 = vpack.c.b16 %v1234_v8, %v1233_v51  ;;  %v2086_v51 = vld [vmem:[%s2277_s8 + $0xe4] sm:$0x1] }
  0xa9   : > { %v1225_v29 = vsel %vm2296_vm5, %v1220_v11, %v1224_v12  ;;  %v1521_v40 = vrot.slane %v1519_v2, 4  ;;  %v1524_v42 = vrot.slane %v1522_v30, 5  ;;  %v2630_v12 = vld [vmem:[%s2277_s8 + $0xf0] sm:$0xf] }
  0xaa   : > { %v521_v32 = vpop.f32.mrf.mxu2  ;;  %v591_v36 = vpop.f32.mrf.mxu3  ;;  %v1561_v30 = vshrl.u32 %v2630_v12, 16 }
  0xab   : > { %v2573_v37 = vadd.f32 %v591_v36, %v537_v26  ;;  %v1362_v26 = vshll.u32 %v2062_v16, 16  ;;  %v1295_v36 = vunpack.c.l.b16 %v2061_v24  ;;  %v1525_v57 = vor.u32 %v1524_v42, %v1521_v40  ;;  %v2090_v42 = vld [vmem:[%s2277_s8 + $0xf4] sm:$0x1] }
  0xad   : > { %v405_v39 = vpop.f32.mrf.mxu0  ;;  %v471_v45 = vpop.f32.mrf.mxu1  ;;  %v1299_v28 = vpack.c.b16 %v1295_v36, %v1057_v20 }
  0xae   : > { %v470_v44 = vadd.f32 %v469_v25, %v405_v39  ;;  %v1359_v25 = vor.u32 %v1358_v5, %v1355_v9  ;;  %v1364_v39 = vrot.slane %v1362_v26, 5  ;;  %v2088_v5 = vld [vmem:[%s2277_s8 + $0xec] sm:$0x1] }
  0xaf   : > { %2080 = vmatmul.msk.bf16.gmra.mxu3 %vm371_vm2, %v1370_v38  ;;  %v1235_v38 = vunpack.c.l.b16 %v1225_v29  ;;  %v1556_v26 = vshll.u32 %v2088_v5, 16 }
  0xb0   : > { %2065 = vmatmul.msk.bf16.gmra.mxu0 %vm371_vm2, %v1059_v33  ;;  %v538_v50 = vadd.f32 %v521_v32, %v470_v44  ;;  %v1360_v14 = vrot.slane %v1359_v25, 4  ;;  %v1535_v44 = vrot.slane %v1533_v35, 4 }
  0xb1   : > { %v1239_v53 = vpack.c.b16 %v1235_v38, %v1234_v8  ;;  %v1558_v36 = vrot.slane %v1556_v26, 5 }
  0xb2   : > { %v523_v56 = vpop.f32.mrf.mxu2  ;;  %v594_v58 = vpop.f32.mrf.mxu3  ;;  %v1365_v24 = vsel %vm2296_vm5, %v1360_v14, %v1364_v39  ;;  %v1563_v14 = vrot.slane %v1561_v30, 4  ;;  %v2677_v30 = vld [vmem:[%s2277_s8 + $0x108] sm:$0xf] }
  0xb3   : > { %v2589_v49 = vadd.f32 %v594_v58, %v538_v50  ;;  %v1528_v58 = vshll.u32 %v2084_v46, 16  ;;  %v1368_v63 = vunpack.c.l.b16 %v1365_v24 }
  0xb5   : > { %v407_v61 = vpop.f32.mrf.mxu0  ;;  %v474_v6 = vpop.f32.mrf.mxu1 }
  0xb6   : > { %v472_v4 = vadd.f32 %v471_v45, %v407_v61  ;;  %v1538_v45 = vrot.slane %v1536_v0, 5  ;;  %v1542_v61 = vshll.u32 %v2086_v51, 16 }
  0xb7   : > { %2076 = vmatmul.msk.bf16.gmra.mxu2 %vm371_vm2, %v1298_v34 }
  0xb8   : > { %v539_v7 = vadd.f32 %v523_v56, %v472_v4  ;;  %2071 = vmatmul.msk.bf16.gmra.mxu1 %vm371_vm2, %v1238_v62  ;;  %v1550_v56 = vshll.u32 %v2616_v43, 16  ;;  %v1539_v60 = vor.u32 %v1538_v45, %v1535_v44  ;;  %v1526_v4 = vrot.slane %v1525_v57, 4 }
  0xb9   : > { %v1544_v9 = vrot.slane %v1542_v61, 5 }
  0xba   : > { %v526_v17 = vpop.f32.mrf.mxu2  ;;  %v596_v19 = vpop.f32.mrf.mxu3  ;;  %v1552_v3 = vrot.slane %v1550_v56, 5  ;;  %v1540_v8 = vrot.slane %v1539_v60, 4  ;;  %v1454_v56 = vunpack.c.l.b16 %v2597_v18 }
  0xbb   : > { %v2604_v22 = vadd.f32 %v596_v19, %v539_v7  ;;  %v1372_v19 = vpack.c.b16 %v1368_v63, %v1235_v38  ;;  %v2647_v38 = vld [vmem:[%s2277_s8 + $0xf8] sm:$0xf] }
  0xbc   : > { %v1553_v25 = vor.u32 %v1552_v3, %v1549_v1  ;;  %v1545_v2 = vsel %vm2296_vm5, %v1540_v8, %v1544_v9  ;;  %v2663_v1 = vld [vmem:[%s2277_s8 + $0x100] sm:$0xf] }
  0xbd   : > { %v410_v27 = vpop.f32.mrf.mxu0  ;;  %v476_v32 = vpop.f32.mrf.mxu1  ;;  %v1633_v0 = vunpack.c.l.b16 %v1545_v2 }
  0xbe   : > { %v475_v31 = vadd.f32 %v474_v6, %v410_v27  ;;  %v1530_v6 = vrot.slane %v1528_v58, 5 }
  0xbf   : > { %2081 = vmatmul.msk.bf16.gmra.mxu3 %vm371_vm2, %v1371_v23 }
  0xc0   : > { %2066 = vmatmul.msk.bf16.gmra.mxu0 %vm371_vm2, %v1060_v21  ;;  %v540_v33 = vadd.f32 %v526_v17, %v475_v31  ;;  %v1061_v17 = vpack.c.b16 %v1057_v20, %v1056_v55  ;;  %v1531_v23 = vsel %vm2296_vm5, %v1526_v4, %v1530_v6  ;;  %v1564_v31 = vshll.u32 %v2630_v12, 16 }
  0xc1   : > { %v1456_v55 = vunpack.c.l.b16 %v2616_v43  ;;  %v1632_v35 = vunpack.c.l.b16 %v1531_v23  ;;  %v1554_v20 = vrot.slane %v1553_v25, 4  ;;  %v1462_v4 = vpack.c.b16 %v1455_v10, %v1454_v56 }
  0xc2   : > { %v528_v41 = vpop.f32.mrf.mxu2  ;;  %v599_v50 = vpop.f32.mrf.mxu3  ;;  %v1566_v39 = vrot.slane %v1564_v31, 5  ;;  %v1458_v23 = vunpack.c.l.b16 %v2647_v38  ;;  %v1460_v43 = vunpack.c.l.b16 %v2677_v30 }
  0xc3   : > { %v2620_v52 = vadd.f32 %v599_v50, %v540_v33  ;;  %v1700_v13 = vpack.c.b16 %v1456_v55, %v1455_v10  ;;  %v1640_v45 = vpack.c.b16 %v1633_v0, %v1632_v35  ;;  %v1559_v46 = vsel %vm2296_vm5, %v1554_v20, %v1558_v36  ;;  %v2094_v35 = vld [vmem:[%s2277_s8 + $0x104] sm:$0x1] }
  0xc4   : > { %v1575_v50 = vshrl.u32 %v2647_v38, 16  ;;  %v1567_v24 = vor.u32 %v1566_v39, %v1563_v14  ;;  %v1634_v57 = vunpack.c.l.b16 %v1559_v46  ;;  %v1603_v14 = vshrl.u32 %v2677_v30, 16 }
  0xc5   : > { %v412_v48 = vpop.f32.mrf.mxu0  ;;  %v479_v59 = vpop.f32.mrf.mxu1  ;;  %v1606_v39 = vshll.u32 %v2677_v30, 16 }
  0xc6   : > { %v477_v34 = vadd.f32 %v476_v32, %v412_v48  ;;  %v1570_v48 = vshll.u32 %v2090_v42, 16  ;;  %v1577_v58 = vrot.slane %v1575_v50, 4  ;;  %v1568_v60 = vrot.slane %v1567_v24, 4 }
  0xc7   : > { %2077 = vmatmul.msk.bf16.gmra.mxu2 %vm371_vm2, %v1299_v28  ;;  %v1578_v28 = vshll.u32 %v2647_v38, 16  ;;  %v1773_v6 = vpack.c.b16 %v1634_v57, %v1633_v0  ;;  %v1605_v50 = vrot.slane %v1603_v14, 4 }
  0xc8   : > { %v541_v62 = vadd.f32 %v528_v41, %v477_v34  ;;  %2072 = vmatmul.msk.bf16.gmra.mxu1 %vm371_vm2, %v1239_v53  ;;  %v1572_v61 = vrot.slane %v1570_v48, 5 }
  0xc9   : > { %v1580_v34 = vrot.slane %v1578_v28, 5  ;;  %v1608_v28 = vrot.slane %v1606_v39, 5 }
  0xca   : > { %v531_v7 = vpop.f32.mrf.mxu2  ;;  %v601_v11 = vpop.f32.mrf.mxu3 }
  0xcb   : > { %v2632_v16 = vadd.f32 %v601_v11, %v541_v62  ;;  %v2092_v62 = vld [vmem:[%s2277_s8 + $0xfc] sm:$0x1]  ;;  %v1581_v8 = vor.u32 %v1580_v34, %v1577_v58  ;;  %v1573_v11 = vsel %vm2296_vm5, %v1568_v60, %v1572_v61  ;;  %v1609_v60 = vor.u32 %v1608_v28, %v1605_v50 }
  0xcc   : > { %v1584_v9 = vshll.u32 %v2092_v62, 16  ;;  %v1635_v26 = vunpack.c.l.b16 %v1573_v11 }
  0xcd   : > { %v415_v21 = vpop.f32.mrf.mxu0  ;;  %v481_v29 = vpop.f32.mrf.mxu1 }
  0xce   : > { %v480_v27 = vadd.f32 %v479_v59, %v415_v21  ;;  %v1457_v21 = vunpack.c.l.b16 %v2630_v12  ;;  %v1641_v36 = vpack.c.b16 %v1635_v26, %v1634_v57  ;;  %v2693_v57 = vld [vmem:[%s2277_s8 + $0x110] sm:$0xf] }
  0xcf   : > { %2082 = vmatmul.msk.bf16.gmra.mxu3 %vm371_vm2, %v1372_v19  ;;  %v1592_v19 = vshll.u32 %v2663_v1, 16 }
  0xd0   : > { %2067 = vmatmul.msk.bf16.gmra.mxu0 %vm371_vm2, %v1061_v17  ;;  %v542_v32 = vadd.f32 %v531_v7, %v480_v27  ;;  %v1589_v17 = vshrl.u32 %v2663_v1, 16  ;;  %v1586_v27 = vrot.slane %v1584_v9, 5  ;;  %v1701_v12 = vpack.c.b16 %v1458_v23, %v1457_v21 }
  0xd1   : > { %v1594_v10 = vrot.slane %v1592_v19, 5  ;;  %v1463_v58 = vpack.c.b16 %v1457_v21, %v1456_v55 }
  0xd2   : > { %v533_v33 = vpop.f32.mrf.mxu2  ;;  %v604_v40 = vpop.f32.mrf.mxu3  ;;  %v1591_v31 = vrot.slane %v1589_v17, 4  ;;  %v2099_v17 = vld [vmem:[%s2277_s8 + $0x118] sm:$0xf] }
  0xd3   : > { %v2652_v41 = vadd.f32 %v604_v40, %v542_v32 }
  0xd4   : > { %v1595_v42 = vor.u32 %v1594_v10, %v1591_v31  ;;  %v1757_v31 = vshrl.u32 %v2099_v17, 16  ;;  %v1760_v10 = vshll.u32 %v2099_v17, 16 }
  0xd5   : > { %v417_v44 = vpop.f32.mrf.mxu0  ;;  %v860_v53 = vpop.f32.mrf.mxu1 }
  0xd6   : > { %v482_v51 = vadd.f32 %v481_v29, %v417_v44  ;;  %v1598_v44 = vshll.u32 %v2094_v35, 16  ;;  %v1596_v24 = vrot.slane %v1595_v42, 4  ;;  %v1759_v14 = vrot.slane %v1757_v31, 4 }
  0xd7   : > { %2112 = vmatmul.msk.bf16.vlgmr.msrb.gmra.mxu2 %vm371_vm2, %v1700_v13  ;;  %v1762_v39 = vrot.slane %v1760_v10, 5 }
  0xd8   : > { %v543_v54 = vadd.f32 %v533_v33, %v482_v51  ;;  %2107 = vmatmul.msk.bf16.vlgmr.msrb.gmra.mxu1 %vm371_vm2, %v1640_v45  ;;  %v1600_v48 = vrot.slane %v1598_v44, 5 }
  0xda   : > { %v920_v59 = vpop.f32.mrf.mxu2  ;;  %v606_v63 = vpop.f32.mrf.mxu3 }
  0xdb   : > { %v2665_v3 = vadd.f32 %v606_v63, %v543_v54  ;;  %v2096_v54 = vld [vmem:[%s2277_s8 + $0x10c] sm:$0x1] }
  0xdc   : > { %v1612_v61 = vshll.u32 %v2096_v54, 16 }
  0xdd   : > { %v682_v7 = vpop.f32.mrf.mxu0  ;;  %v862_v5 = vpop.f32.mrf.mxu1 }
  0xde   : > { %v702_v18 = vadd.f32 %v682_v7, %v2561_v15  ;;  %v1582_v15 = vrot.slane %v1581_v8, 4  ;;  %v1620_v7 = vshll.u32 %v2693_v57, 16  ;;  %v1459_v8 = vunpack.c.l.b16 %v2663_v1  ;;  %v2098_v1 = vld [vmem:[%s2277_s8 + $0x114] sm:$0x1] }
  0xdf   : > { %2117 = vmatmul.msk.bf16.vlgmr.msrb.gmra.mxu3 %vm371_vm2, %v1773_v6  ;;  %v1617_v6 = vshrl.u32 %v2693_v57, 16 }
  0xe0   : > { %v880_v25 = vadd.f32 %v860_v53, %v702_v18  ;;  %2102 = vmatmul.msk.bf16.vlgmr.msrb.gmra.mxu0 %vm371_vm2, %v1462_v4  ;;  %v1587_v33 = vsel %vm2296_vm5, %v1582_v15, %v1586_v27  ;;  %v1601_v4 = vsel %vm2296_vm5, %v1596_v24, %v1600_v48  ;;  %v1614_v18 = vrot.slane %v1612_v61, 5 }
  0xe1   : > { %v1636_v46 = vunpack.c.l.b16 %v1587_v33  ;;  %v1637_v9 = vunpack.c.l.b16 %v1601_v4  ;;  %v1619_v19 = vrot.slane %v1617_v6, 4  ;;  %v1622_v21 = vrot.slane %v1620_v7, 5 }
  0xe2   : > { %v922_v29 = vpop.f32.mrf.mxu2  ;;  %v940_v2 = vadd.f32 %v920_v59, %v880_v25  ;;  %v993_v32 = vpop.f32.mrf.mxu3 }
  0xe3   : > { %v1774_v34 = vpack.c.b16 %v1636_v46, %v1635_v26  ;;  %v1702_v26 = vpack.c.b16 %v1460_v43, %v1459_v8  ;;  %v1623_v35 = vor.u32 %v1622_v21, %v1619_v19 }
  0xe4   : > { %v2682_v0 = vadd.f32 %v993_v32, %v940_v2 }
  0xe5   : > { %v684_v20 = vpop.f32.mrf.mxu0  ;;  %v865_v13 = vpop.f32.mrf.mxu1  ;;  %v1624_v42 = vrot.slane %v1623_v35, 4 }
  0xe6   : > { %v703_v40 = vadd.f32 %v684_v20, %v2573_v37  ;;  %v1626_v20 = vshll.u32 %v2098_v1, 16 }
  0xe7   : > { %2113 = vmatmul.msk.bf16.gmra.mxu2 %vm371_vm2, %v1701_v12 }
  0xe8   : > { %v881_v45 = vadd.f32 %v862_v5, %v703_v40  ;;  %2108 = vmatmul.msk.bf16.gmra.mxu1 %vm371_vm2, %v1641_v36  ;;  %v1628_v44 = vrot.slane %v1626_v20, 5 }
  0xea   : > { %v925_v51 = vpop.f32.mrf.mxu2  ;;  %v941_v53 = vadd.f32 %v922_v29, %v881_v45  ;;  %v995_v56 = vpop.f32.mrf.mxu3  ;;  %v1642_v29 = vpack.c.b16 %v1637_v9, %v1636_v46  ;;  %v2100_v45 = vld [vmem:[%s2277_s8 + $0x11c] sm:$0x1] }
  0xeb   : > { %v1766_v24 = vshll.u32 %v2100_v45, 16 }
  0xec   : > { %v2695_v37 = vadd.f32 %v995_v56, %v941_v53  ;;  %v1763_v53 = vor.u32 %v1762_v39, %v1759_v14  ;;  %v1629_v56 = vsel %vm2296_vm5, %v1624_v42, %v1628_v44 }
  0xed   : > { %v687_v59 = vpop.f32.mrf.mxu0  ;;  %v867_v63 = vpop.f32.mrf.mxu1  ;;  %v1639_v38 = vunpack.c.l.b16 %v1629_v56 }
  0xee   : > { %v704_v62 = vadd.f32 %v687_v59, %v2589_v49  ;;  %v1610_v49 = vrot.slane %v1609_v60, 4  ;;  %v1768_v60 = vrot.slane %v1766_v24, 5 }
  0xef   : > { %2118 = vmatmul.msk.bf16.gmra.mxu3 %vm371_vm2, %v1774_v34  ;;  %v1699_v34 = vunpack.c.l.b16 %v2099_v17 }
  0xf0   : > { %v882_v55 = vadd.f32 %v865_v13, %v704_v62  ;;  %2103 = vmatmul.msk.bf16.gmra.mxu0 %vm371_vm2, %v1463_v58  ;;  %v1615_v2 = vsel %vm2296_vm5, %v1610_v49, %v1614_v18  ;;  %v1461_v58 = vunpack.c.l.b16 %v2693_v57 }
  0xf1   : > { %v1638_v33 = vunpack.c.l.b16 %v1615_v2 }
  0xf2   : > { %v927_v5 = vpop.f32.mrf.mxu2  ;;  %v942_v11 = vadd.f32 %v925_v51, %v882_v55  ;;  %v998_v25 = vpop.f32.mrf.mxu3  ;;  %v1703_v4 = vpack.c.b16 %v1699_v34, %v1461_v58  ;;  %v1465_v19 = vpack.c.b16 %v1461_v58, %v1460_v43 }
  0xf3   : > { %v1775_v28 = vpack.c.b16 %v1638_v33, %v1637_v9  ;;  %v1643_v7 = vpack.c.b16 %v1639_v38, %v1638_v33 }
  0xf4   : > { %v2712_v15 = vadd.f32 %v998_v25, %v942_v11 }
  0xf5   : > { %v689_v27 = vpop.f32.mrf.mxu0  ;;  %v870_v12 = vpop.f32.mrf.mxu1 }
  0xf6   : > { %v705_v32 = vadd.f32 %v689_v27, %v2604_v22  ;;  %v1464_v22 = vpack.c.b16 %v1459_v8, %v1458_v23  ;;  %v1764_v23 = vrot.slane %v1763_v53, 4 }
  0xf7   : > { %2114 = vmatmul.msk.bf16.gmra.mxu2 %vm371_vm2, %v1702_v26 }
  0xf8   : > { %v883_v36 = vadd.f32 %v867_v63, %v705_v32  ;;  %2109 = vmatmul.msk.bf16.gmra.mxu1 %vm371_vm2, %v1642_v29  ;;  %v1769_v8 = vsel %vm2296_vm5, %v1764_v23, %v1768_v60 }
  0xf9   : > { %v1772_v49 = vunpack.c.l.b16 %v1769_v8 }
  0xfa   : > { %v930_v40 = vpop.f32.mrf.mxu2  ;;  %v943_v13 = vadd.f32 %v927_v5, %v883_v36  ;;  %v1000_v46 = vpop.f32.mrf.mxu3 }
  0xfb   : > { %v1776_v21 = vpack.c.b16 %v1772_v49, %v1639_v38 }
  0xfc   : > { %v2720_v50 = vadd.f32 %v1000_v46, %v943_v13 }
  0xfd   : > { %v692_v51 = vpop.f32.mrf.mxu0  ;;  %v872_v54 = vpop.f32.mrf.mxu1 }
  0xfe   : > { %v706_v48 = vadd.f32 %v692_v51, %v2620_v52 }
  0xff   : > { %2119 = vmatmul.msk.bf16.gmra.mxu3 %vm371_vm2, %v1775_v28 }
 0x100   : > { %v884_v59 = vadd.f32 %v870_v12, %v706_v48  ;;  %2104 = vmatmul.msk.bf16.gmra.mxu0 %vm371_vm2, %v1464_v22 }
 0x102   : > { %v932_v61 = vpop.f32.mrf.mxu2  ;;  %v944_v62 = vadd.f32 %v930_v40, %v884_v59  ;;  %v1003_v63 = vpop.f32.mrf.mxu3 }
 0x104   : > { %v1017_v52 = vadd.f32 %v1003_v63, %v944_v62 }
 0x105   : > { %v694_v6 = vpop.f32.mrf.mxu0  ;;  %v875_v55 = vpop.f32.mrf.mxu1 }
 0x106   : > { %v707_v57 = vadd.f32 %v694_v6, %v2632_v16 }
 0x107   : > { %2115 = vmatmul.msk.bf16.gmra.mxu2 %vm371_vm2, %v1703_v4 }
 0x108   : > { %v885_v9 = vadd.f32 %v872_v54, %v707_v57  ;;  %2110 = vmatmul.msk.bf16.gmra.mxu1 %vm371_vm2, %v1643_v7 }
 0x10a   : > { %v935_v18 = vpop.f32.mrf.mxu2  ;;  %v945_v5 = vadd.f32 %v932_v61, %v885_v9  ;;  %v1005_v11 = vpop.f32.mrf.mxu3 }
 0x10c   : > { %v2735_v17 = vadd.f32 %v1005_v11, %v945_v5 }
 0x10d   : > { %v697_v47 = vpop.f32.mrf.mxu0  ;;  %v877_v16 = vpop.f32.mrf.mxu1 }
 0x10e   : > { %v708_v25 = vadd.f32 %v697_v47, %v2652_v41 }
 0x10f   : > { %2120 = vmatmul.msk.bf16.gmra.mxu3 %vm371_vm2, %v1776_v21 }
 0x110   : > { %v886_v26 = vadd.f32 %v875_v55, %v708_v25  ;;  %2105 = vmatmul.msk.bf16.gmra.mxu0 %vm371_vm2, %v1465_v19 }
 0x112   : > { %v937_v1 = vpop.f32.mrf.mxu2  ;;  %v946_v27 = vadd.f32 %v935_v18, %v886_v26  ;;  %v1008_v29 = vpop.f32.mrf.mxu3 }
 0x114   : > { %v1019_v2 = vadd.f32 %v1008_v29, %v946_v27 }
 0x115   : > { %v699_v31 = vpop.f32.mrf.mxu0  ;;  %v1264_v32 = vpop.f32.mrf.mxu1 }
 0x116   : > { %v709_v10 = vadd.f32 %v699_v31, %v2665_v3 }
 0x118   : > { %v887_v30 = vadd.f32 %v877_v16, %v709_v10 }
 0x11a   : > { %v1324_v43 = vpop.f32.mrf.mxu2  ;;  %v947_v12 = vadd.f32 %v937_v1, %v887_v30  ;;  %v1010_v35 = vpop.f32.mrf.mxu3 }
 0x11c   : > { %v2743_v20 = vadd.f32 %v1010_v35, %v947_v12 }
 0x11d   : > { %v1086_v41 = vpop.f32.mrf.mxu0  ;;  %v1266_v33 = vpop.f32.mrf.mxu1 }
 0x11e   : > { %v1106_v36 = vadd.f32 %v1086_v41, %v2682_v0 }
 0x120   : > { %v1284_v14 = vadd.f32 %v1264_v32, %v1106_v36  ;;  %v2771_v36 = vld [vmem:[%s2815_s2] ss:$0 sm:$0xff] }
 0x122   : > { %v1326_v39 = vpop.f32.mrf.mxu2  ;;  %v1344_v40 = vadd.f32 %v1324_v43, %v1284_v14  ;;  %v1397_v13 = vpop.f32.mrf.mxu3 }
 0x124   : > { %v1417_v42 = vadd.f32 %v1397_v13, %v1344_v40 }
 0x125   : > { %v1088_v44 = vpop.f32.mrf.mxu0  ;;  %v1269_v45 = vpop.f32.mrf.mxu1 }
 0x126   : > { %v1107_v25 = vadd.f32 %v1088_v44, %v2695_v37 }
 0x128   : > { %v1285_v1 = vadd.f32 %v1266_v33, %v1107_v25 }
 0x12a   : > { %v1329_v46 = vpop.f32.mrf.mxu2  ;;  %v1399_v3 = vpop.f32.mrf.mxu3  ;;  %v1345_v31 = vadd.f32 %v1326_v39, %v1285_v1 }
 0x12c   : > { %v1418_v12 = vadd.f32 %v1399_v3, %v1345_v31 }
 0x12d   : > { %v1091_v22 = vpop.f32.mrf.mxu0  ;;  %v1271_v51 = vpop.f32.mrf.mxu1 }
 0x12e   : > { %v1108_v28 = vadd.f32 %v1091_v22, %v2712_v15 }
 0x130   : > { %v1286_v53 = vadd.f32 %v1269_v45, %v1108_v28 }
 0x132   : > { %v1331_v24 = vpop.f32.mrf.mxu2  ;;  %v1346_v48 = vadd.f32 %v1329_v46, %v1286_v53  ;;  %v1402_v54 = vpop.f32.mrf.mxu3 }
 0x134   : > { %v1419_v56 = vadd.f32 %v1402_v54, %v1346_v48 }
 0x135   : > { %v1093_v0 = vpop.f32.mrf.mxu0  ;;  %v1274_v58 = vpop.f32.mrf.mxu1 }
 0x136   : > { %v1109_v33 = vadd.f32 %v1093_v0, %v2720_v50 }
 0x138   : > { %v1287_v45 = vadd.f32 %v1271_v51, %v1109_v33 }
 0x13a   : > { %v1334_v34 = vpop.f32.mrf.mxu2  ;;  %v2747_v59 = vpop.f32.mrf.mxu3  ;;  %v1347_v54 = vadd.f32 %v1331_v24, %v1287_v45 }
 0x13d   : > { %v1096_v38 = vpop.f32.mrf.mxu0  ;;  %v2749_v60 = vpop.f32.mrf.mxu1 }
 0x13e   : > { %v1110_v23 = vadd.f32 %v1096_v38, %v1017_v52 }
 0x140   : > { %v1288_v61 = vadd.f32 %v1274_v58, %v1110_v23 }
 0x142   : > { %v2751_v62 = vpop.f32.mrf.mxu2  ;;  %v1348_v63 = vadd.f32 %v1334_v34, %v1288_v61  ;;  %v1407_v15 = vpop.f32.mrf.mxu3  ;;  %v1420_v61 = vadd.f32 %v2747_v59, %v1347_v54 }
 0x144   : > { %v2753_v4 = vadd.f32 %v1407_v15, %v1348_v63 }
 0x145   : > { %v1098_v6 = vpop.f32.mrf.mxu0  ;;  %v1279_v7 = vpop.f32.mrf.mxu1 }
 0x14a   : > { %v1339_v8 = vpop.f32.mrf.mxu2  ;;  %v2755_v57 = vpop.f32.mrf.mxu3 }
 0x14d   : > { %v1101_v55 = vpop.f32.mrf.mxu0  ;;  %v2757_v49 = vpop.f32.mrf.mxu1 }
 0x14e   : > { %v1112_v9 = vadd.f32 %v1101_v55, %v1019_v2 }
 0x150   : > { %v1290_v18 = vadd.f32 %v1279_v7, %v1112_v9  ;;  %v1111_v7 = vadd.f32 %v1098_v6, %v2735_v17 }
 0x152   : > { %v2759_v52 = vpop.f32.mrf.mxu2  ;;  %v1350_v5 = vadd.f32 %v1339_v8, %v1290_v18  ;;  %v1412_v11 = vpop.f32.mrf.mxu3 }
 0x154   : > { %v2761_v19 = vadd.f32 %v1412_v11, %v1350_v5 }
 0x155   : > { %v2763_v21 = vpop.f32.mrf.mxu0  ;;  %v1668_v47 = vpop.f32.mrf.mxu1 }
 0x15a   : > { %v1728_v16 = vpop.f32.mrf.mxu2  ;;  %v2766_v26 = vpop.f32.mrf.mxu3 }
 0x15d   : > { %v1490_v27 = vpop.f32.mrf.mxu0  ;;  %v1670_v2 = vpop.f32.mrf.mxu1 }
 0x15e   : > { %v1510_v29 = vadd.f32 %v1490_v27, %v1417_v42 }
 0x160   : > { %v1688_v10 = vadd.f32 %v1668_v47, %v1510_v29  ;;  %v1289_v47 = vadd.f32 %v2749_v60, %v1111_v7 }
 0x162   : > { %v1730_v32 = vpop.f32.mrf.mxu2  ;;  %v1748_v30 = vadd.f32 %v1728_v16, %v1688_v10  ;;  %v1801_v43 = vpop.f32.mrf.mxu3  ;;  %v1349_v29 = vadd.f32 %v2751_v62, %v1289_v47 }
 0x164   : > { %v1821_v41 = vadd.f32 %v1801_v43, %v1748_v30  ;;  %v1422_v43 = vadd.f32 %v2755_v57, %v1349_v29 }
 0x165   : > { %v1492_v35 = vpop.f32.mrf.mxu0  ;;  %v1673_v14 = vpop.f32.mrf.mxu1 }
 0x166   : > { %v1511_v37 = vadd.f32 %v1492_v35, %v1418_v12  ;;  %v1833_v39 = vadd.f32 %v2771_v36, %v1821_v41 }
 0x168   : > { %v1689_v40 = vadd.f32 %v1670_v2, %v1511_v37  ;;  %v1841_v22 = vmul.f32 0.01, %v1833_v39 }
 0x16a   : > { %v1733_v13 = vpop.f32.mrf.mxu2  ;;  %v1749_v42 = vadd.f32 %v1730_v32, %v1689_v40  ;;  %v1803_v44 = vpop.f32.mrf.mxu3  ;;  %v1849_v38 = vmax.f32 %v1833_v39, %v1841_v22 }
 0x16c   : > { %v1822_v46 = vadd.f32 %v1803_v44, %v1749_v42 }
 0x16d   : > { %v1495_v3 = vpop.f32.mrf.mxu0  ;;  %v1675_v48 = vpop.f32.mrf.mxu1 }
 0x16e   : > { %v1834_v28 = vadd.f32 %v2771_v36, %v1822_v46  ;;  %v1512_v53 = vadd.f32 %v1495_v3, %v1419_v56 }
 0x170   : > { %v1842_v58 = vmul.f32 0.01, %v1834_v28  ;;  %v1690_v34 = vadd.f32 %v1673_v14, %v1512_v53 }
 0x172   : > { %v1850_v50 = vmax.f32 %v1834_v28, %v1842_v58  ;;  %v1735_v0 = vpop.f32.mrf.mxu2  ;;  %v1750_v23 = vadd.f32 %v1733_v13, %v1690_v34  ;;  %v1806_v51 = vpop.f32.mrf.mxu3 }
 0x174   : > { %v2127_v63 = vpack.c.bf16 %v1850_v50, %v1849_v38  ;;  %v1823_v24 = vadd.f32 %v1806_v51, %v1750_v23 }
 0x175   : > { %v1497_v56 = vpop.f32.mrf.mxu0  ;;  %v1678_v55 = vpop.f32.mrf.mxu1 }
 0x176   : > { %2128 = vst [vmem:[%s2780_s7] sm:$0xff] %v2127_v63   ;;  %v1513_v15 = vadd.f32 %v1497_v56, %v1420_v61  ;;  %v1835_v9 = vadd.f32 %v2771_v36, %v1823_v24 }
 0x178   : > { %v1691_v8 = vadd.f32 %v1675_v48, %v1513_v15  ;;  %v1843_v59 = vmul.f32 0.01, %v1835_v9 }
 0x17a   : > { %v1751_v18 = vadd.f32 %v1735_v0, %v1691_v8  ;;  %v1738_v5 = vpop.f32.mrf.mxu2  ;;  %v1808_v11 = vpop.f32.mrf.mxu3  ;;  %v1851_v2 = vmax.f32 %v1835_v9, %v1843_v59 }
 0x17c   : > { %v1824_v25 = vadd.f32 %v1808_v11, %v1751_v18 }
 0x17d   : > { %v1500_v16 = vpop.f32.mrf.mxu0  ;;  %v1680_v32 = vpop.f32.mrf.mxu1 }
 0x17e   : > { %v1836_v1 = vadd.f32 %v2771_v36, %v1824_v25  ;;  %v1514_v27 = vadd.f32 %v1500_v16, %v2753_v4  ;;  %v1113_v4 = vadd.f32 %v2763_v21, %v2743_v20 }
 0x180   : > { %v1844_v17 = vmul.f32 0.01, %v1836_v1  ;;  %v1692_v6 = vadd.f32 %v1678_v55, %v1514_v27  ;;  %v1291_v39 = vadd.f32 %v2757_v49, %v1113_v4 }
 0x182   : > { %v1852_v31 = vmax.f32 %v1836_v1, %v1844_v17  ;;  %v1752_v10 = vadd.f32 %v1738_v5, %v1692_v6  ;;  %v1811_v30 = vpop.f32.mrf.mxu3  ;;  %v1740_v12 = vpop.f32.mrf.mxu2  ;;  %v1351_v22 = vadd.f32 %v2759_v52, %v1291_v39 }
 0x184   : > { %v2132_v60 = vpack.c.bf16 %v1852_v31, %v1851_v2  ;;  %v1825_v41 = vadd.f32 %v1811_v30, %v1752_v10  ;;  %v1424_v49 = vadd.f32 %v2766_v26, %v1351_v22 }
 0x185   : > { %v1502_v35 = vpop.f32.mrf.mxu0  ;;  %v1683_v42 = vpop.f32.mrf.mxu1 }
 0x186   : > { %2144 = vst [vmem:[%s2780_s7 + $0x8] sm:$0xff] %v2132_v60   ;;  %v1515_v37 = vadd.f32 %v1502_v35, %v1422_v43  ;;  %v1837_v62 = vadd.f32 %v2771_v36, %v1825_v41 }
 0x188   : > { %v1693_v14 = vadd.f32 %v1680_v32, %v1515_v37  ;;  %v1845_v44 = vmul.f32 0.01, %v1837_v62 }
 0x18a   : > { %v1753_v33 = vadd.f32 %v1740_v12, %v1693_v14  ;;  %v1813_v40 = vpop.f32.mrf.mxu3  ;;  %v1743_v3 = vpop.f32.mrf.mxu2  ;;  %v1853_v28 = vmax.f32 %v1837_v62, %v1845_v44 }
 0x18c   : > { %v1826_v13 = vadd.f32 %v1813_v40, %v1753_v33 }
 0x18d   : > { %v1505_v57 = vpop.f32.mrf.mxu0  ;;  %v1685_v0 = vpop.f32.mrf.mxu1 }
 0x18e   : > { %v1838_v45 = vadd.f32 %v2771_v36, %v1826_v13  ;;  %v1516_v46 = vadd.f32 %v1505_v57, %v2761_v19 }
 0x190   : > { %v1846_v20 = vmul.f32 0.01, %v1838_v45  ;;  %v1694_v21 = vadd.f32 %v1683_v42, %v1516_v46 }
 0x192   : > { %v1854_v53 = vmax.f32 %v1838_v45, %v1846_v20  ;;  %v1754_v48 = vadd.f32 %v1743_v3, %v1694_v21  ;;  %v1816_v54 = vpop.f32.mrf.mxu3  ;;  %v1745_v19 = vpop.f32.mrf.mxu2 }
 0x194   : > { %v2137_v58 = vpack.c.bf16 %v1854_v53, %v1853_v28  ;;  %v1827_v38 = vadd.f32 %v1816_v54, %v1754_v48 }
 0x195   : > { %v1507_v34 = vpop.f32.mrf.mxu0 }
 0x196   : > { %2145 = vst [vmem:[%s2780_s7 + $0x10] sm:$0xff] %v2137_v58   ;;  %v1517_v50 = vadd.f32 %v1507_v34, %v1424_v49  ;;  %v1839_v51 = vadd.f32 %v2771_v36, %v1827_v38 }
 0x198   : > { %v1695_v23 = vadd.f32 %v1685_v0, %v1517_v50  ;;  %v1847_v56 = vmul.f32 0.01, %v1839_v51 }
 0x19a   : > { %v1755_v52 = vadd.f32 %v1745_v19, %v1695_v23  ;;  %v1818_v61 = vpop.f32.mrf.mxu3  ;;  %v1855_v7 = vmax.f32 %v1839_v51, %v1847_v56 }
 0x19c   : > { %v1828_v63 = vadd.f32 %v1818_v61, %v1755_v52 }
 0x19e   : > { %v1840_v24 = vadd.f32 %v2771_v36, %v1828_v63 }
 0x1a0   : > { %v1848_v15 = vmul.f32 0.01, %v1840_v24 }
 0x1a2   : > { %v1856_v26 = vmax.f32 %v1840_v24, %v1848_v15 }
 0x1a4   : > { %v2142_v8 = vpack.c.bf16 %v1856_v26, %v1855_v7 }
 0x1a6   : > { %2146 = vst [vmem:[%s2780_s7 + $0x18] sm:$0xff] %v2142_v8  }
 0x1a7 PF: > { %s13_s14 = sadd.s32 1, %s2196_s14   ;;  %s2819_s12 = smov %s2192_s13 }
 0x1a8   : > { %p10_p5 = scmp.ge.s32.totalorder %s13_s14, 4   ;;  %s2820_s13 = smov %s2822_s15 }
 0x1aa   :  { %12 = sbr.rel (!%p10_p5) target bundleno = 2 (0x2), region = 86 }

// kernel: _lambda_.8
= control target key start
LH: loop header
LB: loop body
LE: loop exit
PB: predicated region body
PF: predicated region fallthrough
CT: control target
= control target key end

     0   :  { %s1801_s12 = smov 0   ;;  %s1803_s13 = smov 0   ;;  %s2154_s0 = inlined_call_operand.vmem [shape: bf16[2,1,4,4,128], index: 0, kind: input, shape index: {}]   ;;  %s2155_s1 = inlined_call_operand.vmem [shape: bf16[3,3,128,128], index: 1, kind: input, shape index: {}]   ;;  %s2156_s2 = inlined_call_operand.vmem [shape: f32[1,128], index: 2, kind: input, shape index: {}]   ;;  %s2157_s3 = inlined_call_operand.vmem [shape: bf16[2,2,2,128], index: 3, kind: output, shape index: {}]  }
   0x1   :  { %s1805_s14 = smov 0  }
   0x2 LB: > { %s22_s15 = sadd.s32 1, %s1775_s13  ;;  %p1233_p0 = scmp.ge.s32.totalorder %s1779_s14, 1  ;;  %s1779_s14 = sphi %s1805_s14, %s13_s14   ;;  %s1775_s13 = sphi %s1803_s13, %s2161_s13   ;;  %s1771_s12 = sphi %s1801_s12, %s2160_s12  }
   0x3   : > { %p23_p1 = scmp.ge.s32.totalorder %s22_s15, 2  ;;  %p168_p2 = scmp.lt.s32.totalorder %s1779_s14, 3 }
   0x5   : > { %s2163_s15 = smov (%p23_p1, %s22_s15), 0  ;;  %p169_p3 = pnand %p1233_p0, %p168_p2 }
   0x6   : > { %p201_p4 = scmp.lt.s32.totalorder (!%p169_p3), %s1771_s12, 1 }
   0x7   : > { %172 = sbr.rel (%p169_p3) target bundleno = 271 (0x10f), region = 32 }
   0xc   : > { %v1675_v0 = vld [vmem:[%s2155_s1 + $0x78] sm:$0xff]  ;;  %v1674_v3 = vld [vmem:[%s2155_s1 + $0x70] sm:$0xff]  ;;  %s2165_s12 = smov (!%p201_p4, %s1771_s12), 1  ;;  %v1673_v8 = vld [vmem:[%s2155_s1 + $0x68] sm:$0xff]  ;;  %vm248_vm0 = vcmask 1040384   ;;  %vm252_vm1 = vcmask 1042434  }
   0xd   : > { %v1667_v1 = vld [vmem:[%s2155_s1 + $0x38] sm:$0xff]  ;;  %381 = vmatpush.bf16.msra.mxu0 %v1675_v0  ;;  %v1666_v4 = vld [vmem:[%s2155_s1 + $0x30] sm:$0xff]  ;;  %v1665_v9 = vld [vmem:[%s2155_s1 + $0x28] sm:$0xff]  ;;  %s1659_s17 = sshll.u32 %s2165_s12, 3  ;;  %vm256_vm2 = vcmask 1041408   ;;  %vm258_vm3 = vcmask 1041409  }
   0xe   : > { %v1683_v2 = vld [vmem:[%s2155_s1 + $0xb8] sm:$0xff]  ;;  %447 = vmatpush.bf16.msra.mxu1 %v1667_v1  ;;  %v1682_v5 = vld [vmem:[%s2155_s1 + $0xb0] sm:$0xff]  ;;  %v1681_v10 = vld [vmem:[%s2155_s1 + $0xa8] sm:$0xff]  ;;  %s1870_s26 = scalar_lea.vmem %s2154_s0, %s1659_s17  ;;  %vm260_vm4 = vcmask 1043459   ;;  %vm262_vm5 = vcmask 1042433   ;;  %s1236_s4 = sshll.u32 %s2165_s12, 1 }
   0xf   : > { %536 = vmatpush.bf16.msra.mxu2 %v1683_v2  ;;  %v1691_v6 = vld [vmem:[%s2155_s1 + $0xf8] sm:$0xff]  ;;  %v1690_v7 = vld [vmem:[%s2155_s1 + $0xf0] sm:$0xff]  ;;  %v1689_v11 = vld [vmem:[%s2155_s1 + $0xe8] sm:$0xff]  ;;  %vm278_vm6 = vsmask.f32 256  ;;  %s219_s7 = scalar_lea.vmem %s2157_s3, %s1236_s4 }
  0x10   : > { %621 = vmatpush.bf16.msra.mxu3 %v1691_v6  ;;  %v1672_v12 = vld [vmem:[%s2155_s1 + $0x60] sm:$0xff]  ;;  %v1671_v15 = vld [vmem:[%s2155_s1 + $0x58] sm:$0xff]  ;;  %vm279_vm7 = vsmask.f32 1284  ;;  %vm281_vm8 = vsmask.f32 2312 }
  0x11   : > { %382 = vmatpush.bf16.msra.mxu0 %v1674_v3  ;;  %v1664_v13 = vld [vmem:[%s2155_s1 + $0x20] sm:$0xff]  ;;  %v1663_v17 = vld [vmem:[%s2155_s1 + $0x18] sm:$0xff]  ;;  %vm283_vm9 = vsmask.f32 3340  ;;  %vm285_vm10 = vsmask.f32 4368  ;;  %vm280_vm12 = vmor %vm278_vm6, %vm279_vm7 }
  0x12   : > { %448 = vmatpush.bf16.msra.mxu1 %v1666_v4  ;;  %v1680_v14 = vld [vmem:[%s2155_s1 + $0xa0] sm:$0xff]  ;;  %v1679_v18 = vld [vmem:[%s2155_s1 + $0x98] sm:$0xff]  ;;  %v1670_v20 = vld [vmem:[%s2155_s1 + $0x50] sm:$0xff]  ;;  %vm287_vm11 = vsmask.f32 5396 }
  0x13   : > { %537 = vmatpush.bf16.msra.mxu2 %v1682_v5  ;;  %v1688_v16 = vld [vmem:[%s2155_s1 + $0xe0] sm:$0xff]  ;;  %v1662_v21 = vld [vmem:[%s2155_s1 + $0x10] sm:$0xff]  ;;  %v1687_v22 = vld [vmem:[%s2155_s1 + $0xd8] sm:$0xff]  ;;  %vm289_vm14 = vsmask.f32 6424 }
  0x14   : > { %622 = vmatpush.bf16.msra.mxu3 %v1690_v7  ;;  %v1885_v19 = vld [vmem:[%s1870_s26] sm:$0x3]  ;;  %v1897_v23 = vld [vmem:[%s1870_s26 + $0x2] sm:$0x3]  ;;  %vm282_vm13 = vmor %vm280_vm12, %vm281_vm8  ;;  %vm291_vm15 = vsmask.f32 7452 }
  0x15   : > { %383 = vmatpush.bf16.msra.mxu0 %v1673_v8  ;;  %v242_v24 = vrot.slane %v1885_v19, 1  ;;  %v243_v25 = vrot.slane %v1885_v19, 2  ;;  %v244_v26 = vrot.slane %v1885_v19, 3  ;;  %v245_v27 = vrot.slane %v1897_v23, 1  ;;  %v1678_v30 = vld [vmem:[%s2155_s1 + $0x90] sm:$0xff]  ;;  %vm284_vm6 = vmor %vm282_vm13, %vm283_vm9  ;;  %v1669_v45 = vld [vmem:[%s2155_s1 + $0x48] sm:$0xff] }
  0x16   : > { %449 = vmatpush.bf16.msra.mxu1 %v1665_v9  ;;  %v246_v28 = vrot.slane %v1897_v23, 2  ;;  %v247_v29 = vrot.slane %v1897_v23, 3  ;;  %vm286_vm7 = vmor %vm284_vm6, %vm285_vm10  ;;  %v1686_v39 = vld [vmem:[%s2155_s1 + $0xd0] sm:$0xff]  ;;  %v1928_v40 = vld [vmem:[%s1870_s26 + $0x6] sm:$0x3] }
  0x17   : > { %538 = vmatpush.bf16.msra.mxu2 %v1681_v10  ;;  %v251_v31 = vsel %vm248_vm0, %v1885_v19, %v242_v24  ;;  %v255_v32 = vsel %vm252_vm1, %v243_v25, %v244_v26  ;;  %v259_v33 = vsel %vm258_vm3, %v1885_v19, %v242_v24  ;;  %v261_v34 = vsel %vm260_vm4, %v243_v25, %v244_v26  ;;  %vm288_vm8 = vmor %vm286_vm7, %vm287_vm11  ;;  %v1661_v46 = vld [vmem:[%s2155_s1 + $0x8] sm:$0xff]  ;;  %v1668_v59 = vld [vmem:[%s2155_s1 + $0x40] sm:$0xff] }
  0x18   : > { %623 = vmatpush.bf16.msra.mxu3 %v1689_v11  ;;  %v257_v35 = vsel %vm256_vm2, %v251_v31, %v255_v32  ;;  %v263_v36 = vsel %vm262_vm5, %v259_v33, %v261_v34  ;;  %v268_v37 = vsel %vm248_vm0, %v1897_v23, %v245_v27  ;;  %v271_v38 = vsel %vm252_vm1, %v246_v28, %v247_v29  ;;  %vm290_vm9 = vmor %vm288_vm8, %vm289_vm14  ;;  %v1677_v49 = vld [vmem:[%s2155_s1 + $0x88] sm:$0xff]  ;;  %v1660_v60 = vld [vmem:[%s2155_s1] sm:$0xff] }
  0x19   : > { %384 = vmatpush.bf16.msra.mxu0 %v1672_v12  ;;  %v265_v41 = vrot.slane %v263_v36, 1  ;;  %v272_v42 = vsel %vm256_vm2, %v268_v37, %v271_v38  ;;  %v273_v43 = vsel %vm258_vm3, %v1897_v23, %v245_v27  ;;  %v274_v44 = vsel %vm260_vm4, %v246_v28, %v247_v29  ;;  %vm1947_vm10 = vmor %vm290_vm9, %vm291_vm15  ;;  %v1685_v56 = vld [vmem:[%s2155_s1 + $0xc8] sm:$0xff]  ;;  %v1699_v63 = vld [vmem:[%s2155_s1 + $0x138] sm:$0xff] }
  0x1a   : > { %450 = vmatpush.bf16.msra.mxu1 %v1664_v13  ;;  %v275_v47 = vsel %vm262_vm5, %v273_v43, %v274_v44  ;;  %v293_v48 = vshrl.u32 %v257_v35, 16  ;;  %v301_v53 = vshrl.u32 %v272_v42, 16  ;;  %v919_v54 = vrot.slane %v1928_v40, 1  ;;  %v1676_v0 = vld [vmem:[%s2155_s1 + $0x80] sm:$0xff]  ;;  %v1707_v3 = vld [vmem:[%s2155_s1 + $0x178] sm:$0xff]  ;;  %v1698_v13 = vld [vmem:[%s2155_s1 + $0x130] sm:$0xff] }
  0x1b   : > { %539 = vmatpush.bf16.msra.mxu2 %v1680_v14  ;;  %v277_v50 = vrot.slane %v275_v47, 1  ;;  %v298_v52 = vshll.u32 %v265_v41, 16  ;;  %v920_v55 = vrot.slane %v1928_v40, 2  ;;  %v921_v61 = vrot.slane %v1928_v40, 3  ;;  %v1715_v4 = vld [vmem:[%s2155_s1 + $0x1b8] sm:$0xff]  ;;  %v1684_v7 = vld [vmem:[%s2155_s1 + $0xc0] sm:$0xff] }
  0x1c   : > { %624 = vmatpush.bf16.msra.mxu3 %v1688_v16  ;;  %v923_v62 = vsel %vm248_vm0, %v1928_v40, %v919_v54  ;;  %v928_v2 = vsel %vm258_vm3, %v1928_v40, %v919_v54  ;;  %v1723_v10 = vld [vmem:[%s2155_s1 + $0x1f8] sm:$0xff]  ;;  %v1706_v14 = vld [vmem:[%s2155_s1 + $0x170] sm:$0xff]  ;;  %v1713_v24 = vld [vmem:[%s2155_s1 + $0x1a8] sm:$0xff] }
  0x1d   : > { %385 = vmatpush.bf16.msra.mxu0 %v1671_v15  ;;  %v300_v57 = vsel %vm1947_vm10, %v293_v48, %v298_v52  ;;  %v306_v58 = vshll.u32 %v277_v50, 16  ;;  %v926_v5 = vsel %vm252_vm1, %v920_v55, %v921_v61  ;;  %v929_v6 = vsel %vm260_vm4, %v920_v55, %v921_v61  ;;  %v1714_v15 = vld [vmem:[%s2155_s1 + $0x1b0] sm:$0xff]  ;;  %v1721_v25 = vld [vmem:[%s2155_s1 + $0x1e8] sm:$0xff]  ;;  %v1696_v26 = vld [vmem:[%s2155_s1 + $0x120] sm:$0xff] }
  0x1e   : > { %451 = vmatpush.bf16.msra.mxu1 %v1663_v17  ;;  %327 = vst [vmem:[#allocation1] ss:$9 sm:$0xff] %v300_v57  ;;  %v927_v8 = vsel %vm256_vm2, %v923_v62, %v926_v5  ;;  %v930_v9 = vsel %vm262_vm5, %v928_v2, %v929_v6  ;;  %v1722_v17 = vld [vmem:[%s2155_s1 + $0x1f0] sm:$0xff]  ;;  %v1704_v27 = vld [vmem:[%s2155_s1 + $0x160] sm:$0xff]  ;;  %v1703_v32 = vld [vmem:[%s2155_s1 + $0x158] sm:$0xff] }
  0x1f   : > { %540 = vmatpush.bf16.msra.mxu2 %v1679_v18  ;;  %v1975_v1 = vsel %vm1947_vm10, %v301_v53, %v306_v58  ;;  %v932_v11 = vrot.slane %v930_v9, 1  ;;  %v933_v12 = vshrl.u32 %v927_v8, 16  ;;  %v1712_v28 = vld [vmem:[%s2155_s1 + $0x1a0] sm:$0xff]  ;;  %v1711_v33 = vld [vmem:[%s2155_s1 + $0x198] sm:$0xff]  ;;  %v1694_v34 = vld [vmem:[%s2155_s1 + $0x110] sm:$0xff] }
  0x20   : > { %625 = vmatpush.bf16.msra.mxu3 %v1687_v22  ;;  %330 = vst [vmem:[#allocation1 + $0x1] ss:$9 sm:$0xff] %v1975_v1  ;;  %v1705_v22 = vld [vmem:[%s2155_s1 + $0x168] sm:$0xff]  ;;  %v1720_v29 = vld [vmem:[%s2155_s1 + $0x1e0] sm:$0xff]  ;;  %v1702_v36 = vld [vmem:[%s2155_s1 + $0x150] sm:$0xff] }
  0x21   : > { %386 = vmatpush.bf16.msra.mxu0 %v1670_v20  ;;  %v938_v16 = vshll.u32 %v932_v11, 16  ;;  %v1697_v20 = vld [vmem:[%s2155_s1 + $0x128] sm:$0xff]  ;;  %v2053_v35 = vld [vmem:[%s1870_s26 + $0x4] sm:$0x3]  ;;  %v1710_v37 = vld [vmem:[%s2155_s1 + $0x190] sm:$0xff] }
  0x22   : > { %452 = vmatpush.bf16.msra.mxu1 %v1662_v21  ;;  %v637_v41 = vrot.slane %v2053_v35, 2  ;;  %v638_v42 = vrot.slane %v2053_v35, 3  ;;  %v1693_v43 = vld [vmem:[%s2155_s1 + $0x108] sm:$0xff]  ;;  %v1718_v44 = vld [vmem:[%s2155_s1 + $0x1d0] sm:$0xff]  ;;  %v1692_v50 = vld [vmem:[%s2155_s1 + $0x100] sm:$0xff] }
  0x23   : > { %541 = vmatpush.bf16.msra.mxu2 %v1678_v30  ;;  %v2010_v18 = vsel %vm1947_vm10, %v933_v12, %v938_v16  ;;  %v1695_v30 = vld [vmem:[%s2155_s1 + $0x118] sm:$0xff]  ;;  %v1709_v47 = vld [vmem:[%s2155_s1 + $0x188] sm:$0xff]  ;;  %v1700_v53 = vld [vmem:[%s2155_s1 + $0x140] sm:$0xff] }
  0x24   : > { %626 = vmatpush.bf16.msra.mxu3 %v1686_v39  ;;  %v636_v39 = vrot.slane %v2053_v35, 1  ;;  %v1731_v52 = vld [vmem:[%s2155_s1 + $0x238] sm:$0xff]  ;;  %v1708_v54 = vld [vmem:[%s2155_s1 + $0x180] sm:$0xff]  ;;  %v643_v57 = vsel %vm252_vm1, %v637_v41, %v638_v42  ;;  %v1730_v58 = vld [vmem:[%s2155_s1 + $0x230] sm:$0xff] }
  0x25   : > { %387 = vmatpush.bf16.msra.mxu0 %v1669_v45  ;;  %v1716_v51 = vld [vmem:[%s2155_s1 + $0x1c0] sm:$0xff]  ;;  %v1727_v6 = vld [vmem:[%s2155_s1 + $0x218] sm:$0xff]  ;;  %v1726_v9 = vld [vmem:[%s2155_s1 + $0x210] sm:$0xff] }
  0x26   : > { %453 = vmatpush.bf16.msra.mxu1 %v1661_v46  ;;  %v1701_v46 = vld [vmem:[%s2155_s1 + $0x148] sm:$0xff]  ;;  %v645_v48 = vsel %vm258_vm3, %v2053_v35, %v636_v39 }
  0x27   : > { %542 = vmatpush.bf16.msra.mxu2 %v1677_v49  ;;  %v331_v21 = vld [vmem:[#allocation1] sm:$0xff]  ;;  %v646_v49 = vsel %vm260_vm4, %v637_v41, %v638_v42 }
  0x28   : > { %627 = vmatpush.bf16.msra.mxu3 %v1685_v56  ;;  %394 = vst [vmem:[#allocation1] ss:$9 sm:$0xff] %v1885_v19  ;;  %v647_v55 = vsel %vm262_vm5, %v645_v48, %v646_v49  ;;  %v640_v56 = vsel %vm248_vm0, %v2053_v35, %v636_v39  ;;  %v1756_v41 = vld [vmem:[%s2156_s2] ss:$0 sm:$0xff] }
  0x29   : > { %388 = vmatpush.bf16.msra.mxu0 %v1668_v59  ;;  %396 = vst [vmem:[#allocation1 + $0x1] ss:$9 sm:$0xff] %v1897_v23  ;;  %v649_v59 = vrot.slane %v647_v55, 1  ;;  %v644_v61 = vsel %vm256_vm2, %v640_v56, %v643_v57 }
  0x2a   : > { %454 = vmatpush.bf16.msra.mxu1 %v1660_v60  ;;  %463 = vst [vmem:[#allocation1 + $0x10] sm:$0xff] %v1897_v23  ;;  %v650_v62 = vshrl.u32 %v644_v61, 16 }
  0x2b   : > { %543 = vmatpush.bf16.msra.mxu2 %v1676_v0 }
  0x2c   : > { %628 = vmatpush.bf16.msra.mxu3 %v1684_v7  ;;  %389 = vmatmul.bf16.vlgmr.msra.gmra.mxu0 %v331_v21 }
  0x2d   : > { %729 = vmatpush.bf16.msrb.mxu0 %v1699_v63  ;;  %v655_v63 = vshll.u32 %v649_v59, 16 }
  0x2e   : > { %819 = vmatpush.bf16.msrb.mxu1 %v1707_v3  ;;  %v1717_v3 = vld [vmem:[%s2155_s1 + $0x1c8] sm:$0xff] }
  0x2f   : > { %904 = vmatpush.bf16.msrb.mxu2 %v1715_v4  ;;  %v657_v0 = vsel %vm1947_vm10, %v650_v62, %v655_v63  ;;  %v1729_v4 = vld [vmem:[%s2155_s1 + $0x228] sm:$0xff] }
  0x30   : > { %1012 = vmatpush.bf16.msrb.mxu3 %v1723_v10  ;;  %v397_v31 = vld [vmem:[#allocation1] sm:$0xff] }
  0x31   : > { %730 = vmatpush.bf16.msrb.mxu0 %v1698_v13  ;;  %455 = vmatmul.bf16.vlgmr.msra.gmra.mxu1 %v397_v31  ;;  %460 = vst [vmem:[#allocation1] sm:$0xff] %v1885_v19  ;;  %v1719_v19 = vld [vmem:[%s2155_s1 + $0x1d8] sm:$0xff]  ;;  %v1724_v10 = vld [vmem:[%s2155_s1 + $0x200] sm:$0xff] }
  0x32   : > { %820 = vmatpush.bf16.msrb.mxu1 %v1706_v14  ;;  %v465_v38 = vld [vmem:[#allocation1 + $0x11] ss:$2 sm:$0xff] }
  0x33   : > { %905 = vmatpush.bf16.msrb.mxu2 %v1714_v15 }
  0x34   : > { %1013 = vmatpush.bf16.msrb.mxu3 %v1722_v17 }
  0x35   : > { %731 = vmatpush.bf16.msrb.mxu0 %v1697_v20 }
  0x36   : > { %821 = vmatpush.bf16.msrb.mxu1 %v1705_v22 }
  0x37   : > { %906 = vmatpush.bf16.msrb.mxu2 %v1713_v24 }
  0x38   : > { %1014 = vmatpush.bf16.msrb.mxu3 %v1721_v25  ;;  %v462_v45 = vld [vmem:[#allocation1 + $0x1] ss:$2 sm:$0xff] }
  0x39   : > { %732 = vmatpush.bf16.msrb.mxu0 %v1696_v26  ;;  %483 = vst [vmem:[#allocation1] ss:$9 sm:$0xff] %v462_v45 }
  0x3a   : > { %822 = vmatpush.bf16.msrb.mxu1 %v1704_v27  ;;  %485 = vst [vmem:[#allocation1 + $0x1] ss:$9 sm:$0xff] %v465_v38 }
  0x3b   : > { %907 = vmatpush.bf16.msrb.mxu2 %v1712_v28 }
  0x3c   : > { %1015 = vmatpush.bf16.msrb.mxu3 %v1720_v29 }
  0x3d   : > { %733 = vmatpush.bf16.msrb.mxu0 %v1695_v30 }
  0x3e   : > { %823 = vmatpush.bf16.msrb.mxu1 %v1703_v32 }
  0x3f   : > { %908 = vmatpush.bf16.msrb.mxu2 %v1711_v33 }
  0x40   : > { %1016 = vmatpush.bf16.msrb.mxu3 %v1719_v19 }
  0x41   : > { %734 = vmatpush.bf16.msrb.mxu0 %v1694_v34  ;;  %v486_v60 = vld [vmem:[#allocation1] sm:$0xff] }
  0x42   : > { %824 = vmatpush.bf16.msrb.mxu1 %v1702_v36  ;;  %544 = vmatmul.bf16.vlgmr.msra.gmra.mxu2 %v486_v60  ;;  %567 = vst [vmem:[#allocation1] ss:$9 sm:$0xff] %v1897_v23 }
  0x43   : > { %909 = vmatpush.bf16.msrb.mxu2 %v1710_v37  ;;  %570 = vst [vmem:[#allocation1 + $0x1] ss:$9 sm:$0xff] %v2053_v35 }
  0x44   : > { %1017 = vmatpush.bf16.msrb.mxu3 %v1718_v44 }
  0x45   : > { %735 = vmatpush.bf16.msrb.mxu0 %v1693_v43 }
  0x46   : > { %825 = vmatpush.bf16.msrb.mxu1 %v1701_v46 }
  0x47   : > { %910 = vmatpush.bf16.msrb.mxu2 %v1709_v47 }
  0x48   : > { %1018 = vmatpush.bf16.msrb.mxu3 %v1717_v3 }
  0x49   : > { %736 = vmatpush.bf16.msrb.mxu0 %v1692_v50 }
  0x4a   : > { %826 = vmatpush.bf16.msrb.mxu1 %v1700_v53  ;;  %v571_v2 = vld [vmem:[#allocation1] sm:$0xff] }
  0x4b   : > { %911 = vmatpush.bf16.msrb.mxu2 %v1708_v54  ;;  %629 = vmatmul.bf16.vlgmr.msra.gmra.mxu3 %v571_v2  ;;  %675 = vst [vmem:[#allocation1] ss:$9 sm:$0xff] %v1975_v1  ;;  %v1728_v1 = vld [vmem:[%s2155_s1 + $0x220] sm:$0xff] }
  0x4c   : > { %678 = vst [vmem:[#allocation1 + $0x1] ss:$9 sm:$0xff] %v657_v0  ;;  %1019 = vmatpush.bf16.msrb.mxu3 %v1716_v51 }
  0x4d   : > { %1102 = vmatpush.bf16.msra.mxu0 %v1731_v52  ;;  %746 = vst [vmem:[#allocation1 + $0x10] sm:$0xff] %v2053_v35 }
  0x51   : > { %1103 = vmatpush.bf16.msra.mxu0 %v1730_v58 }
  0x53   : > { %v679_v5 = vld [vmem:[#allocation1] sm:$0xff] }
  0x54   : > { %737 = vmatmul.bf16.vlgmr.msrb.gmra.mxu0 %v679_v5  ;;  %743 = vst [vmem:[#allocation1] sm:$0xff] %v1897_v23  ;;  %v748_v7 = vld [vmem:[#allocation1 + $0x11] ss:$2 sm:$0xff]  ;;  %v1725_v23 = vld [vmem:[%s2155_s1 + $0x208] sm:$0xff] }
  0x55   : > { %1104 = vmatpush.bf16.msra.mxu0 %v1729_v4 }
  0x59   : > { %1105 = vmatpush.bf16.msra.mxu0 %v1728_v1 }
  0x5b   : > { %v745_v8 = vld [vmem:[#allocation1 + $0x1] ss:$2 sm:$0xff] }
  0x5c   : > { %766 = vst [vmem:[#allocation1] ss:$9 sm:$0xff] %v745_v8 }
  0x5d   : > { %1106 = vmatpush.bf16.msra.mxu0 %v1727_v6  ;;  %768 = vst [vmem:[#allocation1 + $0x1] ss:$9 sm:$0xff] %v748_v7 }
  0x61   : > { %1107 = vmatpush.bf16.msra.mxu0 %v1726_v9 }
  0x64   : > { %v769_v11 = vld [vmem:[#allocation1] sm:$0xff] }
  0x65   : > { %1108 = vmatpush.bf16.msra.mxu0 %v1725_v23  ;;  %827 = vmatmul.bf16.vlgmr.msrb.gmra.mxu1 %v769_v11  ;;  %850 = vst [vmem:[#allocation1] ss:$9 sm:$0xff] %v2053_v35 }
  0x66   : > { %853 = vst [vmem:[#allocation1 + $0x1] ss:$9 sm:$0xff] %v1928_v40 }
  0x69   : > { %1109 = vmatpush.bf16.msra.mxu0 %v1724_v10 }
  0x6d   : > { %v854_v12 = vld [vmem:[#allocation1] sm:$0xff] }
  0x6e   : > { %912 = vmatmul.bf16.vlgmr.msrb.gmra.mxu2 %v854_v12  ;;  %958 = vst [vmem:[#allocation1] ss:$9 sm:$0xff] %v657_v0 }
  0x6f   : > { %961 = vst [vmem:[#allocation1 + $0x1] ss:$9 sm:$0xff] %v2010_v18 }
  0x70   : > { %1029 = vst [vmem:[#allocation1 + $0x10] sm:$0xff] %v1928_v40 }
  0x76   : > { %v962_v13 = vld [vmem:[#allocation1] sm:$0xff] }
  0x77   : > { %1020 = vmatmul.bf16.vlgmr.msrb.gmra.mxu3 %v962_v13  ;;  %1026 = vst [vmem:[#allocation1] sm:$0xff] %v2053_v35  ;;  %v1031_v14 = vld [vmem:[#allocation1 + $0x11] ss:$2 sm:$0xff] }
  0x7e   : > { %v1028_v15 = vld [vmem:[#allocation1 + $0x1] ss:$2 sm:$0xff] }
  0x7f   : > { %1049 = vst [vmem:[#allocation1] ss:$9 sm:$0xff] %v1028_v15 }
  0x80   : > { %1051 = vst [vmem:[#allocation1 + $0x1] ss:$9 sm:$0xff] %v1031_v14 }
  0x87   : > { %v1052_v16 = vld [vmem:[#allocation1] sm:$0xff] }
  0x88   : > { %1110 = vmatmul.bf16.vlgmr.msra.gmra.mxu0 %v1052_v16 }
  0xa9   : > { %v390_v17 = vpop.f32.mrf.mxu0 }
  0xae   : > { %v456_v20 = vpop.f32.mrf.mxu1 }
  0xaf   : > { %v457_v22 = vadd.f32 %v456_v20, %v390_v17 }
  0xb1   : > { %v392_v21 = vpop.f32.mrf.mxu0 }
  0xb6   : > { %v458_v24 = vpop.f32.mrf.mxu1 }
  0xc5   : > { %v545_v25 = vpop.f32.mrf.mxu2 }
  0xc6   : > { %v549_v32 = vadd.f32 %v545_v25, %v457_v22 }
  0xcd   : > { %v547_v26 = vpop.f32.mrf.mxu2 }
  0xce   : > { %v630_v18 = vpop.f32.mrf.mxu3 }
  0xcf   : > { %v634_v33 = vadd.f32 %v630_v18, %v549_v32 }
  0xd1   : > { %v738_v27 = vpop.f32.mrf.mxu0 }
  0xd2   : > { %v742_v36 = vadd.f32 %v738_v27, %v634_v33 }
  0xd6   : > { %v632_v40 = vpop.f32.mrf.mxu3 }
  0xd9   : > { %v740_v28 = vpop.f32.mrf.mxu0 }
  0xe2   : > { %v828_v29 = vpop.f32.mrf.mxu1 }
  0xe3   : > { %v832_v37 = vadd.f32 %v828_v29, %v742_v36 }
  0xea   : > { %v830_v30 = vpop.f32.mrf.mxu1 }
  0xf1   : > { %v913_v31 = vpop.f32.mrf.mxu2 }
  0xf2   : > { %v917_v19 = vadd.f32 %v913_v31, %v832_v37 }
  0xf9   : > { %v915_v34 = vpop.f32.mrf.mxu2 }
  0xfa   : > { %v1021_v35 = vpop.f32.mrf.mxu3 }
  0xfb   : > { %v1025_v39 = vadd.f32 %v1021_v35, %v917_v19 }
 0x102   : > { %v1023_v38 = vpop.f32.mrf.mxu3 }
 0x105   : > { %v1111_v42 = vpop.f32.mrf.mxu0 }
 0x106   : > { %v1115_v43 = vadd.f32 %v1111_v42, %v1025_v39 }
 0x108   : > { %v1120_v44 = vadd.f32 %v1756_v41, %v1115_v43 }
 0x10a   : > { %v1122_v45 = vrot.slane %v1120_v44, 2  ;;  %v1124_v46 = vpack.c.bf16 %v1120_v44, %v1120_v44 }
 0x10c   : > { %v1125_v47 = vpack.c.bf16 %v1122_v45, %v1122_v45  ;;  %1126 = vst [vmem:[%s219_s7] sm:$0x1] %v1124_v46 }
 0x10d   : > { %v1113_v48 = vpop.f32.mrf.mxu0 }
 0x10e   : > { %1127 = vst [vmem:[%s219_s7 + $0x1] sm:$0x1] %v1125_v47 }
 0x10f PF: > { %s13_s14 = sadd.s32 1, %s1779_s14   ;;  %s2160_s12 = smov %s1775_s13 }
 0x110   : > { %p10_p5 = scmp.ge.s32.totalorder %s13_s14, 4   ;;  %s2161_s13 = smov %s2163_s15 }
 0x112   :  { %12 = sbr.rel (!%p10_p5) target bundleno = 2 (0x2), region = 91 }

// kernel: _lambda_.7
= control target key start
LH: loop header
LB: loop body
LE: loop exit
PB: predicated region body
PF: predicated region fallthrough
CT: control target
= control target key end

     0   :  { %s2992_s12 = smov 0   ;;  %s2994_s13 = smov 0   ;;  %s3585_s0 = inlined_call_operand.vmem [shape: bf16[2,4,3,3,128], index: 0, kind: input, shape index: {}]   ;;  %s3586_s1 = inlined_call_operand.vmem [shape: bf16[4,4,128,128], index: 1, kind: input, shape index: {}]   ;;  %s3587_s2 = inlined_call_operand.vmem [shape: f32[1,128], index: 2, kind: input, shape index: {}]   ;;  %s3588_s3 = inlined_call_operand.vmem [shape: bf16[2,2,2,128], index: 3, kind: output, shape index: {}]  }
   0x1   :  { %s2996_s14 = smov 0  }
   0x2 LB: > { %s22_s15 = sadd.s32 1, %s2966_s13  ;;  %p2016_p0 = scmp.ge.s32.totalorder %s2970_s14, 1  ;;  %s2970_s14 = sphi %s2996_s14, %s13_s14   ;;  %s2966_s13 = sphi %s2994_s13, %s3592_s13   ;;  %s2962_s12 = sphi %s2992_s12, %s3591_s12  }
   0x3   : > { %p23_p1 = scmp.ge.s32.totalorder %s22_s15, 2  ;;  %p168_p2 = scmp.lt.s32.totalorder %s2970_s14, 3 }
   0x5   : > { %s3594_s15 = smov (%p23_p1, %s22_s15), 0  ;;  %p169_p3 = pnand %p2016_p0, %p168_p2 }
   0x6   : > { %p201_p4 = scmp.lt.s32.totalorder (!%p169_p3), %s2962_s12, 1 }
   0x7   : > { %172 = sbr.rel (%p169_p3) target bundleno = 318 (0x13e), region = 32 }
   0xc   : > { %v2809_v0 = vld [vmem:[%s3586_s1 + $0xb8] sm:$0xff]  ;;  %v2808_v2 = vld [vmem:[%s3586_s1 + $0xb0] sm:$0xff]  ;;  %s3596_s12 = smov (!%p201_p4, %s2962_s12), 1  ;;  %v2807_v7 = vld [vmem:[%s3586_s1 + $0xa8] sm:$0xff]  ;;  %vm247_vm0 = vcmask 1040384   ;;  %vm251_vm1 = vcmask 1042434  }
   0xd   : > { %v2801_v1 = vld [vmem:[%s3586_s1 + $0x38] sm:$0xff]  ;;  %380 = vmatpush.bf16.msra.mxu0 %v2809_v0  ;;  %v2800_v4 = vld [vmem:[%s3586_s1 + $0x30] sm:$0xff]  ;;  %s2922_s7 = smul.u32 24, %s3596_s12  ;;  %v2799_v9 = vld [vmem:[%s3586_s1 + $0x28] sm:$0xff]  ;;  %vm255_vm2 = vcmask 1041408   ;;  %vm257_vm3 = vcmask 1041409  }
   0xe   : > { %v2817_v3 = vld [vmem:[%s3586_s1 + $0x238] sm:$0xff]  ;;  %446 = vmatpush.bf16.msra.mxu1 %v2801_v1  ;;  %v2816_v5 = vld [vmem:[%s3586_s1 + $0x230] sm:$0xff]  ;;  %v2815_v10 = vld [vmem:[%s3586_s1 + $0x228] sm:$0xff]  ;;  %vm259_vm4 = vcmask 1043459   ;;  %vm261_vm5 = vcmask 1042433  }
   0xf   : > { %530 = vmatpush.bf16.msra.mxu2 %v2817_v3  ;;  %v2825_v6 = vld [vmem:[%s3586_s1 + $0x2b8] sm:$0xff]  ;;  %v2824_v8 = vld [vmem:[%s3586_s1 + $0x2b0] sm:$0xff]  ;;  %v2806_v11 = vld [vmem:[%s3586_s1 + $0xa0] sm:$0xff]  ;;  %s3055_s22 = scalar_lea.vmem %s3585_s0, %s2922_s7  ;;  %vm277_vm6 = vsmask.f32 256  ;;  %s2018_s7 = sshll.u32 %s3596_s12, 1 }
  0x10   : > { %638 = vmatpush.bf16.msra.mxu3 %v2825_v6  ;;  %v2823_v12 = vld [vmem:[%s3586_s1 + $0x2a8] sm:$0xff]  ;;  %v2798_v13 = vld [vmem:[%s3586_s1 + $0x20] sm:$0xff]  ;;  %vm278_vm7 = vsmask.f32 1284  ;;  %v2805_v15 = vld [vmem:[%s3586_s1 + $0x98] sm:$0xff]  ;;  %s219_s10 = scalar_lea.vmem %s3588_s3, %s2018_s7 }
  0x11   : > { %381 = vmatpush.bf16.msra.mxu0 %v2808_v2  ;;  %v2814_v14 = vld [vmem:[%s3586_s1 + $0x220] sm:$0xff]  ;;  %vm280_vm8 = vsmask.f32 2312  ;;  %vm282_vm9 = vsmask.f32 3340  ;;  %v2797_v18 = vld [vmem:[%s3586_s1 + $0x18] sm:$0xff]  ;;  %vm279_vm12 = vmor %vm277_vm6, %vm278_vm7 }
  0x12   : > { %447 = vmatpush.bf16.msra.mxu1 %v2800_v4  ;;  %vm284_vm10 = vsmask.f32 4368  ;;  %v3067_v16 = vld [vmem:[%s3055_s22] sm:$0x3]  ;;  %v3070_v17 = vld [vmem:[%s3055_s22 + $0x2] sm:$0x3]  ;;  %vm281_vm13 = vmor %vm279_vm12, %vm280_vm8 }
  0x13   : > { %531 = vmatpush.bf16.msra.mxu2 %v2816_v5  ;;  %vm286_vm11 = vsmask.f32 5396  ;;  %v2822_v19 = vld [vmem:[%s3586_s1 + $0x2a0] sm:$0xff]  ;;  %v241_v20 = vrot.slane %v3067_v16, 1  ;;  %v242_v21 = vrot.slane %v3067_v16, 2  ;;  %v243_v22 = vrot.slane %v3067_v16, 3  ;;  %vm283_vm6 = vmor %vm281_vm13, %vm282_vm9 }
  0x14   : > { %639 = vmatpush.bf16.msra.mxu3 %v2824_v8  ;;  %v244_v23 = vrot.slane %v3070_v17, 1  ;;  %v245_v24 = vrot.slane %v3070_v17, 2  ;;  %v246_v25 = vrot.slane %v3070_v17, 3  ;;  %vm288_vm14 = vsmask.f32 6424  ;;  %v2813_v26 = vld [vmem:[%s3586_s1 + $0x218] sm:$0xff]  ;;  %vm285_vm7 = vmor %vm283_vm6, %vm284_vm10 }
  0x15   : > { %382 = vmatpush.bf16.msra.mxu0 %v2807_v7  ;;  %vm290_vm15 = vsmask.f32 7452  ;;  %v250_v27 = vsel %vm247_vm0, %v3067_v16, %v241_v20  ;;  %v254_v28 = vsel %vm251_vm1, %v242_v21, %v243_v22  ;;  %v258_v29 = vsel %vm257_vm3, %v3067_v16, %v241_v20  ;;  %v2804_v35 = vld [vmem:[%s3586_s1 + $0x90] sm:$0xff]  ;;  %v2821_v36 = vld [vmem:[%s3586_s1 + $0x298] sm:$0xff]  ;;  %vm287_vm8 = vmor %vm285_vm7, %vm286_vm11 }
  0x16   : > { %448 = vmatpush.bf16.msra.mxu1 %v2799_v9  ;;  %v260_v30 = vsel %vm259_vm4, %v242_v21, %v243_v22  ;;  %v256_v31 = vsel %vm255_vm2, %v250_v27, %v254_v28  ;;  %v267_v33 = vsel %vm247_vm0, %v3070_v17, %v244_v23  ;;  %v270_v34 = vsel %vm251_vm1, %v245_v24, %v246_v25  ;;  %v2796_v41 = vld [vmem:[%s3586_s1 + $0x10] sm:$0xff]  ;;  %vm289_vm9 = vmor %vm287_vm8, %vm288_vm14  ;;  %v2803_v49 = vld [vmem:[%s3586_s1 + $0x88] sm:$0xff] }
  0x17   : > { %532 = vmatpush.bf16.msra.mxu2 %v2815_v10  ;;  %v262_v32 = vsel %vm261_vm5, %v258_v29, %v260_v30  ;;  %v271_v38 = vsel %vm255_vm2, %v267_v33, %v270_v34  ;;  %v272_v39 = vsel %vm257_vm3, %v3070_v17, %v244_v23  ;;  %v273_v40 = vsel %vm259_vm4, %v245_v24, %v246_v25  ;;  %v2812_v44 = vld [vmem:[%s3586_s1 + $0x210] sm:$0xff]  ;;  %vm3123_vm10 = vmor %vm289_vm9, %vm290_vm15  ;;  %v2795_v53 = vld [vmem:[%s3586_s1 + $0x8] sm:$0xff] }
  0x18   : > { %640 = vmatpush.bf16.msra.mxu3 %v2823_v12  ;;  %v264_v37 = vrot.slane %v262_v32, 1  ;;  %v274_v42 = vsel %vm261_vm5, %v272_v39, %v273_v40  ;;  %v292_v43 = vshrl.u32 %v256_v31, 16  ;;  %v300_v48 = vshrl.u32 %v271_v38, 16  ;;  %v2820_v50 = vld [vmem:[%s3586_s1 + $0x290] sm:$0xff]  ;;  %v2811_v54 = vld [vmem:[%s3586_s1 + $0x208] sm:$0xff]  ;;  %v2802_v56 = vld [vmem:[%s3586_s1 + $0x80] sm:$0xff] }
  0x19   : > { %383 = vmatpush.bf16.msra.mxu0 %v2806_v11  ;;  %v276_v45 = vrot.slane %v274_v42, 1  ;;  %v2819_v57 = vld [vmem:[%s3586_s1 + $0x288] sm:$0xff]  ;;  %v2833_v58 = vld [vmem:[%s3586_s1 + $0x78] sm:$0xff]  ;;  %v2794_v59 = vld [vmem:[%s3586_s1] sm:$0xff] }
  0x1a   : > { %449 = vmatpush.bf16.msra.mxu1 %v2798_v13  ;;  %v297_v47 = vshll.u32 %v264_v37, 16  ;;  %v2841_v60 = vld [vmem:[%s3586_s1 + $0xf8] sm:$0xff]  ;;  %v2810_v61 = vld [vmem:[%s3586_s1 + $0x200] sm:$0xff]  ;;  %v2832_v1 = vld [vmem:[%s3586_s1 + $0x70] sm:$0xff] }
  0x1b   : > { %533 = vmatpush.bf16.msra.mxu2 %v2814_v14  ;;  %v305_v52 = vshll.u32 %v276_v45, 16  ;;  %v222_v62 = vld [vmem:[%s3055_s22 + $0x4] sm:$0x3]  ;;  %v2849_v63 = vld [vmem:[%s3586_s1 + $0x278] sm:$0xff]  ;;  %v2840_v6 = vld [vmem:[%s3586_s1 + $0xf0] sm:$0xff] }
  0x1c   : > { %641 = vmatpush.bf16.msra.mxu3 %v2822_v19  ;;  %v299_v51 = vsel %vm3123_vm10, %v292_v43, %v297_v47  ;;  %v2818_v0 = vld [vmem:[%s3586_s1 + $0x280] sm:$0xff]  ;;  %v2857_v2 = vld [vmem:[%s3586_s1 + $0x2f8] sm:$0xff]  ;;  %v545_v3 = vrot.slane %v222_v62, 1  ;;  %v546_v4 = vrot.slane %v222_v62, 2  ;;  %v547_v5 = vrot.slane %v222_v62, 3  ;;  %v2848_v8 = vld [vmem:[%s3586_s1 + $0x270] sm:$0xff] }
  0x1d   : > { %384 = vmatpush.bf16.msra.mxu0 %v2805_v15  ;;  %326 = vst [vmem:[#allocation1] ss:$9 sm:$0xff] %v299_v51  ;;  %v3143_v55 = vsel %vm3123_vm10, %v300_v48, %v305_v52  ;;  %v2831_v9 = vld [vmem:[%s3586_s1 + $0x68] sm:$0xff]  ;;  %v2856_v10 = vld [vmem:[%s3586_s1 + $0x2f0] sm:$0xff]  ;;  %v2838_v21 = vld [vmem:[%s3586_s1 + $0xe0] sm:$0xff] }
  0x1e   : > { %450 = vmatpush.bf16.msra.mxu1 %v2797_v18  ;;  %329 = vst [vmem:[#allocation1 + $0x1] ss:$9 sm:$0xff] %v3143_v55  ;;  %v554_v11 = vsel %vm257_vm3, %v222_v62, %v545_v3  ;;  %v555_v12 = vsel %vm259_vm4, %v546_v4, %v547_v5  ;;  %v2839_v13 = vld [vmem:[%s3586_s1 + $0xe8] sm:$0xff]  ;;  %v549_v19 = vsel %vm247_vm0, %v222_v62, %v545_v3  ;;  %v2846_v22 = vld [vmem:[%s3586_s1 + $0x260] sm:$0xff]  ;;  %v2837_v28 = vld [vmem:[%s3586_s1 + $0xd8] sm:$0xff] }
  0x1f   : > { %534 = vmatpush.bf16.msra.mxu2 %v2813_v26  ;;  %v2847_v14 = vld [vmem:[%s3586_s1 + $0x268] sm:$0xff]  ;;  %v556_v15 = vsel %vm261_vm5, %v554_v11, %v555_v12  ;;  %v552_v20 = vsel %vm251_vm1, %v546_v4, %v547_v5  ;;  %v2829_v26 = vld [vmem:[%s3586_s1 + $0x58] sm:$0xff]  ;;  %v2854_v27 = vld [vmem:[%s3586_s1 + $0x2e0] sm:$0xff] }
  0x20   : > { %642 = vmatpush.bf16.msra.mxu3 %v2821_v36  ;;  %v2855_v18 = vld [vmem:[%s3586_s1 + $0x2e8] sm:$0xff]  ;;  %v558_v24 = vrot.slane %v556_v15, 1  ;;  %v553_v25 = vsel %vm255_vm2, %v549_v19, %v552_v20  ;;  %v2198_v31 = vld [vmem:[%s3055_s22 + $0x6] sm:$0x3]  ;;  %v2828_v33 = vld [vmem:[%s3586_s1 + $0x50] sm:$0xff] }
  0x21   : > { %385 = vmatpush.bf16.msra.mxu0 %v2804_v35  ;;  %v559_v29 = vshrl.u32 %v553_v25, 16  ;;  %v3230_v32 = vld [vmem:[%s3055_s22 + $0x8] sm:$0x3]  ;;  %v2853_v34 = vld [vmem:[%s3586_s1 + $0x2d8] sm:$0xff]  ;;  %v2836_v35 = vld [vmem:[%s3586_s1 + $0xd0] sm:$0xff]  ;;  %v744_v36 = vrot.slane %v2198_v31, 1 }
  0x22   : > { %451 = vmatpush.bf16.msra.mxu1 %v2796_v41  ;;  %v564_v30 = vshll.u32 %v558_v24, 16  ;;  %v745_v37 = vrot.slane %v2198_v31, 2  ;;  %v746_v38 = vrot.slane %v2198_v31, 3  ;;  %v2844_v39 = vld [vmem:[%s3586_s1 + $0x250] sm:$0xff]  ;;  %v747_v41 = vrot.slane %v3230_v32, 1  ;;  %v2827_v45 = vld [vmem:[%s3586_s1 + $0x48] sm:$0xff] }
  0x23   : > { %535 = vmatpush.bf16.msra.mxu2 %v2812_v44  ;;  %v748_v42 = vrot.slane %v3230_v32, 2  ;;  %v749_v43 = vrot.slane %v3230_v32, 3  ;;  %v2852_v47 = vld [vmem:[%s3586_s1 + $0x2d0] sm:$0xff]  ;;  %v2835_v48 = vld [vmem:[%s3586_s1 + $0xc8] sm:$0xff]  ;;  %v2850_v5 = vld [vmem:[%s3586_s1 + $0x2c0] sm:$0xff] }
  0x24   : > { %643 = vmatpush.bf16.msra.mxu3 %v2820_v50  ;;  %v566_v40 = vsel %vm3123_vm10, %v559_v29, %v564_v30  ;;  %v757_v50 = vsel %vm259_vm4, %v745_v37, %v746_v38  ;;  %v2843_v51 = vld [vmem:[%s3586_s1 + $0x248] sm:$0xff]  ;;  %v767_v52 = vsel %vm257_vm3, %v3230_v32, %v747_v41  ;;  %v2872_v11 = vld [vmem:[%s3586_s1 + $0x1b0] sm:$0xff]  ;;  %v2870_v30 = vld [vmem:[%s3586_s1 + $0x1a0] sm:$0xff] }
  0x25   : > { %386 = vmatpush.bf16.msra.mxu0 %v2803_v49  ;;  %v330_v7 = vld [vmem:[#allocation1] sm:$0xff]  ;;  %v756_v49 = vsel %vm257_vm3, %v2198_v31, %v744_v36  ;;  %v2880_v12 = vld [vmem:[%s3586_s1 + $0x330] sm:$0xff]  ;;  %v2200_v20 = vld [vmem:[%s3055_s22 + $0xa] sm:$0x3] }
  0x26   : > { %452 = vmatpush.bf16.msra.mxu1 %v2795_v53  ;;  %393 = vst [vmem:[#allocation1] ss:$9 sm:$0xff] %v3067_v16  ;;  %v2830_v16 = vld [vmem:[%s3586_s1 + $0x60] sm:$0xff]  ;;  %v768_v53 = vsel %vm259_vm4, %v748_v42, %v749_v43  ;;  %v2888_v19 = vld [vmem:[%s3586_s1 + $0x3b0] sm:$0xff]  ;;  %v960_v25 = vrot.slane %v2200_v20, 1  ;;  %v2887_v29 = vld [vmem:[%s3586_s1 + $0x3a8] sm:$0xff] }
  0x27   : > { %536 = vmatpush.bf16.msra.mxu2 %v2811_v54  ;;  %395 = vst [vmem:[#allocation1 + $0x1] ss:$9 sm:$0xff] %v3070_v17  ;;  %v2826_v54 = vld [vmem:[%s3586_s1 + $0x40] sm:$0xff] }
  0x28   : > { %644 = vmatpush.bf16.msra.mxu3 %v2819_v57  ;;  %v2865_v57 = vld [vmem:[%s3586_s1 + $0x138] sm:$0xff] }
  0x29   : > { %387 = vmatpush.bf16.msra.mxu0 %v2802_v56  ;;  %v758_v56 = vsel %vm261_vm5, %v756_v49, %v757_v50  ;;  %v2876_v49 = vld [vmem:[%s3586_s1 + $0x310] sm:$0xff]  ;;  %v2859_v50 = vld [vmem:[%s3586_s1 + $0x108] sm:$0xff] }
  0x2a   : > { %453 = vmatpush.bf16.msra.mxu1 %v2794_v59  ;;  %v751_v59 = vsel %vm247_vm0, %v2198_v31, %v744_v36  ;;  %v760_v3 = vrot.slane %v758_v56, 1  ;;  %v2886_v36 = vld [vmem:[%s3586_s1 + $0x3a0] sm:$0xff]  ;;  %v2884_v56 = vld [vmem:[%s3586_s1 + $0x390] sm:$0xff] }
  0x2b   : > { %537 = vmatpush.bf16.msra.mxu2 %v2810_v61  ;;  %v769_v61 = vsel %vm261_vm5, %v767_v52, %v768_v53  ;;  %v2396_v53 = vld [vmem:[%s3055_s22 + $0xc] sm:$0x3] }
  0x2c   : > { %388 = vmatmul.bf16.vlgmr.msra.gmra.mxu0 %v330_v7  ;;  %645 = vmatpush.bf16.msra.mxu3 %v2818_v0  ;;  %v762_v0 = vsel %vm247_vm0, %v3230_v32, %v747_v41  ;;  %v771_v7 = vrot.slane %v769_v61, 1  ;;  %v2897_v61 = vld [vmem:[%s3586_s1 + $0x178] sm:$0xff] }
  0x2d   : > { %728 = vmatpush.bf16.msrb.mxu0 %v2833_v58  ;;  %v2834_v58 = vld [vmem:[%s3586_s1 + $0xc0] sm:$0xff] }
  0x2e   : > { %860 = vmatpush.bf16.msrb.mxu1 %v2841_v60  ;;  %v396_v23 = vld [vmem:[#allocation1] sm:$0xff]  ;;  %v754_v60 = vsel %vm251_vm1, %v745_v37, %v746_v38  ;;  %v2869_v37 = vld [vmem:[%s3586_s1 + $0x198] sm:$0xff] }
  0x2f   : > { %945 = vmatpush.bf16.msrb.mxu2 %v2849_v63  ;;  %454 = vmatmul.bf16.vlgmr.msra.gmra.mxu1 %v396_v23  ;;  %476 = vst [vmem:[#allocation1] ss:$9 sm:$0xff] %v3070_v17  ;;  %v2845_v17 = vld [vmem:[%s3586_s1 + $0x258] sm:$0xff]  ;;  %v2842_v63 = vld [vmem:[%s3586_s1 + $0x240] sm:$0xff] }
  0x30   : > { %1053 = vmatpush.bf16.msrb.mxu3 %v2857_v2  ;;  %479 = vst [vmem:[#allocation1 + $0x1] ss:$9 sm:$0xff] %v222_v62  ;;  %v2873_v62 = vld [vmem:[%s3586_s1 + $0x1b8] sm:$0xff] }
  0x31   : > { %729 = vmatpush.bf16.msrb.mxu0 %v2832_v1  ;;  %v765_v1 = vsel %vm251_vm1, %v748_v42, %v749_v43  ;;  %v2881_v2 = vld [vmem:[%s3586_s1 + $0x338] sm:$0xff]  ;;  %v2860_v42 = vld [vmem:[%s3586_s1 + $0x110] sm:$0xff] }
  0x32   : > { %861 = vmatpush.bf16.msrb.mxu1 %v2840_v6  ;;  %v755_v6 = vsel %vm255_vm2, %v751_v59, %v754_v60  ;;  %v2877_v38 = vld [vmem:[%s3586_s1 + $0x318] sm:$0xff]  ;;  %v1160_v59 = vrot.slane %v2396_v53, 2  ;;  %v1161_v60 = vrot.slane %v2396_v53, 3 }
  0x33   : > { %946 = vmatpush.bf16.msrb.mxu2 %v2848_v8  ;;  %v2864_v8 = vld [vmem:[%s3586_s1 + $0x130] sm:$0xff]  ;;  %v2885_v43 = vld [vmem:[%s3586_s1 + $0x398] sm:$0xff] }
  0x34   : > { %1054 = vmatpush.bf16.msrb.mxu3 %v2856_v10  ;;  %v766_v10 = vsel %vm255_vm2, %v762_v0, %v765_v1 }
  0x35   : > { %730 = vmatpush.bf16.msrb.mxu0 %v2831_v9  ;;  %v2889_v9 = vld [vmem:[%s3586_s1 + $0x3b8] sm:$0xff]  ;;  %v780_v15 = vshrl.u32 %v766_v10, 16 }
  0x36   : > { %862 = vmatpush.bf16.msrb.mxu1 %v2839_v13  ;;  %v772_v13 = vshrl.u32 %v755_v6, 16 }
  0x37   : > { %947 = vmatpush.bf16.msrb.mxu2 %v2847_v14  ;;  %v480_v44 = vld [vmem:[#allocation1] sm:$0xff]  ;;  %v777_v14 = vshll.u32 %v760_v3, 16 }
  0x38   : > { %1055 = vmatpush.bf16.msrb.mxu3 %v2855_v18  ;;  %584 = vst [vmem:[#allocation1] ss:$9 sm:$0xff] %v3143_v55  ;;  %538 = vmatmul.bf16.vlgmr.msra.gmra.mxu2 %v480_v44  ;;  %v2851_v55 = vld [vmem:[%s3586_s1 + $0x2c8] sm:$0xff] }
  0x39   : > { %731 = vmatpush.bf16.msrb.mxu0 %v2830_v16  ;;  %587 = vst [vmem:[#allocation1 + $0x1] ss:$9 sm:$0xff] %v566_v40  ;;  %v785_v16 = vshll.u32 %v771_v7, 16  ;;  %v2863_v18 = vld [vmem:[%s3586_s1 + $0x128] sm:$0xff]  ;;  %v779_v23 = vsel %vm3123_vm10, %v772_v13, %v777_v14  ;;  %v964_v40 = vsel %vm247_vm0, %v2200_v20, %v960_v25  ;;  %v1172_v7 = vsel %vm259_vm4, %v1160_v59, %v1161_v60  ;;  %v2913_v14 = vld [vmem:[%s3586_s1 + $0x378] sm:$0xff] }
  0x3a   : > { %863 = vmatpush.bf16.msrb.mxu1 %v2838_v21  ;;  %v2871_v21 = vld [vmem:[%s3586_s1 + $0x1a8] sm:$0xff] }
  0x3b   : > { %948 = vmatpush.bf16.msrb.mxu2 %v2846_v22  ;;  %v2879_v22 = vld [vmem:[%s3586_s1 + $0x328] sm:$0xff]  ;;  %v3330_v24 = vsel %vm3123_vm10, %v780_v15, %v785_v16  ;;  %v1169_v16 = vsel %vm251_vm1, %v1160_v59, %v1161_v60 }
  0x3c   : > { %1056 = vmatpush.bf16.msrb.mxu3 %v2854_v27  ;;  %v962_v27 = vrot.slane %v2200_v20, 3  ;;  %v2899_v60 = vld [vmem:[%s3586_s1 + $0x1c8] sm:$0xff] }
  0x3d   : > { %732 = vmatpush.bf16.msrb.mxu0 %v2829_v26  ;;  %v961_v26 = vrot.slane %v2200_v20, 2 }
  0x3e   : > { %864 = vmatpush.bf16.msrb.mxu1 %v2837_v28  ;;  %v2862_v28 = vld [vmem:[%s3586_s1 + $0x120] sm:$0xff] }
  0x3f   : > { %949 = vmatpush.bf16.msrb.mxu2 %v2845_v17  ;;  %v967_v41 = vsel %vm251_vm1, %v961_v26, %v962_v27 }
  0x40   : > { %1057 = vmatpush.bf16.msrb.mxu3 %v2853_v34  ;;  %v588_v4 = vld [vmem:[#allocation1] sm:$0xff]  ;;  %v970_v34 = vsel %vm259_vm4, %v961_v26, %v962_v27 }
  0x41   : > { %733 = vmatpush.bf16.msrb.mxu0 %v2828_v33  ;;  %674 = vst [vmem:[#allocation1] ss:$9 sm:$0xff] %v2198_v31  ;;  %646 = vmatmul.bf16.vlgmr.msra.gmra.mxu3 %v588_v4  ;;  %v2878_v31 = vld [vmem:[%s3586_s1 + $0x320] sm:$0xff]  ;;  %v969_v33 = vsel %vm257_vm3, %v2200_v20, %v960_v25  ;;  %v2905_v4 = vld [vmem:[%s3586_s1 + $0x1f8] sm:$0xff]  ;;  %v2912_v25 = vld [vmem:[%s3586_s1 + $0x370] sm:$0xff] }
  0x42   : > { %865 = vmatpush.bf16.msrb.mxu1 %v2836_v35  ;;  %677 = vst [vmem:[#allocation1 + $0x1] ss:$9 sm:$0xff] %v3230_v32  ;;  %v2861_v35 = vld [vmem:[%s3586_s1 + $0x118] sm:$0xff] }
  0x43   : > { %950 = vmatpush.bf16.msrb.mxu2 %v2844_v39  ;;  %v971_v39 = vsel %vm261_vm5, %v969_v33, %v970_v34  ;;  %v2902_v33 = vld [vmem:[%s3586_s1 + $0x1e0] sm:$0xff] }
  0x44   : > { %1058 = vmatpush.bf16.msrb.mxu3 %v2852_v47  ;;  %v973_v47 = vrot.slane %v971_v39, 1 }
  0x45   : > { %734 = vmatpush.bf16.msrb.mxu0 %v2827_v45  ;;  %v2868_v45 = vld [vmem:[%s3586_s1 + $0x190] sm:$0xff] }
  0x46   : > { %866 = vmatpush.bf16.msrb.mxu1 %v2835_v48  ;;  %v968_v48 = vsel %vm255_vm2, %v964_v40, %v967_v41  ;;  %v979_v52 = vshll.u32 %v973_v47, 16  ;;  %v2893_v40 = vld [vmem:[%s3586_s1 + $0x158] sm:$0xff]  ;;  %v2910_v47 = vld [vmem:[%s3586_s1 + $0x360] sm:$0xff] }
  0x47   : > { %951 = vmatpush.bf16.msrb.mxu2 %v2843_v51  ;;  %v974_v51 = vshrl.u32 %v968_v48, 16  ;;  %v2901_v41 = vld [vmem:[%s3586_s1 + $0x1d8] sm:$0xff]  ;;  %v2920_v48 = vld [vmem:[%s3586_s1 + $0x3f0] sm:$0xff] }
  0x48   : > { %1059 = vmatpush.bf16.msrb.mxu3 %v2851_v55  ;;  %v3387_v55 = vld [vmem:[%s3055_s22 + $0xe] sm:$0x3] }
  0x49   : > { %735 = vmatpush.bf16.msrb.mxu0 %v2826_v54  ;;  %v678_v17 = vld [vmem:[#allocation1] sm:$0xff]  ;;  %v2875_v54 = vld [vmem:[%s3586_s1 + $0x308] sm:$0xff]  ;;  %v1162_v0 = vrot.slane %v3387_v55, 1  ;;  %v1163_v1 = vrot.slane %v3387_v55, 2 }
  0x4a   : > { %867 = vmatpush.bf16.msrb.mxu1 %v2834_v58  ;;  %806 = vst [vmem:[#allocation1] ss:$9 sm:$0xff] %v779_v23  ;;  %v1159_v58 = vrot.slane %v2396_v53, 1 }
  0x4b   : > { %952 = vmatpush.bf16.msrb.mxu2 %v2842_v63  ;;  %809 = vst [vmem:[#allocation1 + $0x1] ss:$9 sm:$0xff] %v3330_v24  ;;  %v2866_v63 = vld [vmem:[%s3586_s1 + $0x180] sm:$0xff] }
  0x4c   : > { %1060 = vmatpush.bf16.msrb.mxu3 %v2850_v5  ;;  %736 = vmatmul.bf16.vlgmr.msrb.gmra.mxu0 %v678_v17  ;;  %v2874_v5 = vld [vmem:[%s3586_s1 + $0x300] sm:$0xff]  ;;  %v1171_v6 = vsel %vm257_vm3, %v2396_v53, %v1159_v58  ;;  %v1166_v15 = vsel %vm247_vm0, %v2396_v53, %v1159_v58 }
  0x4d   : > { %1143 = vmatpush.bf16.msra.mxu0 %v2865_v57  ;;  %v2858_v57 = vld [vmem:[%s3586_s1 + $0x100] sm:$0xff]  ;;  %v1173_v13 = vsel %vm261_vm5, %v1171_v6, %v1172_v7  ;;  %v1170_v27 = vsel %vm255_vm2, %v1166_v15, %v1169_v16  ;;  %v2594_v6 = vld [vmem:[%s3055_s22 + $0x12] sm:$0x3]  ;;  %v2917_v7 = vld [vmem:[%s3586_s1 + $0x3d8] sm:$0xff] }
  0x4e   : > { %1275 = vmatpush.bf16.msra.mxu1 %v2873_v62  ;;  %v981_v62 = vsel %vm3123_vm10, %v974_v51, %v979_v52  ;;  %v1175_v23 = vrot.slane %v1173_v13, 1  ;;  %v2900_v51 = vld [vmem:[%s3586_s1 + $0x1d0] sm:$0xff] }
  0x4f   : > { %1360 = vmatpush.bf16.msra.mxu2 %v2881_v2  ;;  %v1164_v2 = vrot.slane %v3387_v55, 3  ;;  %v2916_v13 = vld [vmem:[%s3586_s1 + $0x3d0] sm:$0xff] }
  0x50   : > { %1468 = vmatpush.bf16.msra.mxu3 %v2889_v9  ;;  %v1182_v9 = vsel %vm257_vm3, %v3387_v55, %v1162_v0 }
  0x51   : > { %1144 = vmatpush.bf16.msra.mxu0 %v2864_v8  ;;  %v2896_v8 = vld [vmem:[%s3586_s1 + $0x170] sm:$0xff]  ;;  %v1183_v10 = vsel %vm259_vm4, %v1163_v1, %v1164_v2 }
  0x52   : > { %1276 = vmatpush.bf16.msra.mxu1 %v2872_v11  ;;  %v810_v44 = vld [vmem:[#allocation1] sm:$0xff]  ;;  %v2904_v11 = vld [vmem:[%s3586_s1 + $0x1f0] sm:$0xff] }
  0x53   : > { %1361 = vmatpush.bf16.msra.mxu2 %v2880_v12  ;;  %868 = vmatmul.bf16.vlgmr.msrb.gmra.mxu1 %v810_v44  ;;  %891 = vst [vmem:[#allocation1] ss:$9 sm:$0xff] %v3230_v32  ;;  %v2867_v32 = vld [vmem:[%s3586_s1 + $0x188] sm:$0xff] }
  0x54   : > { %1469 = vmatpush.bf16.msra.mxu3 %v2888_v19  ;;  %894 = vst [vmem:[#allocation1 + $0x1] ss:$9 sm:$0xff] %v2200_v20  ;;  %v2883_v12 = vld [vmem:[%s3586_s1 + $0x388] sm:$0xff]  ;;  %v1177_v20 = vsel %vm247_vm0, %v3387_v55, %v1162_v0 }
  0x55   : > { %1145 = vmatpush.bf16.msra.mxu0 %v2863_v18  ;;  %v1184_v18 = vsel %vm261_vm5, %v1182_v9, %v1183_v10  ;;  %v2895_v19 = vld [vmem:[%s3586_s1 + $0x168] sm:$0xff]  ;;  %v1574_v9 = vrot.slane %v2594_v6, 1  ;;  %v1575_v10 = vrot.slane %v2594_v6, 2 }
  0x56   : > { %1277 = vmatpush.bf16.msra.mxu1 %v2871_v21  ;;  %v1180_v21 = vsel %vm251_vm1, %v1163_v1, %v1164_v2  ;;  %v2890_v2 = vld [vmem:[%s3586_s1 + $0x140] sm:$0xff] }
  0x57   : > { %1362 = vmatpush.bf16.msra.mxu2 %v2879_v22  ;;  %v2882_v22 = vld [vmem:[%s3586_s1 + $0x380] sm:$0xff]  ;;  %v1181_v17 = vsel %vm255_vm2, %v1177_v20, %v1180_v21  ;;  %v1586_v20 = vsel %vm257_vm3, %v2594_v6, %v1574_v9 }
  0x58   : > { %1470 = vmatpush.bf16.msra.mxu3 %v2887_v29  ;;  %v2894_v29 = vld [vmem:[%s3586_s1 + $0x160] sm:$0xff]  ;;  %v1195_v34 = vshrl.u32 %v1181_v17, 16 }
  0x59   : > { %1146 = vmatpush.bf16.msra.mxu0 %v2862_v28  ;;  %v1186_v28 = vrot.slane %v1184_v18, 1 }
  0x5a   : > { %1278 = vmatpush.bf16.msra.mxu1 %v2870_v30  ;;  %v1187_v30 = vshrl.u32 %v1170_v27, 16 }
  0x5b   : > { %1363 = vmatpush.bf16.msra.mxu2 %v2878_v31  ;;  %v895_v3 = vld [vmem:[#allocation1] sm:$0xff]  ;;  %v1192_v31 = vshll.u32 %v1175_v23, 16 }
  0x5c   : > { %1471 = vmatpush.bf16.msra.mxu3 %v2886_v36  ;;  %953 = vmatmul.bf16.vlgmr.msrb.gmra.mxu2 %v895_v3  ;;  %999 = vst [vmem:[#allocation1] ss:$9 sm:$0xff] %v3330_v24  ;;  %v2903_v24 = vld [vmem:[%s3586_s1 + $0x1e8] sm:$0xff]  ;;  %v2898_v3 = vld [vmem:[%s3586_s1 + $0x1c0] sm:$0xff] }
  0x5d   : > { %1147 = vmatpush.bf16.msra.mxu0 %v2861_v35  ;;  %1002 = vst [vmem:[#allocation1 + $0x1] ss:$9 sm:$0xff] %v981_v62  ;;  %v1200_v35 = vshll.u32 %v1186_v28, 16  ;;  %v2911_v36 = vld [vmem:[%s3586_s1 + $0x368] sm:$0xff]  ;;  %v1194_v39 = vsel %vm3123_vm10, %v1187_v30, %v1192_v31  ;;  %v2918_v62 = vld [vmem:[%s3586_s1 + $0x3e0] sm:$0xff] }
  0x5e   : > { %1279 = vmatpush.bf16.msra.mxu1 %v2869_v37  ;;  %v2398_v37 = vld [vmem:[%s3055_s22 + $0x10] sm:$0x3]  ;;  %v2914_v30 = vld [vmem:[%s3586_s1 + $0x3c0] sm:$0xff] }
  0x5f   : > { %1364 = vmatpush.bf16.msra.mxu2 %v2877_v38  ;;  %v2921_v38 = vld [vmem:[%s3586_s1 + $0x3f8] sm:$0xff]  ;;  %v1376_v44 = vrot.slane %v2398_v37, 2 }
  0x60   : > { %1472 = vmatpush.bf16.msra.mxu3 %v2885_v43  ;;  %v1375_v43 = vrot.slane %v2398_v37, 1 }
  0x61   : > { %1148 = vmatpush.bf16.msra.mxu0 %v2860_v42  ;;  %v3475_v42 = vsel %vm3123_vm10, %v1195_v34, %v1200_v35 }
  0x62   : > { %1280 = vmatpush.bf16.msra.mxu1 %v2868_v45  ;;  %v1377_v45 = vrot.slane %v2398_v37, 3  ;;  %v1384_v52 = vsel %vm257_vm3, %v2398_v37, %v1375_v43  ;;  %v1379_v58 = vsel %vm247_vm0, %v2398_v37, %v1375_v43 }
  0x63   : > { %1365 = vmatpush.bf16.msra.mxu2 %v2876_v49 }
  0x64   : > { %1473 = vmatpush.bf16.msra.mxu3 %v2884_v56  ;;  %v1003_v26 = vld [vmem:[#allocation1] sm:$0xff]  ;;  %v1382_v59 = vsel %vm251_vm1, %v1376_v44, %v1377_v45 }
  0x65   : > { %1149 = vmatpush.bf16.msra.mxu0 %v2859_v50  ;;  %1061 = vmatmul.bf16.vlgmr.msrb.gmra.mxu3 %v1003_v26  ;;  %1089 = vst [vmem:[#allocation1] ss:$9 sm:$0xff] %v2396_v53  ;;  %v2892_v50 = vld [vmem:[%s3586_s1 + $0x150] sm:$0xff]  ;;  %v2909_v53 = vld [vmem:[%s3586_s1 + $0x358] sm:$0xff]  ;;  %v1383_v1 = vsel %vm255_vm2, %v1379_v58, %v1382_v59  ;;  %v1581_v26 = vsel %vm247_vm0, %v2594_v6, %v1574_v9 }
  0x66   : > { %1281 = vmatpush.bf16.msra.mxu1 %v2867_v32  ;;  %1092 = vst [vmem:[#allocation1 + $0x1] ss:$9 sm:$0xff] %v3387_v55  ;;  %v1385_v32 = vsel %vm259_vm4, %v1376_v44, %v1377_v45 }
  0x67   : > { %1366 = vmatpush.bf16.msra.mxu2 %v2875_v54  ;;  %v2919_v54 = vld [vmem:[%s3586_s1 + $0x3e8] sm:$0xff]  ;;  %v1386_v56 = vsel %vm261_vm5, %v1384_v52, %v1385_v32 }
  0x68   : > { %1474 = vmatpush.bf16.msra.mxu3 %v2883_v12  ;;  %v1388_v0 = vrot.slane %v1386_v56, 1  ;;  %v2906_v12 = vld [vmem:[%s3586_s1 + $0x340] sm:$0xff] }
  0x69   : > { %1150 = vmatpush.bf16.msra.mxu0 %v2858_v57  ;;  %v2891_v57 = vld [vmem:[%s3586_s1 + $0x148] sm:$0xff] }
  0x6a   : > { %1282 = vmatpush.bf16.msra.mxu1 %v2866_v63 }
  0x6b   : > { %1367 = vmatpush.bf16.msra.mxu2 %v2874_v5  ;;  %v1394_v5 = vshll.u32 %v1388_v0, 16 }
  0x6c   : > { %1475 = vmatpush.bf16.msra.mxu3 %v2882_v22 }
  0x6d   : > { %1558 = vmatpush.bf16.msrb.mxu0 %v2897_v61  ;;  %v1093_v49 = vld [vmem:[#allocation1] sm:$0xff]  ;;  %v2908_v61 = vld [vmem:[%s3586_s1 + $0x350] sm:$0xff] }
  0x6e   : > { %1690 = vmatpush.bf16.msrb.mxu1 %v2905_v4  ;;  %1151 = vmatmul.bf16.vlgmr.msra.gmra.mxu0 %v1093_v49  ;;  %1221 = vst [vmem:[#allocation1] ss:$9 sm:$0xff] %v1194_v39  ;;  %v1389_v4 = vshrl.u32 %v1383_v1, 16 }
  0x6f   : > { %1775 = vmatpush.bf16.msrb.mxu2 %v2913_v14  ;;  %1224 = vst [vmem:[#allocation1 + $0x1] ss:$9 sm:$0xff] %v3475_v42 }
  0x70   : > { %1883 = vmatpush.bf16.msrb.mxu3 %v2921_v38  ;;  %v1396_v14 = vsel %vm3123_vm10, %v1389_v4, %v1394_v5 }
  0x71   : > { %1559 = vmatpush.bf16.msrb.mxu0 %v2896_v8  ;;  %v2595_v8 = vld [vmem:[%s3055_s22 + $0x14] sm:$0x3] }
  0x72   : > { %1691 = vmatpush.bf16.msrb.mxu1 %v2904_v11  ;;  %v1576_v11 = vrot.slane %v2594_v6, 3  ;;  %v1577_v15 = vrot.slane %v2595_v8, 1  ;;  %v1578_v16 = vrot.slane %v2595_v8, 2  ;;  %v1579_v18 = vrot.slane %v2595_v8, 3 }
  0x73   : > { %1776 = vmatpush.bf16.msrb.mxu2 %v2912_v25 }
  0x74   : > { %1884 = vmatpush.bf16.msrb.mxu3 %v2920_v48  ;;  %v1587_v21 = vsel %vm259_vm4, %v1575_v10, %v1576_v11  ;;  %v1597_v22 = vsel %vm257_vm3, %v2595_v8, %v1577_v15  ;;  %v1598_v23 = vsel %vm259_vm4, %v1578_v16, %v1579_v18  ;;  %v1584_v27 = vsel %vm251_vm1, %v1575_v10, %v1576_v11 }
  0x75   : > { %1560 = vmatpush.bf16.msrb.mxu0 %v2895_v19  ;;  %v1588_v25 = vsel %vm261_vm5, %v1586_v20, %v1587_v21  ;;  %v1599_v28 = vsel %vm261_vm5, %v1597_v22, %v1598_v23  ;;  %v1592_v17 = vsel %vm247_vm0, %v2595_v8, %v1577_v15  ;;  %v1585_v34 = vsel %vm255_vm2, %v1581_v26, %v1584_v27 }
  0x76   : > { %1692 = vmatpush.bf16.msrb.mxu1 %v2903_v24  ;;  %v1225_v63 = vld [vmem:[#allocation1] sm:$0xff]  ;;  %v2915_v24 = vld [vmem:[%s3586_s1 + $0x3c8] sm:$0xff]  ;;  %v1590_v31 = vrot.slane %v1588_v25, 1  ;;  %v1601_v35 = vrot.slane %v1599_v28, 1 }
  0x77   : > { %1777 = vmatpush.bf16.msrb.mxu2 %v2911_v36  ;;  %1283 = vmatmul.bf16.vlgmr.msra.gmra.mxu1 %v1225_v63  ;;  %1306 = vst [vmem:[#allocation1] ss:$9 sm:$0xff] %v3387_v55  ;;  %v2907_v55 = vld [vmem:[%s3586_s1 + $0x348] sm:$0xff] }
  0x78   : > { %1885 = vmatpush.bf16.msrb.mxu3 %v2919_v54  ;;  %1309 = vst [vmem:[#allocation1 + $0x1] ss:$9 sm:$0xff] %v2398_v37  ;;  %v1602_v37 = vshrl.u32 %v1585_v34, 16  ;;  %v1607_v38 = vshll.u32 %v1590_v31, 16 }
  0x79   : > { %1561 = vmatpush.bf16.msrb.mxu0 %v2894_v29  ;;  %v1595_v29 = vsel %vm251_vm1, %v1578_v16, %v1579_v18 }
  0x7a   : > { %1693 = vmatpush.bf16.msrb.mxu1 %v2902_v33  ;;  %v1596_v36 = vsel %vm255_vm2, %v1592_v17, %v1595_v29 }
  0x7b   : > { %1778 = vmatpush.bf16.msrb.mxu2 %v2910_v47  ;;  %v1610_v39 = vshrl.u32 %v1596_v36, 16 }
  0x7c   : > { %1886 = vmatpush.bf16.msrb.mxu3 %v2918_v62 }
  0x7d   : > { %1562 = vmatpush.bf16.msrb.mxu0 %v2893_v40  ;;  %v1615_v40 = vshll.u32 %v1601_v35, 16 }
  0x7e   : > { %1694 = vmatpush.bf16.msrb.mxu1 %v2901_v41  ;;  %v2596_v41 = vld [vmem:[%s3055_s22 + $0x16] sm:$0x3] }
  0x7f   : > { %1779 = vmatpush.bf16.msrb.mxu2 %v2909_v53  ;;  %v1310_v19 = vld [vmem:[#allocation1] sm:$0xff]  ;;  %v1617_v43 = vsel %vm3123_vm10, %v1610_v39, %v1615_v40  ;;  %v1790_v44 = vrot.slane %v2596_v41, 1  ;;  %v1791_v45 = vrot.slane %v2596_v41, 2  ;;  %v1792_v47 = vrot.slane %v2596_v41, 3 }
  0x80   : > { %1887 = vmatpush.bf16.msrb.mxu3 %v2917_v7  ;;  %1368 = vmatmul.bf16.vlgmr.msra.gmra.mxu2 %v1310_v19  ;;  %1414 = vst [vmem:[#allocation1] ss:$9 sm:$0xff] %v3475_v42  ;;  %v1609_v42 = vsel %vm3123_vm10, %v1602_v37, %v1607_v38 }
  0x81   : > { %1563 = vmatpush.bf16.msrb.mxu0 %v2892_v50  ;;  %1417 = vst [vmem:[#allocation1 + $0x1] ss:$9 sm:$0xff] %v1396_v14  ;;  %v1799_v49 = vsel %vm257_vm3, %v2596_v41, %v1790_v44  ;;  %v1800_v50 = vsel %vm259_vm4, %v1791_v45, %v1792_v47  ;;  %v1794_v52 = vsel %vm247_vm0, %v2596_v41, %v1790_v44 }
  0x82   : > { %1695 = vmatpush.bf16.msrb.mxu1 %v2900_v51  ;;  %v1801_v51 = vsel %vm261_vm5, %v1799_v49, %v1800_v50  ;;  %v1797_v32 = vsel %vm251_vm1, %v1791_v45, %v1792_v47 }
  0x83   : > { %1780 = vmatpush.bf16.msrb.mxu2 %v2908_v61  ;;  %v1803_v54 = vrot.slane %v1801_v51, 1  ;;  %v1798_v56 = vsel %vm255_vm2, %v1794_v52, %v1797_v32 }
  0x84   : > { %1888 = vmatpush.bf16.msrb.mxu3 %v2916_v13 }
  0x85   : > { %1564 = vmatpush.bf16.msrb.mxu0 %v2891_v57  ;;  %v1804_v57 = vshrl.u32 %v1798_v56, 16  ;;  %v1809_v58 = vshll.u32 %v1803_v54, 16 }
  0x86   : > { %1696 = vmatpush.bf16.msrb.mxu1 %v2899_v60 }
  0x87   : > { %1781 = vmatpush.bf16.msrb.mxu2 %v2907_v55  ;;  %v1811_v59 = vsel %vm3123_vm10, %v1804_v57, %v1809_v58 }
  0x88   : > { %1889 = vmatpush.bf16.msrb.mxu3 %v2915_v24  ;;  %v1418_v33 = vld [vmem:[#allocation1] sm:$0xff] }
  0x89   : > { %1565 = vmatpush.bf16.msrb.mxu0 %v2890_v2  ;;  %1476 = vmatmul.bf16.vlgmr.msra.gmra.mxu3 %v1418_v33  ;;  %1504 = vst [vmem:[#allocation1] ss:$9 sm:$0xff] %v2594_v6 }
  0x8a   : > { %1697 = vmatpush.bf16.msrb.mxu1 %v2898_v3  ;;  %1507 = vst [vmem:[#allocation1 + $0x1] ss:$9 sm:$0xff] %v2595_v8 }
  0x8b   : > { %1782 = vmatpush.bf16.msrb.mxu2 %v2906_v12 }
  0x8c   : > { %1890 = vmatpush.bf16.msrb.mxu3 %v2914_v30 }
  0x91   : > { %v1508_v48 = vld [vmem:[#allocation1] sm:$0xff] }
  0x92   : > { %1566 = vmatmul.bf16.vlgmr.msrb.gmra.mxu0 %v1508_v48  ;;  %1636 = vst [vmem:[#allocation1] ss:$9 sm:$0xff] %v1609_v42 }
  0x93   : > { %1639 = vst [vmem:[#allocation1 + $0x1] ss:$9 sm:$0xff] %v1617_v43 }
  0x9a   : > { %v1640_v53 = vld [vmem:[#allocation1] sm:$0xff] }
  0x9b   : > { %1698 = vmatmul.bf16.vlgmr.msrb.gmra.mxu1 %v1640_v53  ;;  %1721 = vst [vmem:[#allocation1] ss:$9 sm:$0xff] %v2595_v8 }
  0x9c   : > { %1724 = vst [vmem:[#allocation1 + $0x1] ss:$9 sm:$0xff] %v2596_v41  ;;  %v2947_v41 = vld [vmem:[%s3587_s2] ss:$0 sm:$0xff] }
  0xa3   : > { %v1725_v60 = vld [vmem:[#allocation1] sm:$0xff] }
  0xa4   : > { %1783 = vmatmul.bf16.vlgmr.msrb.gmra.mxu2 %v1725_v60  ;;  %1829 = vst [vmem:[#allocation1] ss:$9 sm:$0xff] %v1617_v43 }
  0xa5   : > { %1832 = vst [vmem:[#allocation1 + $0x1] ss:$9 sm:$0xff] %v1811_v59 }
  0xa9   : > { %v389_v61 = vpop.f32.mrf.mxu0 }
  0xac   : > { %v1833_v63 = vld [vmem:[#allocation1] sm:$0xff]  ;;  %v455_v0 = vpop.f32.mrf.mxu1 }
  0xad   : > { %1891 = vmatmul.bf16.vlgmr.msrb.gmra.mxu3 %v1833_v63  ;;  %v456_v1 = vadd.f32 %v455_v0, %v389_v61 }
  0xb1   : > { %v391_v62 = vpop.f32.mrf.mxu0 }
  0xb4   : > { %v457_v2 = vpop.f32.mrf.mxu1 }
  0xbb   : > { %v539_v3 = vpop.f32.mrf.mxu2 }
  0xbc   : > { %v543_v4 = vadd.f32 %v539_v3, %v456_v1 }
  0xc3   : > { %v541_v5 = vpop.f32.mrf.mxu2 }
  0xc4   : > { %v647_v6 = vpop.f32.mrf.mxu3 }
  0xc5   : > { %v651_v55 = vadd.f32 %v647_v6, %v543_v4 }
  0xc9   : > { %v737_v7 = vpop.f32.mrf.mxu0 }
  0xca   : > { %v741_v8 = vadd.f32 %v737_v7, %v651_v55 }
  0xcc   : > { %v649_v46 = vpop.f32.mrf.mxu3 }
  0xd0   : > { %v869_v10 = vpop.f32.mrf.mxu1 }
  0xd1   : > { %v739_v9 = vpop.f32.mrf.mxu0  ;;  %v873_v11 = vadd.f32 %v869_v10, %v741_v8 }
  0xd8   : > { %v871_v12 = vpop.f32.mrf.mxu1 }
  0xdf   : > { %v954_v13 = vpop.f32.mrf.mxu2 }
  0xe0   : > { %v958_v27 = vadd.f32 %v954_v13, %v873_v11 }
  0xe7   : > { %v956_v14 = vpop.f32.mrf.mxu2 }
  0xe8   : > { %v1062_v15 = vpop.f32.mrf.mxu3 }
  0xe9   : > { %v1066_v29 = vadd.f32 %v1062_v15, %v958_v27 }
  0xeb   : > { %v1152_v16 = vpop.f32.mrf.mxu0 }
  0xec   : > { %v1156_v30 = vadd.f32 %v1152_v16, %v1066_v29 }
  0xf0   : > { %v1064_v18 = vpop.f32.mrf.mxu3 }
  0xf3   : > { %v1154_v19 = vpop.f32.mrf.mxu0 }
  0xf4   : > { %v1284_v20 = vpop.f32.mrf.mxu1 }
  0xf5   : > { %v1288_v33 = vadd.f32 %v1284_v20, %v1156_v30 }
  0xfc   : > { %v1286_v21 = vpop.f32.mrf.mxu1 }
 0x103   : > { %v1369_v22 = vpop.f32.mrf.mxu2 }
 0x104   : > { %v1373_v34 = vadd.f32 %v1369_v22, %v1288_v33 }
 0x10b   : > { %v1371_v23 = vpop.f32.mrf.mxu2 }
 0x10c   : > { %v1477_v24 = vpop.f32.mrf.mxu3 }
 0x10d   : > { %v1481_v35 = vadd.f32 %v1477_v24, %v1373_v34 }
 0x10f   : > { %v1567_v25 = vpop.f32.mrf.mxu0 }
 0x110   : > { %v1571_v37 = vadd.f32 %v1567_v25, %v1481_v35 }
 0x114   : > { %v1479_v26 = vpop.f32.mrf.mxu3 }
 0x117   : > { %v1569_v28 = vpop.f32.mrf.mxu0 }
 0x118   : > { %v1699_v17 = vpop.f32.mrf.mxu1 }
 0x119   : > { %v1703_v38 = vadd.f32 %v1699_v17, %v1571_v37 }
 0x120   : > { %v1701_v31 = vpop.f32.mrf.mxu1 }
 0x127   : > { %v1784_v36 = vpop.f32.mrf.mxu2 }
 0x128   : > { %v1788_v39 = vadd.f32 %v1784_v36, %v1703_v38 }
 0x12f   : > { %v1786_v40 = vpop.f32.mrf.mxu2 }
 0x130   : > { %v1892_v42 = vpop.f32.mrf.mxu3 }
 0x131   : > { %v1896_v43 = vadd.f32 %v1892_v42, %v1788_v39 }
 0x133   : > { %v1901_v44 = vadd.f32 %v2947_v41, %v1896_v43 }
 0x135   : > { %v1902_v45 = vmul.f32 0.01, %v1901_v44 }
 0x137   : > { %v1903_v47 = vmax.f32 %v1901_v44, %v1902_v45 }
 0x138   : > { %v1894_v48 = vpop.f32.mrf.mxu3 }
 0x139   : > { %v1905_v49 = vrot.slane %v1903_v47, 2  ;;  %v1907_v50 = vpack.c.bf16 %v1903_v47, %v1903_v47 }
 0x13b   : > { %v1908_v51 = vpack.c.bf16 %v1905_v49, %v1905_v49  ;;  %1909 = vst [vmem:[%s219_s10] sm:$0x1] %v1907_v50 }
 0x13d   : > { %1910 = vst [vmem:[%s219_s10 + $0x1] sm:$0x1] %v1908_v51 }
 0x13e PF: > { %s13_s14 = sadd.s32 1, %s2970_s14   ;;  %s3591_s12 = smov %s2966_s13 }
 0x13f   : > { %p10_p5 = scmp.ge.s32.totalorder %s13_s14, 4   ;;  %s3592_s13 = smov %s3594_s15 }
 0x141   :  { %12 = sbr.rel (!%p10_p5) target bundleno = 2 (0x2), region = 102 }

// kernel: _lambda_.6
= control target key start
LH: loop header
LB: loop body
LE: loop exit
PB: predicated region body
PF: predicated region fallthrough
CT: control target
= control target key end

     0   :  { %s3236_s12 = smov 0   ;;  %s3238_s13 = smov 0   ;;  %s3910_s0 = inlined_call_operand.vmem [shape: bf16[2,4,5,5,128], index: 0, kind: input, shape index: {}]   ;;  %s3911_s1 = inlined_call_operand.vmem [shape: bf16[4,4,128,128], index: 1, kind: input, shape index: {}]   ;;  %s3912_s2 = inlined_call_operand.vmem [shape: f32[1,128], index: 2, kind: input, shape index: {}]   ;;  %s3913_s3 = inlined_call_operand.vmem [shape: bf16[2,4,4,128], index: 3, kind: output, shape index: {}]  }
   0x1   :  { %s3240_s14 = smov 0  }
   0x2 LB: > { %s22_s15 = sadd.s32 1, %s3210_s13  ;;  %p2264_p0 = scmp.ge.s32.totalorder %s3214_s14, 1  ;;  %s3214_s14 = sphi %s3240_s14, %s13_s14   ;;  %s3210_s13 = sphi %s3238_s13, %s3919_s13   ;;  %s3206_s12 = sphi %s3236_s12, %s3918_s12  }
   0x3   : > { %p23_p1 = scmp.ge.s32.totalorder %s22_s15, 2  ;;  %p168_p2 = scmp.lt.s32.totalorder %s3214_s14, 3 }
   0x5   : > { %s3921_s15 = smov (%p23_p1, %s22_s15), 0  ;;  %p169_p3 = pnand %p2264_p0, %p168_p2 }
   0x6   : > { %p202_p4 = scmp.lt.s32.totalorder (!%p169_p3), %s3206_s12, 1 }
   0x7   : > { %172 = sbr.rel (%p169_p3) target bundleno = 363 (0x16b), region = 32 }
   0xc   : > { %v3053_v0 = vld [vmem:[%s3911_s1 + $0xb8] sm:$0xff]  ;;  %v3052_v2 = vld [vmem:[%s3911_s1 + $0xb0] sm:$0xff]  ;;  %s3923_s12 = smov (!%p202_p4, %s3206_s12), 1  ;;  %v3051_v7 = vld [vmem:[%s3911_s1 + $0xa8] sm:$0xff]  ;;  %vm251_vm0 = vcmask 1041408   ;;  %vm255_vm2 = vcmask 1043458  }
   0xd   : > { %v3045_v1 = vld [vmem:[%s3911_s1 + $0x38] sm:$0xff]  ;;  %414 = vmatpush.bf16.msra.mxu0 %v3053_v0  ;;  %v3044_v3 = vld [vmem:[%s3911_s1 + $0x30] sm:$0xff]  ;;  %v3043_v8 = vld [vmem:[%s3911_s1 + $0x28] sm:$0xff]  ;;  %s3166_s7 = smul.u32 80, %s3923_s12  ;;  %vm277_vm1 = vsmask.f32 1280 }
   0xe   : > { %485 = vmatpush.bf16.msra.mxu1 %v3045_v1  ;;  %v3061_v4 = vld [vmem:[%s3911_s1 + $0x238] sm:$0xff]  ;;  %v3060_v5 = vld [vmem:[%s3911_s1 + $0x230] sm:$0xff]  ;;  %v3059_v10 = vld [vmem:[%s3911_s1 + $0x228] sm:$0xff]  ;;  %vm278_vm3 = vsmask.f32 3336 }
   0xf   : > { %574 = vmatpush.bf16.msra.mxu2 %v3061_v4  ;;  %v3069_v6 = vld [vmem:[%s3911_s1 + $0x2b8] sm:$0xff]  ;;  %v3068_v9 = vld [vmem:[%s3911_s1 + $0x2b0] sm:$0xff]  ;;  %v3050_v11 = vld [vmem:[%s3911_s1 + $0xa0] sm:$0xff]  ;;  %s3299_s22 = scalar_lea.vmem %s3910_s0, %s3166_s7  ;;  %vm280_vm4 = vsmask.f32 5392  ;;  %s3037_s7 = sshll.u32 %s3923_s12, 3 }
  0x10   : > { %685 = vmatpush.bf16.msra.mxu3 %v3069_v6  ;;  %v3042_v12 = vld [vmem:[%s3911_s1 + $0x20] sm:$0xff]  ;;  %v3067_v13 = vld [vmem:[%s3911_s1 + $0x2a8] sm:$0xff]  ;;  %v3049_v14 = vld [vmem:[%s3911_s1 + $0x98] sm:$0xff]  ;;  %vm282_vm7 = vsmask.f32 7448  ;;  %s221_s10 = scalar_lea.vmem %s3913_s3, %s3037_s7 }
  0x11   : > { %415 = vmatpush.bf16.msra.mxu0 %v3052_v2  ;;  %v3058_v15 = vld [vmem:[%s3911_s1 + $0x220] sm:$0xff]  ;;  %v3041_v16 = vld [vmem:[%s3911_s1 + $0x18] sm:$0xff]  ;;  %v3320_v19 = vld [vmem:[%s3299_s22 + $0x8] sm:$0x7] }
  0x12   : > { %486 = vmatpush.bf16.msra.mxu1 %v3044_v3  ;;  %v3314_v17 = vld [vmem:[%s3299_s22] sm:$0x7]  ;;  %v3317_v18 = vld [vmem:[%s3299_s22 + $0x4] sm:$0x7]  ;;  %v3323_v20 = vld [vmem:[%s3299_s22 + $0xc] sm:$0x7] }
  0x13   : > { %575 = vmatpush.bf16.msra.mxu2 %v3060_v5  ;;  %v247_v21 = vrot.slane %v3314_v17, 2  ;;  %v248_v22 = vrot.slane %v3317_v18, 2  ;;  %v3066_v23 = vld [vmem:[%s3911_s1 + $0x2a0] sm:$0xff]  ;;  %v249_v24 = vrot.slane %v3320_v19, 2  ;;  %v250_v25 = vrot.slane %v3323_v20, 2  ;;  %v3057_v26 = vld [vmem:[%s3911_s1 + $0x218] sm:$0xff]  ;;  %vm279_vm5 = vmor %vm277_vm1, %vm278_vm3 }
  0x14   : > { %686 = vmatpush.bf16.msra.mxu3 %v3068_v9  ;;  %v3048_v34 = vld [vmem:[%s3911_s1 + $0x90] sm:$0xff]  ;;  %v3065_v40 = vld [vmem:[%s3911_s1 + $0x298] sm:$0xff]  ;;  %vm3366_vm6 = vmor %vm279_vm5, %vm280_vm4 }
  0x15   : > { %416 = vmatpush.bf16.msra.mxu0 %v3051_v7  ;;  %v254_v27 = vsel %vm251_vm0, %v3314_v17, %v247_v21  ;;  %v256_v28 = vsel %vm255_vm2, %v3314_v17, %v247_v21  ;;  %v262_v29 = vsel %vm255_vm2, %v3317_v18, %v248_v22  ;;  %v261_v31 = vsel %vm251_vm0, %v3317_v18, %v248_v22  ;;  %v3040_v35 = vld [vmem:[%s3911_s1 + $0x10] sm:$0xff]  ;;  %v3047_v54 = vld [vmem:[%s3911_s1 + $0x88] sm:$0xff]  ;;  %vm3385_vm8 = vmor %vm3366_vm6, %vm282_vm7 }
  0x16   : > { %487 = vmatpush.bf16.msra.mxu1 %v3043_v8  ;;  %v258_v30 = vrot.slane %v256_v28, 2  ;;  %v264_v32 = vrot.slane %v262_v29, 2  ;;  %v268_v33 = vsel %vm255_vm2, %v3320_v19, %v249_v24  ;;  %v267_v36 = vsel %vm251_vm0, %v3320_v19, %v249_v24  ;;  %v3056_v45 = vld [vmem:[%s3911_s1 + $0x210] sm:$0xff]  ;;  %v3039_v55 = vld [vmem:[%s3911_s1 + $0x8] sm:$0xff]  ;;  %v3093_v28 = vld [vmem:[%s3911_s1 + $0x278] sm:$0xff] }
  0x17   : > { %576 = vmatpush.bf16.msra.mxu2 %v3059_v10  ;;  %v270_v37 = vrot.slane %v268_v33, 2  ;;  %v274_v38 = vsel %vm255_vm2, %v3323_v20, %v250_v25  ;;  %v284_v39 = vshrl.u32 %v254_v27, 16  ;;  %v273_v41 = vsel %vm251_vm0, %v3323_v20, %v250_v25  ;;  %v3064_v60 = vld [vmem:[%s3911_s1 + $0x290] sm:$0xff]  ;;  %v3055_v1 = vld [vmem:[%s3911_s1 + $0x208] sm:$0xff]  ;;  %v3062_v33 = vld [vmem:[%s3911_s1 + $0x280] sm:$0xff] }
  0x18   : > { %687 = vmatpush.bf16.msra.mxu3 %v3067_v13  ;;  %v276_v42 = vrot.slane %v274_v38, 2  ;;  %v287_v43 = vshll.u32 %v254_v27, 16  ;;  %v293_v44 = vshll.u32 %v258_v30, 16  ;;  %v297_v47 = vshrl.u32 %v261_v31, 16  ;;  %v3063_v24 = vld [vmem:[%s3911_s1 + $0x288] sm:$0xff]  ;;  %v3089_v50 = vld [vmem:[%s3911_s1 + $0x258] sm:$0xff] }
  0x19   : > { %417 = vmatpush.bf16.msra.mxu0 %v3050_v11  ;;  %v286_v46 = vrot.slane %v284_v39, 6  ;;  %v300_v48 = vshll.u32 %v261_v31, 16  ;;  %v306_v49 = vshll.u32 %v264_v32, 16  ;;  %v310_v52 = vshrl.u32 %v267_v36, 16  ;;  %v3046_v11 = vld [vmem:[%s3911_s1 + $0x80] sm:$0xff]  ;;  %v3076_v31 = vld [vmem:[%s3911_s1 + $0x70] sm:$0xff] }
  0x1a   : > { %488 = vmatpush.bf16.msra.mxu1 %v3042_v12  ;;  %v289_v51 = vrot.slane %v287_v43, 7  ;;  %v313_v53 = vshll.u32 %v267_v36, 16  ;;  %v295_v56 = vrot.slane %v293_v44, 7  ;;  %v299_v57 = vrot.slane %v297_v47, 6  ;;  %v3038_v12 = vld [vmem:[%s3911_s1] sm:$0xff]  ;;  %v3084_v32 = vld [vmem:[%s3911_s1 + $0xf0] sm:$0xff] }
  0x1b   : > { %577 = vmatpush.bf16.msra.mxu2 %v3058_v15  ;;  %v302_v58 = vrot.slane %v300_v48, 7  ;;  %v319_v59 = vshll.u32 %v270_v37, 16  ;;  %v312_v62 = vrot.slane %v310_v52, 6  ;;  %v323_v0 = vshrl.u32 %v273_v41, 16  ;;  %v3077_v15 = vld [vmem:[%s3911_s1 + $0x78] sm:$0xff]  ;;  %v3075_v37 = vld [vmem:[%s3911_s1 + $0x68] sm:$0xff] }
  0x1c   : > { %688 = vmatpush.bf16.msra.mxu3 %v3066_v23  ;;  %v290_v61 = vor.u32 %v289_v51, %v286_v46  ;;  %v315_v63 = vrot.slane %v313_v53, 7  ;;  %v308_v4 = vrot.slane %v306_v49, 7  ;;  %v326_v5 = vshll.u32 %v273_v41, 16  ;;  %v3054_v23 = vld [vmem:[%s3911_s1 + $0x200] sm:$0xff]  ;;  %v3101_v36 = vld [vmem:[%s3911_s1 + $0x2f8] sm:$0xff]  ;;  %v3083_v38 = vld [vmem:[%s3911_s1 + $0xe8] sm:$0xff] }
  0x1d   : > { %418 = vmatpush.bf16.msra.mxu0 %v3049_v14  ;;  %v303_v3 = vor.u32 %v302_v58, %v299_v57  ;;  %v332_v6 = vshll.u32 %v276_v42, 16  ;;  %v321_v9 = vrot.slane %v319_v59, 7  ;;  %v325_v10 = vrot.slane %v323_v0, 6  ;;  %v3091_v39 = vld [vmem:[%s3911_s1 + $0x268] sm:$0xff]  ;;  %v226_v41 = vld [vmem:[%s3299_s22 + $0x10] sm:$0x7] }
  0x1e   : > { %489 = vmatpush.bf16.msra.mxu1 %v3041_v16  ;;  %v291_v7 = vrot.slane %v290_v61, 2  ;;  %v316_v8 = vor.u32 %v315_v63, %v312_v62  ;;  %v328_v14 = vrot.slane %v326_v5, 7  ;;  %v3085_v16 = vld [vmem:[%s3911_s1 + $0xf8] sm:$0xff]  ;;  %v3074_v42 = vld [vmem:[%s3911_s1 + $0x60] sm:$0xff]  ;;  %v3099_v47 = vld [vmem:[%s3911_s1 + $0x2e8] sm:$0xff] }
  0x1f   : > { %578 = vmatpush.bf16.msra.mxu2 %v3057_v26  ;;  %v304_v13 = vrot.slane %v303_v3, 2  ;;  %v334_v27 = vrot.slane %v332_v6, 7  ;;  %v3082_v43 = vld [vmem:[%s3911_s1 + $0xe0] sm:$0xff]  ;;  %v3073_v48 = vld [vmem:[%s3911_s1 + $0x58] sm:$0xff]  ;;  %v3072_v52 = vld [vmem:[%s3911_s1 + $0x50] sm:$0xff] }
  0x20   : > { %689 = vmatpush.bf16.msra.mxu3 %v3065_v40  ;;  %v296_v21 = vsel %vm3385_vm8, %v291_v7, %v295_v56  ;;  %v317_v22 = vrot.slane %v316_v8, 2  ;;  %v329_v26 = vor.u32 %v328_v14, %v325_v10  ;;  %v3100_v40 = vld [vmem:[%s3911_s1 + $0x2f0] sm:$0xff]  ;;  %v3090_v46 = vld [vmem:[%s3911_s1 + $0x260] sm:$0xff]  ;;  %v3081_v49 = vld [vmem:[%s3911_s1 + $0xd8] sm:$0xff] }
  0x21   : > { %419 = vmatpush.bf16.msra.mxu0 %v3048_v34  ;;  %v3411_v25 = vsel %vm3385_vm8, %v304_v13, %v308_v4  ;;  %354 = vst [vmem:[#allocation1] ss:$4 sm:$0xff] %v296_v21  ;;  %v3098_v51 = vld [vmem:[%s3911_s1 + $0x2e0] sm:$0xff]  ;;  %v3080_v53 = vld [vmem:[%s3911_s1 + $0xd0] sm:$0xff]  ;;  %v3097_v58 = vld [vmem:[%s3911_s1 + $0x2d8] sm:$0xff] }
  0x22   : > { %490 = vmatpush.bf16.msra.mxu1 %v3040_v35  ;;  %v3418_v29 = vsel %vm3385_vm8, %v317_v22, %v321_v9  ;;  %357 = vst [vmem:[#allocation1 + $0x1] ss:$4 sm:$0xff] %v3411_v25  ;;  %v330_v30 = vrot.slane %v329_v26, 2  ;;  %v3092_v35 = vld [vmem:[%s3911_s1 + $0x270] sm:$0xff]  ;;  %v3071_v59 = vld [vmem:[%s3911_s1 + $0x48] sm:$0xff]  ;;  %v3109_v6 = vld [vmem:[%s3911_s1 + $0x138] sm:$0xff] }
  0x23   : > { %579 = vmatpush.bf16.msra.mxu2 %v3056_v45  ;;  %360 = vst [vmem:[#allocation1 + $0x2] ss:$4 sm:$0xff] %v3418_v29  ;;  %v591_v45 = vrot.slane %v226_v41, 2  ;;  %v3088_v57 = vld [vmem:[%s3911_s1 + $0x250] sm:$0xff]  ;;  %v3086_v8 = vld [vmem:[%s3911_s1 + $0x240] sm:$0xff]  ;;  %v3095_v10 = vld [vmem:[%s3911_s1 + $0x2c8] sm:$0xff] }
  0x24   : > { %690 = vmatpush.bf16.msra.mxu3 %v3064_v60  ;;  %v3433_v34 = vsel %vm3385_vm8, %v330_v30, %v334_v27  ;;  %v3079_v60 = vld [vmem:[%s3911_s1 + $0xc8] sm:$0xff]  ;;  %v3096_v3 = vld [vmem:[%s3911_s1 + $0x2d0] sm:$0xff]  ;;  %v3531_v9 = vld [vmem:[%s3299_s22 + $0x18] sm:$0x7] }
  0x25   : > { %420 = vmatpush.bf16.msra.mxu0 %v3047_v54  ;;  %363 = vst [vmem:[#allocation1 + $0x3] ss:$4 sm:$0xff] %v3433_v34  ;;  %v594_v56 = vsel %vm255_vm2, %v226_v41, %v591_v45  ;;  %v3525_v7 = vld [vmem:[%s3299_s22 + $0x14] sm:$0x7]  ;;  %v3540_v14 = vld [vmem:[%s3299_s22 + $0x20] sm:$0x7] }
  0x26   : > { %491 = vmatpush.bf16.msra.mxu1 %v3039_v55  ;;  %v596_v62 = vrot.slane %v594_v56, 2  ;;  %v3116_v21 = vld [vmem:[%s3911_s1 + $0x1b0] sm:$0xff]  ;;  %v806_v22 = vrot.slane %v3531_v9, 2 }
  0x27   : > { %580 = vmatpush.bf16.msra.mxu2 %v3055_v1  ;;  %v3087_v1 = vld [vmem:[%s3911_s1 + $0x248] sm:$0xff] }
  0x28   : > { %691 = vmatpush.bf16.msra.mxu3 %v3063_v24  ;;  %v606_v5 = vshll.u32 %v596_v62, 16  ;;  %v3094_v24 = vld [vmem:[%s3911_s1 + $0x2c0] sm:$0xff] }
  0x29   : > { %421 = vmatpush.bf16.msra.mxu0 %v3046_v11  ;;  %v3537_v11 = vld [vmem:[%s3299_s22 + $0x1c] sm:$0x7] }
  0x2a   : > { %492 = vmatpush.bf16.msra.mxu1 %v3038_v12  ;;  %v608_v13 = vrot.slane %v606_v5, 7  ;;  %v807_v26 = vrot.slane %v3537_v11, 2 }
  0x2b   : > { %581 = vmatpush.bf16.msra.mxu2 %v3054_v23  ;;  %v3125_v23 = vld [vmem:[%s3911_s1 + $0x338] sm:$0xff] }
  0x2c   : > { %692 = vmatpush.bf16.msra.mxu3 %v3062_v33  ;;  %v364_v44 = vld.sshfl [vmem:[#allocation1] sm:$0xff pattern:$0x73625140]  ;;  %v3115_v33 = vld [vmem:[%s3911_s1 + $0x1a8] sm:$0xff] }
  0x2d   : > { %785 = vmatpush.bf16.msrb.mxu0 %v3077_v15  ;;  %428 = vst [vmem:[#allocation1] ss:$4 sm:$0xff] %v3314_v17  ;;  %v593_v17 = vsel %vm251_vm0, %v226_v41, %v591_v45  ;;  %v805_v15 = vrot.slane %v3525_v7, 2 }
  0x2e   : > { %959 = vmatpush.bf16.msrb.mxu1 %v3085_v16  ;;  %422 = vmatmul.bf16.vlgmr.msra.gmra.mxu0 %v364_v44  ;;  %430 = vst [vmem:[#allocation1 + $0x1] ss:$4 sm:$0xff] %v3317_v18  ;;  %v597_v54 = vshrl.u32 %v593_v17, 16  ;;  %v600_v55 = vshll.u32 %v593_v17, 16  ;;  %v3108_v16 = vld [vmem:[%s3911_s1 + $0x130] sm:$0xff] }
  0x2f   : > { %1050 = vmatpush.bf16.msrb.mxu2 %v3093_v28  ;;  %432 = vst [vmem:[#allocation1 + $0x2] ss:$4 sm:$0xff] %v3320_v19  ;;  %v808_v28 = vrot.slane %v3540_v14, 2 }
  0x30   : > { %1161 = vmatpush.bf16.msrb.mxu3 %v3101_v36  ;;  %434 = vst [vmem:[#allocation1 + $0x3] ss:$4 sm:$0xff] %v3323_v20  ;;  %v599_v63 = vrot.slane %v597_v54, 6  ;;  %v602_v0 = vrot.slane %v600_v55, 7  ;;  %v3105_v55 = vld [vmem:[%s3911_s1 + $0x118] sm:$0xff] }
  0x31   : > { %786 = vmatpush.bf16.msrb.mxu0 %v3076_v31  ;;  %v810_v31 = vsel %vm251_vm0, %v3525_v7, %v805_v15  ;;  %v825_v36 = vsel %vm251_vm0, %v3540_v14, %v808_v28  ;;  %v826_v17 = vsel %vm255_vm2, %v3540_v14, %v808_v28 }
  0x32   : > { %960 = vmatpush.bf16.msrb.mxu1 %v3084_v32  ;;  %v603_v4 = vor.u32 %v602_v0, %v599_v63  ;;  %v3107_v32 = vld [vmem:[%s3911_s1 + $0x128] sm:$0xff] }
  0x33   : > { %1051 = vmatpush.bf16.msrb.mxu2 %v3092_v35  ;;  %v3124_v35 = vld [vmem:[%s3911_s1 + $0x330] sm:$0xff] }
  0x34   : > { %1162 = vmatpush.bf16.msrb.mxu3 %v3100_v40  ;;  %v604_v12 = vrot.slane %v603_v4, 2 }
  0x35   : > { %787 = vmatpush.bf16.msrb.mxu0 %v3075_v37  ;;  %v829_v37 = vshrl.u32 %v810_v31, 16 }
  0x36   : > { %961 = vmatpush.bf16.msrb.mxu1 %v3083_v38  ;;  %v609_v30 = vsel %vm3385_vm8, %v604_v12, %v608_v13  ;;  %v832_v38 = vshll.u32 %v810_v31, 16 }
  0x37   : > { %1052 = vmatpush.bf16.msrb.mxu2 %v3091_v39  ;;  %v435_v61 = vld.sshfl [vmem:[#allocation1] sm:$0xff pattern:$0x73625140]  ;;  %v811_v39 = vsel %vm255_vm2, %v3525_v7, %v805_v15 }
  0x38   : > { %1163 = vmatpush.bf16.msrb.mxu3 %v3099_v47  ;;  %493 = vmatmul.bf16.vlgmr.msra.gmra.mxu1 %v435_v61  ;;  %516 = vst [vmem:[#allocation1] ss:$4 sm:$0xff] %v3317_v18  ;;  %v3070_v18 = vld [vmem:[%s3911_s1 + $0x40] sm:$0xff]  ;;  %v868_v47 = vshrl.u32 %v825_v36, 16 }
  0x39   : > { %788 = vmatpush.bf16.msrb.mxu0 %v3074_v42  ;;  %518 = vst [vmem:[#allocation1 + $0x1] ss:$4 sm:$0xff] %v3320_v19  ;;  %v3078_v19 = vld [vmem:[%s3911_s1 + $0xc0] sm:$0xff] }
  0x3a   : > { %962 = vmatpush.bf16.msrb.mxu1 %v3082_v43  ;;  %520 = vst [vmem:[#allocation1 + $0x2] ss:$4 sm:$0xff] %v3323_v20  ;;  %v3117_v20 = vld [vmem:[%s3911_s1 + $0x1b8] sm:$0xff]  ;;  %v3114_v42 = vld [vmem:[%s3911_s1 + $0x1a0] sm:$0xff]  ;;  %v816_v43 = vsel %vm255_vm2, %v3531_v9, %v806_v22  ;;  %v870_v61 = vrot.slane %v868_v47, 6 }
  0x3b   : > { %1053 = vmatpush.bf16.msrb.mxu2 %v3090_v46  ;;  %523 = vst [vmem:[#allocation1 + $0x3] ss:$4 sm:$0xff] %v226_v41  ;;  %v3106_v41 = vld [vmem:[%s3911_s1 + $0x120] sm:$0xff]  ;;  %v821_v46 = vsel %vm255_vm2, %v3537_v11, %v807_v26 }
  0x3c   : > { %1164 = vmatpush.bf16.msrb.mxu3 %v3098_v51  ;;  %v834_v51 = vrot.slane %v832_v38, 7  ;;  %v823_v56 = vrot.slane %v821_v46, 2  ;;  %v3111_v38 = vld [vmem:[%s3911_s1 + $0x188] sm:$0xff] }
  0x3d   : > { %789 = vmatpush.bf16.msrb.mxu0 %v3073_v48  ;;  %v871_v48 = vshll.u32 %v825_v36, 16 }
  0x3e   : > { %963 = vmatpush.bf16.msrb.mxu1 %v3081_v49  ;;  %v813_v49 = vrot.slane %v811_v39, 2  ;;  %v864_v4 = vshll.u32 %v823_v56, 16  ;;  %v3121_v39 = vld [vmem:[%s3911_s1 + $0x318] sm:$0xff] }
  0x3f   : > { %1054 = vmatpush.bf16.msrb.mxu2 %v3089_v50  ;;  %v831_v50 = vrot.slane %v829_v37, 6  ;;  %v873_v62 = vrot.slane %v871_v48, 7  ;;  %v3102_v37 = vld [vmem:[%s3911_s1 + $0x100] sm:$0xff] }
  0x40   : > { %1165 = vmatpush.bf16.msrb.mxu3 %v3097_v58  ;;  %v838_v0 = vshll.u32 %v813_v49, 16  ;;  %v3110_v48 = vld [vmem:[%s3911_s1 + $0x180] sm:$0xff]  ;;  %v3120_v49 = vld [vmem:[%s3911_s1 + $0x310] sm:$0xff] }
  0x41   : > { %790 = vmatpush.bf16.msrb.mxu0 %v3072_v52  ;;  %v818_v52 = vrot.slane %v816_v43, 2  ;;  %v835_v63 = vor.u32 %v834_v51, %v831_v50  ;;  %v874_v5 = vor.u32 %v873_v62, %v870_v61  ;;  %v3673_v51 = vld [vmem:[%s3299_s22 + $0x28] sm:$0x7] }
  0x42   : > { %964 = vmatpush.bf16.msrb.mxu1 %v3080_v53  ;;  %v524_v27 = vld.sshfl [vmem:[#allocation1] sm:$0xff pattern:$0x73625140]  ;;  %v840_v12 = vrot.slane %v838_v0, 7  ;;  %v1281_v56 = vrot.slane %v3673_v51, 2 }
  0x43   : > { %1055 = vmatpush.bf16.msrb.mxu2 %v3088_v57  ;;  %627 = vst [vmem:[#allocation1] ss:$4 sm:$0xff] %v3411_v25  ;;  %v815_v25 = vsel %vm251_vm0, %v3531_v9, %v806_v22  ;;  %v875_v22 = vrot.slane %v874_v5, 2 }
  0x44   : > { %1166 = vmatpush.bf16.msrb.mxu3 %v3096_v3  ;;  %582 = vmatmul.bf16.vlgmr.msra.gmra.mxu2 %v524_v27  ;;  %629 = vst [vmem:[#allocation1 + $0x1] ss:$4 sm:$0xff] %v3418_v29  ;;  %v820_v29 = vsel %vm251_vm0, %v3537_v11, %v807_v26  ;;  %v842_v40 = vshrl.u32 %v815_v25, 16  ;;  %v851_v3 = vshll.u32 %v818_v52, 16  ;;  %v3676_v52 = vld [vmem:[%s3299_s22 + $0x2c] sm:$0x7]  ;;  %v1286_v62 = vsel %vm251_vm0, %v3673_v51, %v1281_v56 }
  0x45   : > { %791 = vmatpush.bf16.msrb.mxu0 %v3071_v59  ;;  %631 = vst [vmem:[#allocation1 + $0x2] ss:$4 sm:$0xff] %v3433_v34  ;;  %v845_v34 = vshll.u32 %v815_v25, 16  ;;  %v855_v44 = vshrl.u32 %v820_v29, 16  ;;  %v858_v45 = vshll.u32 %v820_v29, 16  ;;  %v3112_v25 = vld [vmem:[%s3911_s1 + $0x190] sm:$0xff] }
  0x46   : > { %965 = vmatpush.bf16.msrb.mxu1 %v3079_v60  ;;  %634 = vst [vmem:[#allocation1 + $0x3] ss:$4 sm:$0xff] %v609_v30  ;;  %v844_v53 = vrot.slane %v842_v40, 6  ;;  %v828_v60 = vrot.slane %v826_v17, 2  ;;  %v853_v15 = vrot.slane %v851_v3, 7  ;;  %v3132_v29 = vld [vmem:[%s3911_s1 + $0x3b0] sm:$0xff] }
  0x47   : > { %1056 = vmatpush.bf16.msrb.mxu2 %v3087_v1  ;;  %v847_v54 = vrot.slane %v845_v34, 7  ;;  %v857_v57 = vrot.slane %v855_v44, 6  ;;  %v860_v58 = vrot.slane %v858_v45, 7  ;;  %v3131_v40 = vld [vmem:[%s3911_s1 + $0x3a8] sm:$0xff]  ;;  %v3141_v34 = vld [vmem:[%s3911_s1 + $0x178] sm:$0xff]  ;;  %v3130_v17 = vld [vmem:[%s3911_s1 + $0x3a0] sm:$0xff] }
  0x48   : > { %1167 = vmatpush.bf16.msrb.mxu3 %v3095_v10  ;;  %v836_v10 = vrot.slane %v835_v63, 2  ;;  %v3129_v3 = vld [vmem:[%s3911_s1 + $0x398] sm:$0xff]  ;;  %v1308_v5 = vshll.u32 %v1286_v62, 16 }
  0x49   : > { %792 = vmatpush.bf16.msrb.mxu0 %v3070_v18  ;;  %v848_v1 = vor.u32 %v847_v54, %v844_v53  ;;  %v3104_v18 = vld [vmem:[%s3911_s1 + $0x110] sm:$0xff] }
  0x4a   : > { %966 = vmatpush.bf16.msrb.mxu1 %v3078_v19  ;;  %v861_v19 = vor.u32 %v860_v58, %v857_v57  ;;  %v841_v26 = vsel %vm3385_vm8, %v836_v10, %v840_v12  ;;  %v3679_v53 = vld [vmem:[%s3299_s22 + $0x30] sm:$0x7]  ;;  %v1282_v57 = vrot.slane %v3676_v52, 2  ;;  %v3118_v10 = vld [vmem:[%s3911_s1 + $0x300] sm:$0xff] }
  0x4b   : > { %1057 = vmatpush.bf16.msrb.mxu2 %v3086_v8  ;;  %v3133_v8 = vld [vmem:[%s3911_s1 + $0x3b8] sm:$0xff]  ;;  %v849_v13 = vrot.slane %v848_v1, 2  ;;  %v1283_v58 = vrot.slane %v3679_v53, 2  ;;  %v3119_v1 = vld [vmem:[%s3911_s1 + $0x308] sm:$0xff]  ;;  %v3128_v12 = vld [vmem:[%s3911_s1 + $0x390] sm:$0xff] }
  0x4c   : > { %1168 = vmatpush.bf16.msrb.mxu3 %v3094_v24  ;;  %v2448_v24 = vld [vmem:[%s3299_s22 + $0x24] sm:$0x7]  ;;  %v1291_v63 = vsel %vm251_vm0, %v3676_v52, %v1282_v57 }
  0x4d   : > { %1261 = vmatpush.bf16.msra.mxu0 %v3109_v6  ;;  %v635_v59 = vld.sshfl [vmem:[#allocation1] sm:$0xff pattern:$0x73625140]  ;;  %v877_v6 = vshll.u32 %v828_v60, 16  ;;  %v854_v27 = vsel %vm3385_vm8, %v849_v13, %v853_v15  ;;  %v1067_v31 = vrot.slane %v2448_v24, 2  ;;  %v1296_v0 = vsel %vm251_vm0, %v3679_v53, %v1283_v58 }
  0x4e   : > { %1435 = vmatpush.bf16.msra.mxu1 %v3117_v20  ;;  %693 = vmatmul.bf16.vlgmr.msra.gmra.mxu3 %v635_v59  ;;  %725 = vst [vmem:[#allocation1] ss:$4 sm:$0xff] %v3525_v7  ;;  %v3113_v20 = vld [vmem:[%s3911_s1 + $0x198] sm:$0xff]  ;;  %v3123_v7 = vld [vmem:[%s3911_s1 + $0x328] sm:$0xff]  ;;  %v1292_v13 = vsel %vm255_vm2, %v3676_v52, %v1282_v57  ;;  %v1331_v15 = vshrl.u32 %v1296_v0, 16  ;;  %v3146_v57 = vld [vmem:[%s3911_s1 + $0x1e0] sm:$0xff] }
  0x4f   : > { %1526 = vmatpush.bf16.msra.mxu2 %v3125_v23  ;;  %728 = vst [vmem:[#allocation1 + $0x1] ss:$4 sm:$0xff] %v3531_v9  ;;  %v879_v23 = vrot.slane %v877_v6, 7  ;;  %v1069_v36 = vsel %vm251_vm0, %v2448_v24, %v1067_v31  ;;  %v1070_v43 = vsel %vm255_vm2, %v2448_v24, %v1067_v31  ;;  %v3149_v6 = vld [vmem:[%s3911_s1 + $0x1f8] sm:$0xff]  ;;  %v1310_v31 = vrot.slane %v1308_v5, 7  ;;  %v3135_v5 = vld [vmem:[%s3911_s1 + $0x148] sm:$0xff] }
  0x50   : > { %731 = vst [vmem:[#allocation1 + $0x2] ss:$4 sm:$0xff] %v3537_v11  ;;  %1637 = vmatpush.bf16.msra.mxu3 %v3133_v8  ;;  %v1072_v45 = vrot.slane %v1070_v43, 2  ;;  %v1321_v8 = vshll.u32 %v1291_v63, 16 }
  0x51   : > { %1262 = vmatpush.bf16.msra.mxu0 %v3108_v16  ;;  %734 = vst [vmem:[#allocation1 + $0x3] ss:$4 sm:$0xff] %v3540_v14  ;;  %v862_v16 = vrot.slane %v861_v19, 2 }
  0x52   : > { %1436 = vmatpush.bf16.msra.mxu1 %v3116_v21  ;;  %v866_v21 = vrot.slane %v864_v4, 7  ;;  %v1082_v50 = vshll.u32 %v1072_v45, 16  ;;  %v1305_v4 = vshrl.u32 %v1286_v62, 16 }
  0x53   : > { %1527 = vmatpush.bf16.msra.mxu2 %v3124_v35  ;;  %v3122_v35 = vld [vmem:[%s3911_s1 + $0x320] sm:$0xff] }
  0x54   : > { %v3620_v30 = vsel %vm3385_vm8, %v862_v16, %v866_v21  ;;  %1638 = vmatpush.bf16.msra.mxu3 %v3132_v29  ;;  %v1334_v16 = vshll.u32 %v1296_v0, 16  ;;  %v3138_v21 = vld [vmem:[%s3911_s1 + $0x160] sm:$0xff]  ;;  %v1333_v29 = vrot.slane %v1331_v15, 6  ;;  %v3164_v15 = vld [vmem:[%s3911_s1 + $0x3f0] sm:$0xff] }
  0x55   : > { %1263 = vmatpush.bf16.msra.mxu0 %v3107_v32  ;;  %v3624_v32 = vsel %vm3385_vm8, %v875_v22, %v879_v23  ;;  %v3148_v22 = vld [vmem:[%s3911_s1 + $0x1f0] sm:$0xff]  ;;  %v1297_v23 = vsel %vm255_vm2, %v3679_v53, %v1283_v58 }
  0x56   : > { %1437 = vmatpush.bf16.msra.mxu1 %v3115_v33  ;;  %v3103_v33 = vld [vmem:[%s3911_s1 + $0x108] sm:$0xff]  ;;  %v3156_v58 = vld [vmem:[%s3911_s1 + $0x370] sm:$0xff] }
  0x57   : > { %1528 = vmatpush.bf16.msra.mxu2 %v3123_v7  ;;  %v1318_v7 = vshrl.u32 %v1291_v63, 16  ;;  %v2645_v63 = vld [vmem:[%s3299_s22 + $0x38] sm:$0x7] }
  0x58   : > { %v735_v28 = vld.sshfl [vmem:[#allocation1] sm:$0xff pattern:$0x73625140]  ;;  %1639 = vmatpush.bf16.msra.mxu3 %v3131_v40 }
  0x59   : > { %1264 = vmatpush.bf16.msra.mxu0 %v3106_v41  ;;  %899 = vst [vmem:[#allocation1] ss:$4 sm:$0xff] %v841_v26  ;;  %v1073_v41 = vshrl.u32 %v1069_v36, 16 }
  0x5a   : > { %1438 = vmatpush.bf16.msra.mxu1 %v3114_v42  ;;  %793 = vmatmul.bf16.vlgmr.msrb.gmra.mxu0 %v735_v28  ;;  %902 = vst [vmem:[#allocation1 + $0x1] ss:$4 sm:$0xff] %v854_v27  ;;  %v1076_v42 = vshll.u32 %v1069_v36, 16  ;;  %v1336_v36 = vrot.slane %v1334_v16, 7 }
  0x5b   : > { %905 = vst [vmem:[#allocation1 + $0x2] ss:$4 sm:$0xff] %v3620_v30  ;;  %1529 = vmatpush.bf16.msra.mxu2 %v3122_v35  ;;  %v1075_v46 = vrot.slane %v1073_v41, 6  ;;  %v1299_v35 = vrot.slane %v1297_v23, 2 }
  0x5c   : > { %908 = vst [vmem:[#allocation1 + $0x3] ss:$4 sm:$0xff] %v3624_v32  ;;  %v1078_v47 = vrot.slane %v1076_v42, 7  ;;  %1640 = vmatpush.bf16.msra.mxu3 %v3130_v17 }
  0x5d   : > { %1265 = vmatpush.bf16.msra.mxu0 %v3105_v55  ;;  %v1084_v55 = vrot.slane %v1082_v50, 7  ;;  %v1340_v45 = vshll.u32 %v1299_v35, 16  ;;  %v3827_v35 = vld [vmem:[%s3299_s22 + $0x40] sm:$0x7] }
  0x5e   : > { %1439 = vmatpush.bf16.msra.mxu1 %v3113_v20  ;;  %v1287_v20 = vsel %vm255_vm2, %v3673_v51, %v1281_v56 }
  0x5f   : > { %1530 = vmatpush.bf16.msra.mxu2 %v3121_v39 }
  0x60   : > { %1641 = vmatpush.bf16.msra.mxu3 %v3129_v3 }
  0x61   : > { %1266 = vmatpush.bf16.msra.mxu0 %v3104_v18  ;;  %v3139_v18 = vld [vmem:[%s3911_s1 + $0x168] sm:$0xff] }
  0x62   : > { %1440 = vmatpush.bf16.msra.mxu1 %v3112_v25  ;;  %v1323_v25 = vrot.slane %v1321_v8, 7  ;;  %v3134_v8 = vld [vmem:[%s3911_s1 + $0x140] sm:$0xff] }
  0x63   : > { %v909_v44 = vld.sshfl [vmem:[#allocation1] sm:$0xff pattern:$0x73625140]  ;;  %1531 = vmatpush.bf16.msra.mxu2 %v3120_v49 }
  0x64   : > { %967 = vmatmul.bf16.vlgmr.msrb.gmra.mxu1 %v909_v44  ;;  %992 = vst [vmem:[#allocation1] ss:$4 sm:$0xff] %v3531_v9  ;;  %v3140_v9 = vld [vmem:[%s3911_s1 + $0x170] sm:$0xff]  ;;  %1642 = vmatpush.bf16.msra.mxu3 %v3128_v12  ;;  %v1337_v44 = vor.u32 %v1336_v36, %v1333_v29  ;;  %v3830_v29 = vld [vmem:[%s3299_s22 + $0x44] sm:$0x7] }
  0x65   : > { %1267 = vmatpush.bf16.msra.mxu0 %v3103_v33  ;;  %994 = vst [vmem:[#allocation1 + $0x1] ss:$4 sm:$0xff] %v3537_v11  ;;  %v1079_v11 = vor.u32 %v1078_v47, %v1075_v46  ;;  %v1320_v33 = vrot.slane %v1318_v7, 6  ;;  %v3127_v46 = vld [vmem:[%s3911_s1 + $0x388] sm:$0xff]  ;;  %v3137_v47 = vld [vmem:[%s3911_s1 + $0x158] sm:$0xff] }
  0x66   : > { %1441 = vmatpush.bf16.msra.mxu1 %v3111_v38  ;;  %996 = vst [vmem:[#allocation1 + $0x2] ss:$4 sm:$0xff] %v3540_v14  ;;  %v3682_v14 = vld [vmem:[%s3299_s22 + $0x34] sm:$0x7]  ;;  %v3165_v7 = vld [vmem:[%s3911_s1 + $0x3f8] sm:$0xff] }
  0x67   : > { %999 = vst [vmem:[#allocation1 + $0x3] ss:$4 sm:$0xff] %v2448_v24  ;;  %v1080_v54 = vrot.slane %v1079_v11, 2  ;;  %v1284_v60 = vrot.slane %v3682_v14, 2  ;;  %1532 = vmatpush.bf16.msra.mxu2 %v3119_v1  ;;  %v1324_v42 = vor.u32 %v1323_v25, %v1320_v33 }
  0x68   : > { %1643 = vmatpush.bf16.msra.mxu3 %v3127_v46 }
  0x69   : > { %1268 = vmatpush.bf16.msra.mxu0 %v3102_v37  ;;  %v1085_v61 = vsel %vm3385_vm8, %v1080_v54, %v1084_v55  ;;  %v1301_v19 = vsel %vm251_vm0, %v3682_v14, %v1284_v60  ;;  %v1302_v28 = vsel %vm255_vm2, %v3682_v14, %v1284_v60  ;;  %v3136_v54 = vld [vmem:[%s3911_s1 + $0x150] sm:$0xff]  ;;  %v1325_v55 = vrot.slane %v1324_v42, 2 }
  0x6a   : > { %1442 = vmatpush.bf16.msra.mxu1 %v3110_v48  ;;  %v1344_v24 = vshrl.u32 %v1301_v19, 16  ;;  %v1347_v26 = vshll.u32 %v1301_v19, 16  ;;  %v1304_v38 = vrot.slane %v1302_v28, 2  ;;  %v3147_v48 = vld [vmem:[%s3911_s1 + $0x1e8] sm:$0xff]  ;;  %v1342_v60 = vrot.slane %v1340_v45, 7 }
  0x6b   : > { %1533 = vmatpush.bf16.msra.mxu2 %v3118_v10  ;;  %v1543_v19 = vrot.slane %v2645_v63, 2  ;;  %v3144_v10 = vld [vmem:[%s3911_s1 + $0x1d0] sm:$0xff]  ;;  %v3143_v28 = vld [vmem:[%s3911_s1 + $0x1c8] sm:$0xff] }
  0x6c   : > { %v1346_v39 = vrot.slane %v1344_v24, 6  ;;  %v1349_v40 = vrot.slane %v1347_v26, 7  ;;  %v1353_v17 = vshll.u32 %v1304_v38, 16  ;;  %v3833_v38 = vld [vmem:[%s3299_s22 + $0x48] sm:$0x7] }
  0x6d   : > { %1737 = vmatpush.bf16.msrb.mxu0 %v3141_v34  ;;  %v1545_v12 = vsel %vm251_vm0, %v2645_v63, %v1543_v19  ;;  %v1760_v42 = vrot.slane %v3833_v38, 2 }
  0x6e   : > { %v1000_v59 = vld.sshfl [vmem:[#allocation1] sm:$0xff pattern:$0x73625140]  ;;  %1911 = vmatpush.bf16.msrb.mxu1 %v3149_v6  ;;  %v1350_v49 = vor.u32 %v1349_v40, %v1346_v39  ;;  %v1355_v62 = vrot.slane %v1353_v17, 7  ;;  %v3145_v6 = vld [vmem:[%s3911_s1 + $0x1d8] sm:$0xff]  ;;  %v1549_v16 = vshrl.u32 %v1545_v12, 16 }
  0x6f   : > { %1058 = vmatmul.bf16.vlgmr.msrb.gmra.mxu2 %v1000_v59  ;;  %1103 = vst [vmem:[#allocation1] ss:$4 sm:$0xff] %v854_v27  ;;  %v1289_v27 = vrot.slane %v1287_v20, 2  ;;  %v1338_v59 = vrot.slane %v1337_v44, 2  ;;  %v3155_v20 = vld [vmem:[%s3911_s1 + $0x368] sm:$0xff]  ;;  %v1758_v40 = vrot.slane %v3827_v35, 2 }
  0x70   : > { %1105 = vst [vmem:[#allocation1 + $0x1] ss:$4 sm:$0xff] %v3620_v30  ;;  %v1307_v30 = vrot.slane %v1305_v4, 6  ;;  %v1551_v26 = vrot.slane %v1549_v16, 6 }
  0x71   : > { %1738 = vmatpush.bf16.msrb.mxu0 %v3140_v9  ;;  %1107 = vst [vmem:[#allocation1 + $0x2] ss:$4 sm:$0xff] %v3624_v32  ;;  %v1294_v32 = vrot.slane %v1292_v13, 2  ;;  %v1314_v41 = vshll.u32 %v1289_v27, 16  ;;  %v3157_v9 = vld [vmem:[%s3911_s1 + $0x378] sm:$0xff]  ;;  %v3154_v13 = vld [vmem:[%s3911_s1 + $0x360] sm:$0xff]  ;;  %v1767_v45 = vsel %vm251_vm0, %v3827_v35, %v1758_v40 }
  0x72   : > { %1110 = vst [vmem:[#allocation1 + $0x3] ss:$4 sm:$0xff] %v1085_v61  ;;  %1912 = vmatpush.bf16.msrb.mxu1 %v3148_v22  ;;  %v1311_v34 = vor.u32 %v1310_v31, %v1307_v30  ;;  %2002 = vmatpush.bf16.msrb.mxu2 %v3157_v9  ;;  %v1351_v61 = vrot.slane %v1350_v49, 2  ;;  %v1546_v22 = vsel %vm255_vm2, %v2645_v63, %v1543_v19  ;;  %v3153_v30 = vld [vmem:[%s3911_s1 + $0x358] sm:$0xff]  ;;  %v3163_v31 = vld [vmem:[%s3911_s1 + $0x3e8] sm:$0xff] }
  0x73   : > { %v1327_v43 = vshll.u32 %v1294_v32, 16  ;;  %v1316_v50 = vrot.slane %v1314_v41, 7  ;;  %v1548_v24 = vrot.slane %v1546_v22, 2  ;;  %v3152_v32 = vld [vmem:[%s3911_s1 + $0x350] sm:$0xff]  ;;  %v1777_v49 = vsel %vm251_vm0, %v3833_v38, %v1760_v42 }
  0x74   : > { %v1312_v11 = vrot.slane %v1311_v34, 2  ;;  %v3773_v4 = vsel %vm3385_vm8, %v1351_v61, %v1355_v62  ;;  %v1759_v34 = vrot.slane %v3830_v29, 2  ;;  %v1823_v61 = vshll.u32 %v1777_v49, 16 }
  0x75   : > { %1739 = vmatpush.bf16.msrb.mxu0 %v3139_v18  ;;  %v1329_v56 = vrot.slane %v1327_v43, 7  ;;  %v3769_v18 = vsel %vm3385_vm8, %v1338_v59, %v1342_v60  ;;  %v1558_v25 = vshll.u32 %v1548_v24, 16  ;;  %v1820_v60 = vshrl.u32 %v1777_v49, 16 }
  0x76   : > { %1913 = vmatpush.bf16.msrb.mxu1 %v3147_v48  ;;  %v1317_v0 = vsel %vm3385_vm8, %v1312_v11, %v1316_v50  ;;  %2003 = vmatpush.bf16.msrb.mxu2 %v3156_v58  ;;  %v1772_v46 = vsel %vm251_vm0, %v3830_v29, %v1759_v34  ;;  %v3161_v48 = vld [vmem:[%s3911_s1 + $0x3d8] sm:$0xff]  ;;  %v1794_v50 = vshrl.u32 %v1767_v45, 16  ;;  %v1773_v59 = vsel %vm255_vm2, %v3830_v29, %v1759_v34 }
  0x77   : > { %v3765_v1 = vsel %vm3385_vm8, %v1325_v55, %v1329_v56  ;;  %v3160_v55 = vld [vmem:[%s3911_s1 + $0x3d0] sm:$0xff]  ;;  %v1768_v56 = vsel %vm255_vm2, %v3827_v35, %v1758_v40  ;;  %v1810_v58 = vshll.u32 %v1772_v46, 16 }
  0x79   : > { %1740 = vmatpush.bf16.msrb.mxu0 %v3138_v21  ;;  %v1111_v37 = vld.sshfl [vmem:[#allocation1] sm:$0xff pattern:$0x73625140]  ;;  %v1552_v21 = vshll.u32 %v1545_v12, 16 }
  0x7a   : > { %1169 = vmatmul.bf16.vlgmr.msrb.gmra.mxu3 %v1111_v37  ;;  %1201 = vst [vmem:[#allocation1] ss:$4 sm:$0xff] %v3673_v51  ;;  %v3126_v51 = vld [vmem:[%s3911_s1 + $0x380] sm:$0xff]  ;;  %1914 = vmatpush.bf16.msrb.mxu1 %v3146_v57  ;;  %v1560_v37 = vrot.slane %v1558_v25, 7  ;;  %v1807_v57 = vshrl.u32 %v1772_v46, 16 }
  0x7b   : > { %1204 = vst [vmem:[#allocation1 + $0x1] ss:$4 sm:$0xff] %v3676_v52  ;;  %1644 = vmatpush.bf16.msra.mxu3 %v3126_v51  ;;  %2004 = vmatpush.bf16.msrb.mxu2 %v3155_v20  ;;  %v1554_v27 = vrot.slane %v1552_v21, 7  ;;  %v1797_v51 = vshll.u32 %v1767_v45, 16 }
  0x7c   : > { %1207 = vst [vmem:[#allocation1 + $0x2] ss:$4 sm:$0xff] %v3679_v53 }
  0x7d   : > { %1210 = vst [vmem:[#allocation1 + $0x3] ss:$4 sm:$0xff] %v3682_v14  ;;  %1741 = vmatpush.bf16.msrb.mxu0 %v3137_v47  ;;  %v1555_v33 = vor.u32 %v1554_v27, %v1551_v26  ;;  %v3151_v47 = vld [vmem:[%s3911_s1 + $0x348] sm:$0xff]  ;;  %v1799_v19 = vrot.slane %v1797_v51, 7 }
  0x7e   : > { %1915 = vmatpush.bf16.msrb.mxu1 %v3145_v6  ;;  %v1812_v6 = vrot.slane %v1810_v58, 7 }
  0x7f   : > { %2113 = vmatpush.bf16.msrb.mxu3 %v3165_v7  ;;  %2005 = vmatpush.bf16.msrb.mxu2 %v3154_v13  ;;  %v1556_v36 = vrot.slane %v1555_v33, 2 }
  0x81   : > { %1742 = vmatpush.bf16.msrb.mxu0 %v3136_v54  ;;  %v1561_v43 = vsel %vm3385_vm8, %v1556_v36, %v1560_v37  ;;  %v3150_v54 = vld [vmem:[%s3911_s1 + $0x340] sm:$0xff] }
  0x82   : > { %1916 = vmatpush.bf16.msrb.mxu1 %v3144_v10  ;;  %v1825_v10 = vrot.slane %v1823_v61, 7 }
  0x83   : > { %2114 = vmatpush.bf16.msrb.mxu3 %v3164_v15  ;;  %2006 = vmatpush.bf16.msrb.mxu2 %v3153_v30  ;;  %v3158_v30 = vld [vmem:[%s3911_s1 + $0x3c0] sm:$0xff] }
  0x84   : > { %v1211_v3 = vld.sshfl [vmem:[#allocation1] sm:$0xff pattern:$0x73625140] }
  0x85   : > { %1269 = vmatmul.bf16.vlgmr.msra.gmra.mxu0 %v1211_v3  ;;  %1375 = vst [vmem:[#allocation1] ss:$4 sm:$0xff] %v1317_v0  ;;  %v1770_v3 = vrot.slane %v1768_v56, 2 }
  0x86   : > { %1378 = vst [vmem:[#allocation1 + $0x1] ss:$4 sm:$0xff] %v3765_v1  ;;  %1743 = vmatpush.bf16.msrb.mxu0 %v3135_v5  ;;  %1917 = vmatpush.bf16.msrb.mxu1 %v3143_v28  ;;  %v1809_v5 = vrot.slane %v1807_v57, 6 }
  0x87   : > { %1381 = vst [vmem:[#allocation1 + $0x2] ss:$4 sm:$0xff] %v3769_v18  ;;  %2115 = vmatpush.bf16.msrb.mxu3 %v3163_v31  ;;  %2007 = vmatpush.bf16.msrb.mxu2 %v3152_v32  ;;  %v1803_v16 = vshll.u32 %v1770_v3, 16 }
  0x88   : > { %1384 = vst [vmem:[#allocation1 + $0x3] ss:$4 sm:$0xff] %v3773_v4  ;;  %v1813_v21 = vor.u32 %v1812_v6, %v1809_v5 }
  0x8a   : > { %1744 = vmatpush.bf16.msrb.mxu0 %v3134_v8  ;;  %v1822_v8 = vrot.slane %v1820_v60, 6  ;;  %v1814_v32 = vrot.slane %v1813_v21, 2 }
  0x8b   : > { %2008 = vmatpush.bf16.msrb.mxu2 %v3151_v47 }
  0x8c   : > { %v1826_v24 = vor.u32 %v1825_v10, %v1822_v8 }
  0x8e   : > { %v1827_v25 = vrot.slane %v1826_v24, 2 }
  0x8f   : > { %v1385_v23 = vld.sshfl [vmem:[#allocation1] sm:$0xff pattern:$0x73625140]  ;;  %2009 = vmatpush.bf16.msrb.mxu2 %v3150_v54 }
  0x90   : > { %1443 = vmatmul.bf16.vlgmr.msra.gmra.mxu1 %v1385_v23  ;;  %1468 = vst [vmem:[#allocation1] ss:$4 sm:$0xff] %v3676_v52  ;;  %v3142_v52 = vld [vmem:[%s3911_s1 + $0x1c0] sm:$0xff]  ;;  %v3159_v23 = vld [vmem:[%s3911_s1 + $0x3c8] sm:$0xff] }
  0x91   : > { %1470 = vst [vmem:[#allocation1 + $0x1] ss:$4 sm:$0xff] %v3679_v53  ;;  %v3162_v53 = vld [vmem:[%s3911_s1 + $0x3e0] sm:$0xff]  ;;  %1918 = vmatpush.bf16.msrb.mxu1 %v3142_v52  ;;  %v1805_v52 = vrot.slane %v1803_v16, 7 }
  0x92   : > { %1472 = vst [vmem:[#allocation1 + $0x2] ss:$4 sm:$0xff] %v3682_v14  ;;  %v2838_v14 = vld [vmem:[%s3299_s22 + $0x3c] sm:$0x7]  ;;  %2116 = vmatpush.bf16.msrb.mxu3 %v3162_v53 }
  0x93   : > { %1475 = vst [vmem:[#allocation1 + $0x3] ss:$4 sm:$0xff] %v2645_v63  ;;  %v1757_v39 = vrot.slane %v2838_v14, 2  ;;  %v1778_v63 = vsel %vm255_vm2, %v3833_v38, %v1760_v42 }
  0x94   : > { %v1780_v7 = vrot.slane %v1778_v63, 2 }
  0x95   : > { %v1762_v44 = vsel %vm251_vm0, %v2838_v14, %v1757_v39  ;;  %v1763_v11 = vsel %vm255_vm2, %v2838_v14, %v1757_v39 }
  0x96   : > { %v1781_v17 = vshrl.u32 %v1762_v44, 16  ;;  %v1784_v9 = vshll.u32 %v1762_v44, 16  ;;  %2117 = vmatpush.bf16.msrb.mxu3 %v3161_v48  ;;  %v1765_v62 = vrot.slane %v1763_v11, 2  ;;  %v1829_v26 = vshll.u32 %v1780_v7, 16 }
  0x98   : > { %v1783_v0 = vrot.slane %v1781_v17, 6  ;;  %v1790_v13 = vshll.u32 %v1765_v62, 16  ;;  %v1831_v53 = vrot.slane %v1829_v26, 7 }
  0x9a   : > { %v1476_v41 = vld.sshfl [vmem:[#allocation1] sm:$0xff pattern:$0x73625140]  ;;  %2118 = vmatpush.bf16.msrb.mxu3 %v3160_v55  ;;  %v1792_v28 = vrot.slane %v1790_v13, 7 }
  0x9b   : > { %1534 = vmatmul.bf16.vlgmr.msra.gmra.mxu2 %v1476_v41  ;;  %1579 = vst [vmem:[#allocation1] ss:$4 sm:$0xff] %v3765_v1  ;;  %v1786_v1 = vrot.slane %v1784_v9, 7  ;;  %v1832_v41 = vsel %vm3385_vm8, %v1827_v25, %v1831_v53 }
  0x9c   : > { %1581 = vst [vmem:[#allocation1 + $0x1] ss:$4 sm:$0xff] %v3769_v18  ;;  %v1796_v18 = vrot.slane %v1794_v50, 6 }
  0x9d   : > { %1583 = vst [vmem:[#allocation1 + $0x2] ss:$4 sm:$0xff] %v3773_v4  ;;  %v1775_v4 = vrot.slane %v1773_v59, 2  ;;  %v1787_v12 = vor.u32 %v1786_v1, %v1783_v0 }
  0x9e   : > { %1586 = vst [vmem:[#allocation1 + $0x3] ss:$4 sm:$0xff] %v1561_v43  ;;  %v1800_v15 = vor.u32 %v1799_v19, %v1796_v18  ;;  %2119 = vmatpush.bf16.msrb.mxu3 %v3159_v23 }
  0x9f   : > { %v1816_v22 = vshll.u32 %v1775_v4, 16  ;;  %v1788_v27 = vrot.slane %v1787_v12, 2 }
  0xa0   : > { %v1801_v31 = vrot.slane %v1800_v15, 2 }
  0xa1   : > { %v1818_v33 = vrot.slane %v1816_v22, 7  ;;  %v1793_v36 = vsel %vm3385_vm8, %v1788_v27, %v1792_v28 }
  0xa2   : > { %2120 = vmatpush.bf16.msrb.mxu3 %v3158_v30  ;;  %v1806_v37 = vsel %vm3385_vm8, %v1801_v31, %v1805_v52 }
  0xa3   : > { %v1819_v40 = vsel %vm3385_vm8, %v1814_v32, %v1818_v33 }
  0xa5   : > { %v1587_v20 = vld.sshfl [vmem:[#allocation1] sm:$0xff pattern:$0x73625140] }
  0xa6   : > { %1645 = vmatmul.bf16.vlgmr.msra.gmra.mxu3 %v1587_v20  ;;  %1677 = vst [vmem:[#allocation1] ss:$4 sm:$0xff] %v2838_v14  ;;  %v2842_v14 = vld [vmem:[%s3299_s22 + $0x4c] sm:$0x7] }
  0xa7   : > { %1680 = vst [vmem:[#allocation1 + $0x1] ss:$4 sm:$0xff] %v3827_v35  ;;  %v2019_v34 = vrot.slane %v2842_v14, 2 }
  0xa8   : > { %1683 = vst [vmem:[#allocation1 + $0x2] ss:$4 sm:$0xff] %v3830_v29 }
  0xa9   : > { %1686 = vst [vmem:[#allocation1 + $0x3] ss:$4 sm:$0xff] %v3833_v38  ;;  %v2021_v42 = vsel %vm251_vm0, %v2842_v14, %v2019_v34  ;;  %v2022_v45 = vsel %vm255_vm2, %v2842_v14, %v2019_v34 }
  0xaa   : > { %v2025_v43 = vshrl.u32 %v2021_v42, 16  ;;  %v2028_v44 = vshll.u32 %v2021_v42, 16  ;;  %v2024_v47 = vrot.slane %v2022_v45, 2  ;;  %v3191_v45 = vld [vmem:[%s3912_s2] ss:$0 sm:$0xff] }
  0xac   : > { %v2027_v48 = vrot.slane %v2025_v43, 6  ;;  %v2030_v49 = vrot.slane %v2028_v44, 7  ;;  %v2034_v9 = vshll.u32 %v2024_v47, 16 }
  0xae   : > { %v2031_v17 = vor.u32 %v2030_v49, %v2027_v48  ;;  %v2036_v50 = vrot.slane %v2034_v9, 7 }
  0xb0   : > { %v1687_v39 = vld.sshfl [vmem:[#allocation1] sm:$0xff pattern:$0x73625140]  ;;  %v2032_v11 = vrot.slane %v2031_v17, 2 }
  0xb1   : > { %1745 = vmatmul.bf16.vlgmr.msrb.gmra.mxu0 %v1687_v39  ;;  %1851 = vst [vmem:[#allocation1] ss:$4 sm:$0xff] %v1793_v36 }
  0xb2   : > { %1854 = vst [vmem:[#allocation1 + $0x1] ss:$4 sm:$0xff] %v1806_v37  ;;  %v2037_v54 = vsel %vm3385_vm8, %v2032_v11, %v2036_v50 }
  0xb3   : > { %1857 = vst [vmem:[#allocation1 + $0x2] ss:$4 sm:$0xff] %v1819_v40 }
  0xb4   : > { %1860 = vst [vmem:[#allocation1 + $0x3] ss:$4 sm:$0xff] %v1832_v41 }
  0xbb   : > { %v1861_v46 = vld.sshfl [vmem:[#allocation1] sm:$0xff pattern:$0x73625140] }
  0xbc   : > { %1919 = vmatmul.bf16.vlgmr.msrb.gmra.mxu1 %v1861_v46  ;;  %1944 = vst [vmem:[#allocation1] ss:$4 sm:$0xff] %v3827_v35  ;;  %v423_v35 = vpop.f32.mrf.mxu0 }
  0xbd   : > { %1946 = vst [vmem:[#allocation1 + $0x1] ss:$4 sm:$0xff] %v3830_v29  ;;  %v494_v29 = vpop.f32.mrf.mxu1 }
  0xbe   : > { %1948 = vst [vmem:[#allocation1 + $0x2] ss:$4 sm:$0xff] %v3833_v38  ;;  %v495_v63 = vadd.f32 %v494_v29, %v423_v35 }
  0xbf   : > { %1951 = vst [vmem:[#allocation1 + $0x3] ss:$4 sm:$0xff] %v2842_v14 }
  0xc4   : > { %v425_v38 = vpop.f32.mrf.mxu0 }
  0xc5   : > { %v496_v57 = vpop.f32.mrf.mxu1 }
  0xc6   : > { %v1952_v51 = vld.sshfl [vmem:[#allocation1] sm:$0xff pattern:$0x73625140]  ;;  %v497_v4 = vadd.f32 %v496_v57, %v425_v38 }
  0xc7   : > { %2010 = vmatmul.bf16.vlgmr.msrb.gmra.mxu2 %v1952_v51  ;;  %2055 = vst [vmem:[#allocation1] ss:$4 sm:$0xff] %v1806_v37  ;;  %v583_v56 = vpop.f32.mrf.mxu2 }
  0xc8   : > { %2057 = vst [vmem:[#allocation1 + $0x1] ss:$4 sm:$0xff] %v1819_v40  ;;  %v588_v1 = vadd.f32 %v583_v56, %v495_v63 }
  0xc9   : > { %2059 = vst [vmem:[#allocation1 + $0x2] ss:$4 sm:$0xff] %v1832_v41 }
  0xca   : > { %2062 = vst [vmem:[#allocation1 + $0x3] ss:$4 sm:$0xff] %v2037_v54 }
  0xcf   : > { %v585_v59 = vpop.f32.mrf.mxu2 }
  0xd0   : > { %v589_v20 = vadd.f32 %v585_v59, %v497_v4 }
  0xd1   : > { %v2063_v55 = vld.sshfl [vmem:[#allocation1] sm:$0xff pattern:$0x73625140]  ;;  %v694_v58 = vpop.f32.mrf.mxu3 }
  0xd2   : > { %2121 = vmatmul.bf16.vlgmr.msrb.gmra.mxu3 %v2063_v55  ;;  %v699_v3 = vadd.f32 %v694_v58, %v588_v1 }
  0xd7   : > { %v794_v60 = vpop.f32.mrf.mxu0 }
  0xd8   : > { %v799_v5 = vadd.f32 %v794_v60, %v699_v3 }
  0xd9   : > { %v696_v61 = vpop.f32.mrf.mxu3 }
  0xda   : > { %v700_v10 = vadd.f32 %v696_v61, %v589_v20 }
  0xdf   : > { %v796_v2 = vpop.f32.mrf.mxu0 }
  0xe0   : > { %v800_v21 = vadd.f32 %v796_v2, %v700_v10 }
  0xe1   : > { %v968_v62 = vpop.f32.mrf.mxu1 }
  0xe2   : > { %v973_v7 = vadd.f32 %v968_v62, %v799_v5 }
  0xe9   : > { %v970_v18 = vpop.f32.mrf.mxu1 }
  0xea   : > { %v974_v23 = vadd.f32 %v970_v18, %v800_v21 }
  0xf2   : > { %v1059_v0 = vpop.f32.mrf.mxu2 }
  0xf3   : > { %v1064_v15 = vadd.f32 %v1059_v0, %v973_v7 }
  0xfa   : > { %v1061_v6 = vpop.f32.mrf.mxu2 }
  0xfb   : > { %v1065_v30 = vadd.f32 %v1061_v6, %v974_v23 }
  0xfd   : > { %v1170_v19 = vpop.f32.mrf.mxu3 }
  0xfe   : > { %v1175_v22 = vadd.f32 %v1170_v19, %v1064_v15 }
 0x102   : > { %v1270_v8 = vpop.f32.mrf.mxu0 }
 0x103   : > { %v1275_v27 = vadd.f32 %v1270_v8, %v1175_v22 }
 0x105   : > { %v1172_v12 = vpop.f32.mrf.mxu3 }
 0x106   : > { %v1176_v32 = vadd.f32 %v1172_v12, %v1065_v30 }
 0x10a   : > { %v1272_v24 = vpop.f32.mrf.mxu0 }
 0x10b   : > { %v1276_v37 = vadd.f32 %v1272_v24, %v1176_v32 }
 0x10d   : > { %v1444_v13 = vpop.f32.mrf.mxu1 }
 0x10e   : > { %v1449_v52 = vadd.f32 %v1444_v13, %v1275_v27 }
 0x115   : > { %v1446_v28 = vpop.f32.mrf.mxu1 }
 0x116   : > { %v1450_v40 = vadd.f32 %v1446_v28, %v1276_v37 }
 0x11e   : > { %v1535_v16 = vpop.f32.mrf.mxu2 }
 0x11f   : > { %v1540_v33 = vadd.f32 %v1535_v16, %v1449_v52 }
 0x126   : > { %v1537_v31 = vpop.f32.mrf.mxu2 }
 0x127   : > { %v1541_v41 = vadd.f32 %v1537_v31, %v1450_v40 }
 0x129   : > { %v1646_v26 = vpop.f32.mrf.mxu3 }
 0x12a   : > { %v1651_v53 = vadd.f32 %v1646_v26, %v1540_v33 }
 0x12e   : > { %v1746_v25 = vpop.f32.mrf.mxu0 }
 0x12f   : > { %v1751_v34 = vadd.f32 %v1746_v25, %v1651_v53 }
 0x131   : > { %v1648_v14 = vpop.f32.mrf.mxu3 }
 0x132   : > { %v1652_v43 = vadd.f32 %v1648_v14, %v1541_v41 }
 0x136   : > { %v1748_v46 = vpop.f32.mrf.mxu0 }
 0x137   : > { %v1752_v17 = vadd.f32 %v1748_v46, %v1652_v43 }
 0x139   : > { %v1920_v36 = vpop.f32.mrf.mxu1 }
 0x13a   : > { %v1925_v42 = vadd.f32 %v1920_v36, %v1751_v34 }
 0x141   : > { %v1922_v49 = vpop.f32.mrf.mxu1 }
 0x142   : > { %v1926_v50 = vadd.f32 %v1922_v49, %v1752_v17 }
 0x14a   : > { %v2011_v39 = vpop.f32.mrf.mxu2 }
 0x14b   : > { %v2016_v44 = vadd.f32 %v2011_v39, %v1925_v42 }
 0x152   : > { %v2013_v11 = vpop.f32.mrf.mxu2 }
 0x153   : > { %v2017_v54 = vadd.f32 %v2013_v11, %v1926_v50 }
 0x155   : > { %v2122_v47 = vpop.f32.mrf.mxu3 }
 0x156   : > { %v2127_v48 = vadd.f32 %v2122_v47, %v2016_v44 }
 0x158   : > { %v2133_v9 = vadd.f32 %v3191_v45, %v2127_v48 }
 0x15a   : > { %v2135_v51 = vmul.f32 0.01, %v2133_v9 }
 0x15c   : > { %v2137_v55 = vmax.f32 %v2133_v9, %v2135_v51 }
 0x15d   : > { %v2124_v35 = vpop.f32.mrf.mxu3 }
 0x15e   : > { %v2141_v29 = vrot.slane %v2137_v55, 4  ;;  %v2145_v56 = vpack.c.bf16 %v2137_v55, %v2137_v55  ;;  %v2128_v38 = vadd.f32 %v2124_v35, %v2017_v54 }
 0x160   : > { %v2146_v57 = vpack.c.bf16 %v2141_v29, %v2141_v29  ;;  %2149 = vst [vmem:[%s221_s10] sm:$0x3] %v2145_v56  ;;  %v2134_v58 = vadd.f32 %v3191_v45, %v2128_v38 }
 0x162   : > { %2150 = vst [vmem:[%s221_s10 + $0x2] sm:$0x3] %v2146_v57  ;;  %v2136_v59 = vmul.f32 0.01, %v2134_v58 }
 0x164   : > { %v2138_v60 = vmax.f32 %v2134_v58, %v2136_v59 }
 0x166   : > { %v2142_v61 = vrot.slane %v2138_v60, 4  ;;  %v2147_v62 = vpack.c.bf16 %v2138_v60, %v2138_v60 }
 0x168   : > { %v2148_v63 = vpack.c.bf16 %v2142_v61, %v2142_v61  ;;  %2151 = vst [vmem:[%s221_s10 + $0x4] sm:$0x3] %v2147_v62 }
 0x16a   : > { %2152 = vst [vmem:[%s221_s10 + $0x6] sm:$0x3] %v2148_v63 }
 0x16b PF: > { %s13_s14 = sadd.s32 1, %s3214_s14   ;;  %s3918_s12 = smov %s3210_s13 }
 0x16c   : > { %p10_p5 = scmp.ge.s32.totalorder %s13_s14, 4   ;;  %s3919_s13 = smov %s3921_s15 }
 0x16e   :  { %12 = sbr.rel (!%p10_p5) target bundleno = 2 (0x2), region = 134 }

// kernel: _lambda_.9
= control target key start
LH: loop header
LB: loop body
LE: loop exit
PB: predicated region body
PF: predicated region fallthrough
CT: control target
= control target key end

     0   :  { %8 = vsyncpa [#allocation3], 0  ;;  %s587_s15 = smov [#allocation2]   ;;  %s588_s17 = smov 64   ;;  %s646_s0 = inlined_call_operand.vmem [shape: bf16[16,512], index: 0, kind: input, shape index: {}]   ;;  %s647_s1 = inlined_call_operand.hbm [shape: bf16[512,128], index: 1, kind: input, shape index: {}]   ;;  %s648_s2 = inlined_call_operand.vmem [shape: f32[1,128], index: 2, kind: input, shape index: {}]   ;;  %s649_s3 = inlined_call_operand.vmem [shape: f32[16,128], index: 3, kind: output, shape index: {}]  }
   0x1   :  { %s15_s14 = sshll.u32 %s647_s1, 4  ;;  %s17_s16 = sshll.u32 %s587_s15, 4  ;;  %s16_s14 = int_to_ptr.hbm [resolvable:$true] %s15_s14  ;;  %s18_s16 = int_to_ptr.vmem [resolvable:$true] %s17_s16 }
   0x2   :  { %s589_s18 = smov 4  }
   0x3   :  { %23 = dma.hbm_to_vmem [thread:$0]  %s16_s14, 4096, %s18_s16, [#allocation3], %s588_s17, %s588_s17, %s589_s18  }
   0x4   :  { %585 = dma.done.wait [#allocation3], 4096  }
   0x5   :  { %586 = vsyncadd [#allocation3], 4294963200  ;;  %v532_v0 = vld [vmem:[#allocation2 + $0x38] sm:$0xff]  ;;  %v531_v4 = vld [vmem:[#allocation2 + $0x30] sm:$0xff] }
   0x6   :  { %v540_v1 = vld [vmem:[#allocation2 + $0x78] sm:$0xff]  ;;  %314 = vmatpush.bf16.msra.mxu0 %v532_v0  ;;  %v539_v5 = vld [vmem:[#allocation2 + $0x70] sm:$0xff]  ;;  %v530_v8 = vld [vmem:[#allocation2 + $0x28] sm:$0xff] }
   0x7   :  { %v548_v2 = vld [vmem:[#allocation2 + $0xb8] sm:$0xff]  ;;  %328 = vmatpush.bf16.msra.mxu1 %v540_v1  ;;  %v547_v6 = vld [vmem:[#allocation2 + $0xb0] sm:$0xff]  ;;  %v538_v9 = vld [vmem:[#allocation2 + $0x68] sm:$0xff] }
   0x8   :  { %v556_v3 = vld [vmem:[#allocation2 + $0xf8] sm:$0xff]  ;;  %342 = vmatpush.bf16.msra.mxu2 %v548_v2  ;;  %v555_v7 = vld [vmem:[#allocation2 + $0xf0] sm:$0xff]  ;;  %v546_v10 = vld [vmem:[#allocation2 + $0xa8] sm:$0xff] }
   0x9   :  { %356 = vmatpush.bf16.msra.mxu3 %v556_v3  ;;  %v554_v11 = vld [vmem:[#allocation2 + $0xe8] sm:$0xff]  ;;  %v529_v12 = vld [vmem:[#allocation2 + $0x20] sm:$0xff]  ;;  %v528_v16 = vld [vmem:[#allocation2 + $0x18] sm:$0xff] }
   0xa   :  { %315 = vmatpush.bf16.msra.mxu0 %v531_v4  ;;  %v537_v13 = vld [vmem:[#allocation2 + $0x60] sm:$0xff]  ;;  %v536_v17 = vld [vmem:[#allocation2 + $0x58] sm:$0xff]  ;;  %v527_v20 = vld [vmem:[#allocation2 + $0x10] sm:$0xff] }
   0xb   :  { %329 = vmatpush.bf16.msra.mxu1 %v539_v5  ;;  %v545_v14 = vld [vmem:[#allocation2 + $0xa0] sm:$0xff]  ;;  %v544_v18 = vld [vmem:[#allocation2 + $0x98] sm:$0xff]  ;;  %v535_v21 = vld [vmem:[#allocation2 + $0x50] sm:$0xff] }
   0xc   :  { %343 = vmatpush.bf16.msra.mxu2 %v547_v6  ;;  %v553_v15 = vld [vmem:[#allocation2 + $0xe0] sm:$0xff]  ;;  %v552_v19 = vld [vmem:[#allocation2 + $0xd8] sm:$0xff]  ;;  %v543_v22 = vld [vmem:[#allocation2 + $0x90] sm:$0xff] }
   0xd   :  { %357 = vmatpush.bf16.msra.mxu3 %v555_v7  ;;  %v551_v23 = vld [vmem:[#allocation2 + $0xd0] sm:$0xff]  ;;  %v526_v24 = vld [vmem:[#allocation2 + $0x8] sm:$0xff]  ;;  %v525_v28 = vld [vmem:[#allocation2] sm:$0xff] }
   0xe   :  { %316 = vmatpush.bf16.msra.mxu0 %v530_v8  ;;  %v534_v25 = vld [vmem:[#allocation2 + $0x48] sm:$0xff]  ;;  %v533_v29 = vld [vmem:[#allocation2 + $0x40] sm:$0xff]  ;;  %v523_v33 = vld [vmem:[%s646_s0 + $0xc] sm:$0xf0] }
   0xf   :  { %330 = vmatpush.bf16.msra.mxu1 %v538_v9  ;;  %v542_v26 = vld [vmem:[#allocation2 + $0x88] sm:$0xff]  ;;  %v541_v30 = vld [vmem:[#allocation2 + $0x80] sm:$0xff]  ;;  %v381_v35 = vld [vmem:[%s646_s0 + $0x10] sm:$0xf0] }
  0x10   :  { %344 = vmatpush.bf16.msra.mxu2 %v546_v10  ;;  %v550_v27 = vld [vmem:[#allocation2 + $0xc8] sm:$0xff]  ;;  %v549_v31 = vld [vmem:[#allocation2 + $0xc0] sm:$0xff]  ;;  %v524_v37 = vld [vmem:[%s646_s0 + $0x14] sm:$0xf0] }
  0x11   :  { %358 = vmatpush.bf16.msra.mxu3 %v554_v11  ;;  %v379_v32 = vld [vmem:[%s646_s0] sm:$0xf]  ;;  %v521_v34 = vld [vmem:[%s646_s0 + $0x4] sm:$0xf]  ;;  %v387_v36 = vld [vmem:[%s646_s0 + $0x8] sm:$0xf] }
  0x12   :  { %317 = vmatpush.bf16.msra.mxu0 %v529_v12  ;;  %v522_v38 = vld [vmem:[%s646_s0 + $0xc] sm:$0xf]  ;;  %v389_v39 = vld [vmem:[%s646_s0 + $0x18] sm:$0xf0]  ;;  %v380_v40 = vor.u32 %v523_v33, %v379_v32  ;;  %v384_v41 = vor.u32 %v521_v34, %v381_v35  ;;  %v388_v42 = vor.u32 %v524_v37, %v387_v36  ;;  %v560_v44 = vld [vmem:[%s648_s2] ss:$0 sm:$0xff] }
  0x13   :  { %331 = vmatpush.bf16.msra.mxu1 %v537_v13  ;;  %v392_v43 = vor.u32 %v522_v38, %v389_v39 }
  0x14   :  { %345 = vmatpush.bf16.msra.mxu2 %v545_v14 }
  0x15   :  { %359 = vmatpush.bf16.msra.mxu3 %v553_v15 }
  0x16   :  { %318 = vmatpush.bf16.msra.mxu0 %v528_v16 }
  0x17   :  { %332 = vmatpush.bf16.msra.mxu1 %v536_v17 }
  0x18   :  { %346 = vmatpush.bf16.msra.mxu2 %v544_v18 }
  0x19   :  { %360 = vmatpush.bf16.msra.mxu3 %v552_v19 }
  0x1a   :  { %319 = vmatpush.bf16.msra.mxu0 %v527_v20 }
  0x1b   :  { %333 = vmatpush.bf16.msra.mxu1 %v535_v21 }
  0x1c   :  { %347 = vmatpush.bf16.msra.mxu2 %v543_v22 }
  0x1d   :  { %361 = vmatpush.bf16.msra.mxu3 %v551_v23 }
  0x1e   :  { %320 = vmatpush.bf16.msra.mxu0 %v526_v24 }
  0x1f   :  { %334 = vmatpush.bf16.msra.mxu1 %v534_v25 }
  0x20   :  { %348 = vmatpush.bf16.msra.mxu2 %v542_v26 }
  0x21   :  { %362 = vmatpush.bf16.msra.mxu3 %v550_v27 }
  0x22   :  { %321 = vmatpush.bf16.msra.mxu0 %v525_v28 }
  0x23   :  { %335 = vmatpush.bf16.msra.mxu1 %v533_v29 }
  0x24   :  { %349 = vmatpush.bf16.msra.mxu2 %v541_v30 }
  0x25   :  { %363 = vmatpush.bf16.msra.mxu3 %v549_v31  ;;  %322 = vmatmul.bf16.vlgmr.msra.gmra.mxu0 %v380_v40 }
  0x26   :  { %336 = vmatmul.bf16.vlgmr.msra.gmra.mxu1 %v384_v41 }
  0x27   :  { %350 = vmatmul.bf16.vlgmr.msra.gmra.mxu2 %v388_v42 }
  0x28   :  { %364 = vmatmul.bf16.vlgmr.msra.gmra.mxu3 %v392_v43 }
  0xa2   :  { %v323_v45 = vpop.f32.mrf.mxu0 }
  0xa3   :  { %v324_v46 = vadd.f32 %v560_v44, %v323_v45  ;;  %v337_v47 = vpop.f32.mrf.mxu1 }
  0xa5   :  { %v338_v48 = vadd.f32 %v337_v47, %v324_v46 }
  0xaa   :  { %v351_v49 = vpop.f32.mrf.mxu2  ;;  %v325_v52 = vpop.f32.mrf.mxu0 }
  0xab   :  { %v365_v50 = vpop.f32.mrf.mxu3  ;;  %v352_v51 = vadd.f32 %v351_v49, %v338_v48  ;;  %v326_v54 = vadd.f32 %v560_v44, %v325_v52  ;;  %v339_v55 = vpop.f32.mrf.mxu1 }
  0xad   :  { %v366_v53 = vadd.f32 %v365_v50, %v352_v51  ;;  %v340_v56 = vadd.f32 %v339_v55, %v326_v54 }
  0xaf   :  { %370 = vst [vmem:[%s649_s3] sm:$0xff] %v366_v53 }
  0xb2   :  { %v353_v57 = vpop.f32.mrf.mxu2 }
  0xb3   :  { %v354_v58 = vadd.f32 %v353_v57, %v340_v56  ;;  %v367_v59 = vpop.f32.mrf.mxu3 }
  0xb5   :  { %v368_v60 = vadd.f32 %v367_v59, %v354_v58 }
  0xb7   :  { %371 = vst [vmem:[%s649_s3 + $0x8] sm:$0xff] %v368_v60 }
  0xb8   :  { %376 = vsyncpa [#allocation3], 1 }

</bundles_post_ra>
